<compile_context>
chip_gen: v6e
topology: v6e:2x2x1
jax: 0.10.0
libtpu: 0.0.40
codegen_flags: <defaults>
</compile_context>

<pallas_src>
import functools

import jax
import jax.numpy as jnp
from jax.experimental import pallas as pl
from jax.experimental.pallas import tpu as pltpu

EPS = 1e-5  # BatchNorm2d eps


def strippool_kernel(x_ref, w1_ref, wc1_ref, wc2_ref, w3_ref,
                     bn_ic_ref, bn_c_ref, o_ref, *, H, W):
    """Fused StripPool forward.

    x_ref    : (C, N, H*W)  VMEM  input, channel-major lane-dense slab
    w1_ref   : (IC, C)      SMEM  conv1x1 weights (1x1, no bias)
    wc1_ref  : (IC, IC*3)   SMEM  conv1 (1,3) weights, flattened (oc, ic*3+k)
    wc2_ref  : (IC, IC*3)   SMEM  conv2 (3,1) weights, flattened (oc, ic*3+k)
    w3_ref   : (C, C)       SMEM  conv3 1x1 weights over concat([x1, x2])
    bn_ic_ref: (6, IC)      SMEM  rows: g1, b1, gc1, bc1, gc2, bc2
    bn_c_ref : (2, C)       SMEM  rows: g3, b3
    o_ref    : (C, N, H*W)  VMEM  output slab
    """
    C, N, HW = x_ref.shape
    IC = w1_ref.shape[0]
    f32 = jnp.float32

    inv_nhw = 1.0 / float(N * HW)
    inv_nw = 1.0 / float(N * W)
    inv_nh = 1.0 / float(N * H)

    def bn_fused(acc, inv_cnt, gamma, beta):
        # One-pass training-mode BN: var = E[x^2] - E[x]^2 (biased), fused affine.
        s = jnp.sum(acc)
        ss = jnp.sum(acc * acc)
        mean = s * inv_cnt
        var = jnp.maximum(ss * inv_cnt - mean * mean, 0.0)
        scale = jax.lax.rsqrt(var + EPS) * gamma
        return acc * scale + (beta - mean * scale)

    # ---- load input once (C lane-dense (N, HW) rows) ------------------------
    x_rows = [x_ref[c] for c in range(C)]

    # ---- conv1x1 -> BN(train) -> ReLU  (in_ch -> inter_ch) ------------------
    # NOTE: scalar-weighted madds are fine at C=4; switch to an MXU jnp.dot on
    # the (C, N*HW) slab if channel counts grow.
    y_rows = []
    for oc in range(IC):
        acc = jnp.zeros((N, HW), f32)
        for ic in range(C):
            acc = acc + w1_ref[oc, ic] * x_rows[ic]
        y = bn_fused(acc, inv_nhw, bn_ic_ref[0, oc], bn_ic_ref[1, oc])
        y_rows.append(jnp.maximum(y, 0.0))  # ReLU(inplace=True)

    # ---- strip pooling (AdaptiveAvgPool2d((1,None)) / ((None,1))) ----------
    # Flat index p = h*W + w inside each (N, HW) row.
    p1 = []  # (N, W): mean over H
    p2 = []  # (N, H): mean over W
    for c in range(IC):
        rows_h = [y_rows[c][:, h * W:(h + 1) * W] for h in range(H)]  # H x (N, W)
        acc_h = rows_h[0]
        for h in range(1, H):
            acc_h = acc_h + rows_h[h]
        p1.append(acc_h * (1.0 / H))
        p2.append(jnp.concatenate(
            [jnp.sum(r, axis=1, keepdims=True) for r in rows_h], axis=1) * (1.0 / W))

    # ---- conv1: (1,3) conv along W (pad 1) + BN over (N, W) -----------------
    zc = jnp.zeros((N, 1), f32)
    p1pad = [jnp.concatenate([zc, p1[c], zc], axis=1) for c in range(IC)]  # (N, W+2)
    x1bn = []
    for oc in range(IC):
        acc = jnp.zeros((N, W), f32)
        for ic in range(IC):
            for k in range(3):
                acc = acc + wc1_ref[oc, ic * 3 + k] * p1pad[ic][:, k:k + W]
        x1bn.append(bn_fused(acc, inv_nw, bn_ic_ref[2, oc], bn_ic_ref[3, oc]))

    # ---- conv2: (3,1) conv along H (pad 1) + BN over (N, H) -----------------
    p2pad = [jnp.concatenate([zc, p2[c], zc], axis=1) for c in range(IC)]  # (N, H+2)
    x2bn = []
    for oc in range(IC):
        acc = jnp.zeros((N, H), f32)
        for ic in range(IC):
            for k in range(3):
                acc = acc + wc2_ref[oc, ic * 3 + k] * p2pad[ic][:, k:k + H]
        x2bn.append(bn_fused(acc, inv_nh, bn_ic_ref[4, oc], bn_ic_ref[5, oc]))

    # ---- nearest-interpolate == broadcast strips back to (N, H*W) ----------
    # x1 is constant over H  -> tile the (N, W) row H times along lanes.
    # x2 is constant over W  -> repeat each (N, 1) column W times along lanes.
    x1_full = [jnp.concatenate([x1bn[c]] * H, axis=1) for c in range(IC)]
    x2_full = [jnp.concatenate(
                   [jnp.broadcast_to(x2bn[c][:, h:h + 1], (N, W)) for h in range(H)],
                   axis=1)
               for c in range(IC)]

    # ---- conv3 (1x1 over concat([x1, x2])) + BN, lane-dense stores ----------
    for oc in range(C):
        acc = jnp.zeros((N, HW), f32)
        for c in range(IC):
            acc = acc + w3_ref[oc, c] * x1_full[c]          # x1 channels come first
        for c in range(IC):
            acc = acc + w3_ref[oc, IC + c] * x2_full[c]     # then x2 channels
        o_ref[oc] = bn_fused(acc, inv_nhw, bn_c_ref[0, oc], bn_c_ref[1, oc])


def strippool_forward(x, w1, wc1, wc2, w3,
                      g1, b1, gc1, bc1, gc2, bc2, g3, b3):
    """x: (N, C, H, W) f32; w1: (IC, C); wc1/wc2: (IC, IC, 3); w3: (C, C);
    g*/b*: BN affine params ((IC,) or (C,)). Returns (N, C, H, W) f32."""
    N, C, H, W = x.shape
    IC = w1.shape[0]
    assert C == 2 * IC, "concat([x1, x2]) channels must equal in_channels for conv3"
    HW = H * W

    # Lane-dense channel-major slab (C, N, H*W); wrapper-side layout plumbing only.
    x_slab = jnp.transpose(x, (1, 0, 2, 3)).reshape(C, N, HW)
    wc1_flat = wc1.reshape(IC, IC * 3)
    wc2_flat = wc2.reshape(IC, IC * 3)
    bn_ic = jnp.stack([g1, b1, gc1, bc1, gc2, bc2], axis=0)   # (6, IC)
    bn_c = jnp.stack([g3, b3], axis=0)                        # (2, C)

    flops = (2 * N * HW * (C * IC + C * C)        # the two 1x1 convs
             + 4 * N * HW * IC                    # strip pools
             + 2 * 3 * IC * IC * N * (H + W)      # strip convs
             + 8 * N * HW * C)                    # BN / broadcast elementwise
    cost = pl.CostEstimate(flops=int(flops),
                           transcendentals=int(3 * IC + C),
                           bytes_accessed=int(4 * 2 * C * N * HW))

    out_slab = pl.pallas_call(
        functools.partial(strippool_kernel, H=H, W=W),
        out_shape=jax.ShapeDtypeStruct((C, N, HW), jnp.float32),
        in_specs=[
            pl.BlockSpec(memory_space=pltpu.MemorySpace.VMEM),   # x slab
            pl.BlockSpec(memory_space=pltpu.MemorySpace.SMEM),   # w1
            pl.BlockSpec(memory_space=pltpu.MemorySpace.SMEM),   # wc1
            pl.BlockSpec(memory_space=pltpu.MemorySpace.SMEM),   # wc2
            pl.BlockSpec(memory_space=pltpu.MemorySpace.SMEM),   # w3
            pl.BlockSpec(memory_space=pltpu.MemorySpace.SMEM),   # bn (inter ch)
            pl.BlockSpec(memory_space=pltpu.MemorySpace.SMEM),   # bn (out ch)
        ],
        out_specs=pl.BlockSpec(memory_space=pltpu.MemorySpace.VMEM),
        cost_estimate=cost,
    )(x_slab, w1, wc1_flat, wc2_flat, w3, bn_ic, bn_c)

    return jnp.transpose(out_slab.reshape(C, N, H, W), (1, 0, 2, 3))


def strippool_reference(x, w1, wc1, wc2, w3,
                        g1, b1, gc1, bc1, gc2, bc2, g3, b3):
    """Pure-JAX reference matching the PyTorch forward (training-mode BN)."""
    N, C, H, W = x.shape
    IC = w1.shape[0]
    dn = ("NCHW", "OIHW", "NCHW")

    def bn_train(t, g, b):
        mean = t.mean(axis=(0, 2, 3), keepdims=True)
        var = ((t - mean) ** 2).mean(axis=(0, 2, 3), keepdims=True)
        t = (t - mean) * jax.lax.rsqrt(var + EPS)
        return t * g.reshape(1, -1, 1, 1) + b.reshape(1, -1, 1, 1)

    y = jax.lax.conv_general_dilated(x, w1.reshape(IC, C, 1, 1), (1, 1), "VALID",
                                     dimension_numbers=dn)
    y = jax.nn.relu(bn_train(y, g1, b1))

    p1 = y.mean(axis=2, keepdims=True)                                    # (N, IC, 1, W)
    c1 = jax.lax.conv_general_dilated(p1, wc1.reshape(IC, IC, 1, 3), (1, 1),
                                      [(0, 0), (1, 1)], dimension_numbers=dn)
    x1 = jnp.broadcast_to(bn_train(c1, gc1, bc1), (N, IC, H, W))          # nearest interp

    p2 = y.mean(axis=3, keepdims=True)                                    # (N, IC, H, 1)
    c2 = jax.lax.conv_general_dilated(p2, wc2.reshape(IC, IC, 3, 1), (1, 1),
                                      [(1, 1), (0, 0)], dimension_numbers=dn)
    x2 = jnp.broadcast_to(bn_train(c2, gc2, bc2), (N, IC, H, W))          # nearest interp

    z = jnp.concatenate([x1, x2], axis=1)
    out = jax.lax.conv_general_dilated(z, w3.reshape(C, C, 1, 1), (1, 1), "VALID",
                                       dimension_numbers=dn)
    return bn_train(out, g3, b3)


if __name__ == "__main__":
    # Small shapes consistent with the module: in_channels=4, reduction=2.
    N, C, H, W = 2, 4, 16, 16
    reduction = 2
    IC = C // reduction

    key = jax.random.PRNGKey(0)
    kx, k1, kc1, kc2, k3 = jax.random.split(key, 5)

    x = jax.random.normal(kx, (N, C, H, W), dtype=jnp.float32)
    # Deterministic conv weights (small normals); BN affine at default init.
    w1 = 0.1 * jax.random.normal(k1, (IC, C), dtype=jnp.float32)        # conv1x1
    wc1 = 0.1 * jax.random.normal(kc1, (IC, IC, 3), dtype=jnp.float32)  # (1,3) conv
    wc2 = 0.1 * jax.random.normal(kc2, (IC, IC, 3), dtype=jnp.float32)  # (3,1) conv
    w3 = 0.1 * jax.random.normal(k3, (C, C), dtype=jnp.float32)         # conv3
    g_ic = jnp.ones((IC,), jnp.float32)
    b_ic = jnp.zeros((IC,), jnp.float32)
    g_c = jnp.ones((C,), jnp.float32)
    b_c = jnp.zeros((C,), jnp.float32)

    out = strippool_forward(x, w1, wc1, wc2, w3,
                            g_ic, b_ic, g_ic, b_ic, g_ic, b_ic, g_c, b_c)
    out = jax.block_until_ready(out)

    ref = jax.block_until_ready(
        strippool_reference(x, w1, wc1, wc2, w3,
                            g_ic, b_ic, g_ic, b_ic, g_ic, b_ic, g_c, b_c))

    assert out.shape == (N, C, H, W)
    # 5e-4 tolerance: one-pass BN variance vs. the reference's two-pass form.
    assert jnp.max(jnp.abs(out - ref)) < 5e-4, "kernel mismatch vs. reference"

    print("KERNEL_OK")
</pallas_src>

<mosaic_0001>
module attributes {stable_mosaic.version = 11 : i64} {
  func.func @strippool_kernel(%arg0: memref<4x2x256xf32, #tpu.memory_space<vmem>>, %arg1: memref<2x4xf32, #tpu.memory_space<smem>>, %arg2: memref<2x6xf32, #tpu.memory_space<smem>>, %arg3: memref<2x6xf32, #tpu.memory_space<smem>>, %arg4: memref<4x4xf32, #tpu.memory_space<smem>>, %arg5: memref<6x2xf32, #tpu.memory_space<smem>>, %arg6: memref<2x4xf32, #tpu.memory_space<smem>>, %arg7: memref<4x2x256xf32, #tpu.memory_space<vmem>>) attributes {dimension_semantics = [], scalar_prefetch = 0 : i64, scratch_operands = 0 : i64, tpu.core_type = #tpu.core_type<tc>} {
    %c0 = arith.constant 0 : index
    %c0_0 = arith.constant 0 : index
    %c0_1 = arith.constant 0 : index
    %0 = vector.load %arg0[%c0, %c0_0, %c0_1] : memref<4x2x256xf32, #tpu.memory_space<vmem>>, vector<1x2x256xf32>
    %1 = vector.shape_cast %0 : vector<1x2x256xf32> to vector<2x256xf32>
    %c1 = arith.constant 1 : index
    %c0_2 = arith.constant 0 : index
    %c0_3 = arith.constant 0 : index
    %2 = vector.load %arg0[%c1, %c0_2, %c0_3] : memref<4x2x256xf32, #tpu.memory_space<vmem>>, vector<1x2x256xf32>
    %3 = vector.shape_cast %2 : vector<1x2x256xf32> to vector<2x256xf32>
    %c2 = arith.constant 2 : index
    %c0_4 = arith.constant 0 : index
    %c0_5 = arith.constant 0 : index
    %4 = vector.load %arg0[%c2, %c0_4, %c0_5] : memref<4x2x256xf32, #tpu.memory_space<vmem>>, vector<1x2x256xf32>
    %5 = vector.shape_cast %4 : vector<1x2x256xf32> to vector<2x256xf32>
    %c3 = arith.constant 3 : index
    %c0_6 = arith.constant 0 : index
    %c0_7 = arith.constant 0 : index
    %6 = vector.load %arg0[%c3, %c0_6, %c0_7] : memref<4x2x256xf32, #tpu.memory_space<vmem>>, vector<1x2x256xf32>
    %7 = vector.shape_cast %6 : vector<1x2x256xf32> to vector<2x256xf32>
    %cst = arith.constant 0.000000e+00 : f32
    %8 = vector.broadcast %cst : f32 to vector<2x256xf32>
    %c0_8 = arith.constant 0 : index
    %c0_9 = arith.constant 0 : index
    %9 = memref.load %arg1[%c0_8, %c0_9] : memref<2x4xf32, #tpu.memory_space<smem>>
    %10 = vector.broadcast %9 : f32 to vector<2x256xf32>
    %11 = arith.mulf %10, %1 : vector<2x256xf32>
    %12 = arith.addf %8, %11 : vector<2x256xf32>
    %c0_10 = arith.constant 0 : index
    %c1_11 = arith.constant 1 : index
    %13 = memref.load %arg1[%c0_10, %c1_11] : memref<2x4xf32, #tpu.memory_space<smem>>
    %14 = vector.broadcast %13 : f32 to vector<2x256xf32>
    %15 = arith.mulf %14, %3 : vector<2x256xf32>
    %16 = arith.addf %12, %15 : vector<2x256xf32>
    %c0_12 = arith.constant 0 : index
    %c2_13 = arith.constant 2 : index
    %17 = memref.load %arg1[%c0_12, %c2_13] : memref<2x4xf32, #tpu.memory_space<smem>>
    %18 = vector.broadcast %17 : f32 to vector<2x256xf32>
    %19 = arith.mulf %18, %5 : vector<2x256xf32>
    %20 = arith.addf %16, %19 : vector<2x256xf32>
    %c0_14 = arith.constant 0 : index
    %c3_15 = arith.constant 3 : index
    %21 = memref.load %arg1[%c0_14, %c3_15] : memref<2x4xf32, #tpu.memory_space<smem>>
    %22 = vector.broadcast %21 : f32 to vector<2x256xf32>
    %23 = arith.mulf %22, %7 : vector<2x256xf32>
    %24 = arith.addf %20, %23 : vector<2x256xf32>
    %c0_16 = arith.constant 0 : index
    %c0_17 = arith.constant 0 : index
    %25 = memref.load %arg5[%c0_16, %c0_17] : memref<6x2xf32, #tpu.memory_space<smem>>
    %c1_18 = arith.constant 1 : index
    %c0_19 = arith.constant 0 : index
    %26 = memref.load %arg5[%c1_18, %c0_19] : memref<6x2xf32, #tpu.memory_space<smem>>
    %27 = vector.shape_cast %24 : vector<2x256xf32> to vector<1x2x256xf32>
    %cst_20 = arith.constant dense<0.000000e+00> : vector<1xf32>
    %28 = vector.multi_reduction <add>, %27, %cst_20 [1, 2] : vector<1x2x256xf32> to vector<1xf32>
    %29 = vector.shape_cast %28 : vector<1xf32> to vector<1x1x1xf32>
    %30 = vector.extract %29[0, 0, 0] : f32 from vector<1x1x1xf32>
    %31 = arith.mulf %24, %24 : vector<2x256xf32>
    %32 = vector.shape_cast %31 : vector<2x256xf32> to vector<1x2x256xf32>
    %cst_21 = arith.constant dense<0.000000e+00> : vector<1xf32>
    %33 = vector.multi_reduction <add>, %32, %cst_21 [1, 2] : vector<1x2x256xf32> to vector<1xf32>
    %34 = vector.shape_cast %33 : vector<1xf32> to vector<1x1x1xf32>
    %35 = vector.extract %34[0, 0, 0] : f32 from vector<1x1x1xf32>
    %cst_22 = arith.constant 0.001953125 : f32
    %36 = arith.mulf %30, %cst_22 : f32
    %cst_23 = arith.constant 0.001953125 : f32
    %37 = arith.mulf %35, %cst_23 : f32
    %38 = arith.mulf %36, %36 : f32
    %39 = arith.subf %37, %38 : f32
    %cst_24 = arith.constant 0.000000e+00 : f32
    %40 = arith.maximumf %39, %cst_24 : f32
    %cst_25 = arith.constant 9.99999974E-6 : f32
    %41 = arith.addf %40, %cst_25 : f32
    %42 = math.rsqrt %41 : f32
    %43 = arith.mulf %42, %25 : f32
    %44 = vector.broadcast %43 : f32 to vector<2x256xf32>
    %45 = arith.mulf %24, %44 : vector<2x256xf32>
    %46 = arith.mulf %36, %43 : f32
    %47 = arith.subf %26, %46 : f32
    %48 = vector.broadcast %47 : f32 to vector<2x256xf32>
    %49 = arith.addf %45, %48 : vector<2x256xf32>
    %cst_26 = arith.constant 0.000000e+00 : f32
    %50 = vector.broadcast %cst_26 : f32 to vector<2x256xf32>
    %51 = arith.maximumf %49, %50 : vector<2x256xf32>
    %cst_27 = arith.constant 0.000000e+00 : f32
    %52 = vector.broadcast %cst_27 : f32 to vector<2x256xf32>
    %c1_28 = arith.constant 1 : index
    %c0_29 = arith.constant 0 : index
    %53 = memref.load %arg1[%c1_28, %c0_29] : memref<2x4xf32, #tpu.memory_space<smem>>
    %54 = vector.broadcast %53 : f32 to vector<2x256xf32>
    %55 = arith.mulf %54, %1 : vector<2x256xf32>
    %56 = arith.addf %52, %55 : vector<2x256xf32>
    %c1_30 = arith.constant 1 : index
    %c1_31 = arith.constant 1 : index
    %57 = memref.load %arg1[%c1_30, %c1_31] : memref<2x4xf32, #tpu.memory_space<smem>>
    %58 = vector.broadcast %57 : f32 to vector<2x256xf32>
    %59 = arith.mulf %58, %3 : vector<2x256xf32>
    %60 = arith.addf %56, %59 : vector<2x256xf32>
    %c1_32 = arith.constant 1 : index
    %c2_33 = arith.constant 2 : index
    %61 = memref.load %arg1[%c1_32, %c2_33] : memref<2x4xf32, #tpu.memory_space<smem>>
    %62 = vector.broadcast %61 : f32 to vector<2x256xf32>
    %63 = arith.mulf %62, %5 : vector<2x256xf32>
    %64 = arith.addf %60, %63 : vector<2x256xf32>
    %c1_34 = arith.constant 1 : index
    %c3_35 = arith.constant 3 : index
    %65 = memref.load %arg1[%c1_34, %c3_35] : memref<2x4xf32, #tpu.memory_space<smem>>
    %66 = vector.broadcast %65 : f32 to vector<2x256xf32>
    %67 = arith.mulf %66, %7 : vector<2x256xf32>
    %68 = arith.addf %64, %67 : vector<2x256xf32>
    %c0_36 = arith.constant 0 : index
    %c1_37 = arith.constant 1 : index
    %69 = memref.load %arg5[%c0_36, %c1_37] : memref<6x2xf32, #tpu.memory_space<smem>>
    %c1_38 = arith.constant 1 : index
    %c1_39 = arith.constant 1 : index
    %70 = memref.load %arg5[%c1_38, %c1_39] : memref<6x2xf32, #tpu.memory_space<smem>>
    %71 = vector.shape_cast %68 : vector<2x256xf32> to vector<1x2x256xf32>
    %cst_40 = arith.constant dense<0.000000e+00> : vector<1xf32>
    %72 = vector.multi_reduction <add>, %71, %cst_40 [1, 2] : vector<1x2x256xf32> to vector<1xf32>
    %73 = vector.shape_cast %72 : vector<1xf32> to vector<1x1x1xf32>
    %74 = vector.extract %73[0, 0, 0] : f32 from vector<1x1x1xf32>
    %75 = arith.mulf %68, %68 : vector<2x256xf32>
    %76 = vector.shape_cast %75 : vector<2x256xf32> to vector<1x2x256xf32>
    %cst_41 = arith.constant dense<0.000000e+00> : vector<1xf32>
    %77 = vector.multi_reduction <add>, %76, %cst_41 [1, 2] : vector<1x2x256xf32> to vector<1xf32>
    %78 = vector.shape_cast %77 : vector<1xf32> to vector<1x1x1xf32>
    %79 = vector.extract %78[0, 0, 0] : f32 from vector<1x1x1xf32>
    %cst_42 = arith.constant 0.001953125 : f32
    %80 = arith.mulf %74, %cst_42 : f32
    %cst_43 = arith.constant 0.001953125 : f32
    %81 = arith.mulf %79, %cst_43 : f32
    %82 = arith.mulf %80, %80 : f32
    %83 = arith.subf %81, %82 : f32
    %cst_44 = arith.constant 0.000000e+00 : f32
    %84 = arith.maximumf %83, %cst_44 : f32
    %cst_45 = arith.constant 9.99999974E-6 : f32
    %85 = arith.addf %84, %cst_45 : f32
    %86 = math.rsqrt %85 : f32
    %87 = arith.mulf %86, %69 : f32
    %88 = vector.broadcast %87 : f32 to vector<2x256xf32>
    %89 = arith.mulf %68, %88 : vector<2x256xf32>
    %90 = arith.mulf %80, %87 : f32
    %91 = arith.subf %70, %90 : f32
    %92 = vector.broadcast %91 : f32 to vector<2x256xf32>
    %93 = arith.addf %89, %92 : vector<2x256xf32>
    %cst_46 = arith.constant 0.000000e+00 : f32
    %94 = vector.broadcast %cst_46 : f32 to vector<2x256xf32>
    %95 = arith.maximumf %93, %94 : vector<2x256xf32>
    %96 = vector.extract_strided_slice %51 {offsets = [0, 0], sizes = [2, 16], strides = [1, 1]} : vector<2x256xf32> to vector<2x16xf32>
    %97 = vector.extract_strided_slice %51 {offsets = [0, 16], sizes = [2, 16], strides = [1, 1]} : vector<2x256xf32> to vector<2x16xf32>
    %98 = vector.extract_strided_slice %51 {offsets = [0, 32], sizes = [2, 16], strides = [1, 1]} : vector<2x256xf32> to vector<2x16xf32>
    %99 = vector.extract_strided_slice %51 {offsets = [0, 48], sizes = [2, 16], strides = [1, 1]} : vector<2x256xf32> to vector<2x16xf32>
    %100 = vector.extract_strided_slice %51 {offsets = [0, 64], sizes = [2, 16], strides = [1, 1]} : vector<2x256xf32> to vector<2x16xf32>
    %101 = vector.extract_strided_slice %51 {offsets = [0, 80], sizes = [2, 16], strides = [1, 1]} : vector<2x256xf32> to vector<2x16xf32>
    %102 = vector.extract_strided_slice %51 {offsets = [0, 96], sizes = [2, 16], strides = [1, 1]} : vector<2x256xf32> to vector<2x16xf32>
    %103 = vector.extract_strided_slice %51 {offsets = [0, 112], sizes = [2, 16], strides = [1, 1]} : vector<2x256xf32> to vector<2x16xf32>
    %104 = vector.extract_strided_slice %51 {offsets = [0, 128], sizes = [2, 16], strides = [1, 1]} : vector<2x256xf32> to vector<2x16xf32>
    %105 = vector.extract_strided_slice %51 {offsets = [0, 144], sizes = [2, 16], strides = [1, 1]} : vector<2x256xf32> to vector<2x16xf32>
    %106 = vector.extract_strided_slice %51 {offsets = [0, 160], sizes = [2, 16], strides = [1, 1]} : vector<2x256xf32> to vector<2x16xf32>
    %107 = vector.extract_strided_slice %51 {offsets = [0, 176], sizes = [2, 16], strides = [1, 1]} : vector<2x256xf32> to vector<2x16xf32>
    %108 = vector.extract_strided_slice %51 {offsets = [0, 192], sizes = [2, 16], strides = [1, 1]} : vector<2x256xf32> to vector<2x16xf32>
    %109 = vector.extract_strided_slice %51 {offsets = [0, 208], sizes = [2, 16], strides = [1, 1]} : vector<2x256xf32> to vector<2x16xf32>
    %110 = vector.extract_strided_slice %51 {offsets = [0, 224], sizes = [2, 16], strides = [1, 1]} : vector<2x256xf32> to vector<2x16xf32>
    %111 = vector.extract_strided_slice %51 {offsets = [0, 240], sizes = [2, 16], strides = [1, 1]} : vector<2x256xf32> to vector<2x16xf32>
    %112 = arith.addf %96, %97 : vector<2x16xf32>
    %113 = arith.addf %112, %98 : vector<2x16xf32>
    %114 = arith.addf %113, %99 : vector<2x16xf32>
    %115 = arith.addf %114, %100 : vector<2x16xf32>
    %116 = arith.addf %115, %101 : vector<2x16xf32>
    %117 = arith.addf %116, %102 : vector<2x16xf32>
    %118 = arith.addf %117, %103 : vector<2x16xf32>
    %119 = arith.addf %118, %104 : vector<2x16xf32>
    %120 = arith.addf %119, %105 : vector<2x16xf32>
    %121 = arith.addf %120, %106 : vector<2x16xf32>
    %122 = arith.addf %121, %107 : vector<2x16xf32>
    %123 = arith.addf %122, %108 : vector<2x16xf32>
    %124 = arith.addf %123, %109 : vector<2x16xf32>
    %125 = arith.addf %124, %110 : vector<2x16xf32>
    %126 = arith.addf %125, %111 : vector<2x16xf32>
    %cst_47 = arith.constant 6.250000e-02 : f32
    %127 = vector.broadcast %cst_47 : f32 to vector<2x16xf32>
    %128 = arith.mulf %126, %127 : vector<2x16xf32>
    %cst_48 = arith.constant dense<0.000000e+00> : vector<2xf32>
    %129 = vector.multi_reduction <add>, %96, %cst_48 [1] : vector<2x16xf32> to vector<2xf32>
    %130 = vector.shape_cast %129 : vector<2xf32> to vector<2x1xf32>
    %cst_49 = arith.constant dense<0.000000e+00> : vector<2xf32>
    %131 = vector.multi_reduction <add>, %97, %cst_49 [1] : vector<2x16xf32> to vector<2xf32>
    %132 = vector.shape_cast %131 : vector<2xf32> to vector<2x1xf32>
    %cst_50 = arith.constant dense<0.000000e+00> : vector<2xf32>
    %133 = vector.multi_reduction <add>, %98, %cst_50 [1] : vector<2x16xf32> to vector<2xf32>
    %134 = vector.shape_cast %133 : vector<2xf32> to vector<2x1xf32>
    %cst_51 = arith.constant dense<0.000000e+00> : vector<2xf32>
    %135 = vector.multi_reduction <add>, %99, %cst_51 [1] : vector<2x16xf32> to vector<2xf32>
    %136 = vector.shape_cast %135 : vector<2xf32> to vector<2x1xf32>
    %cst_52 = arith.constant dense<0.000000e+00> : vector<2xf32>
    %137 = vector.multi_reduction <add>, %100, %cst_52 [1] : vector<2x16xf32> to vector<2xf32>
    %138 = vector.shape_cast %137 : vector<2xf32> to vector<2x1xf32>
    %cst_53 = arith.constant dense<0.000000e+00> : vector<2xf32>
    %139 = vector.multi_reduction <add>, %101, %cst_53 [1] : vector<2x16xf32> to vector<2xf32>
    %140 = vector.shape_cast %139 : vector<2xf32> to vector<2x1xf32>
    %cst_54 = arith.constant dense<0.000000e+00> : vector<2xf32>
    %141 = vector.multi_reduction <add>, %102, %cst_54 [1] : vector<2x16xf32> to vector<2xf32>
    %142 = vector.shape_cast %141 : vector<2xf32> to vector<2x1xf32>
    %cst_55 = arith.constant dense<0.000000e+00> : vector<2xf32>
    %143 = vector.multi_reduction <add>, %103, %cst_55 [1] : vector<2x16xf32> to vector<2xf32>
    %144 = vector.shape_cast %143 : vector<2xf32> to vector<2x1xf32>
    %cst_56 = arith.constant dense<0.000000e+00> : vector<2xf32>
    %145 = vector.multi_reduction <add>, %104, %cst_56 [1] : vector<2x16xf32> to vector<2xf32>
    %146 = vector.shape_cast %145 : vector<2xf32> to vector<2x1xf32>
    %cst_57 = arith.constant dense<0.000000e+00> : vector<2xf32>
    %147 = vector.multi_reduction <add>, %105, %cst_57 [1] : vector<2x16xf32> to vector<2xf32>
    %148 = vector.shape_cast %147 : vector<2xf32> to vector<2x1xf32>
    %cst_58 = arith.constant dense<0.000000e+00> : vector<2xf32>
    %149 = vector.multi_reduction <add>, %106, %cst_58 [1] : vector<2x16xf32> to vector<2xf32>
    %150 = vector.shape_cast %149 : vector<2xf32> to vector<2x1xf32>
    %cst_59 = arith.constant dense<0.000000e+00> : vector<2xf32>
    %151 = vector.multi_reduction <add>, %107, %cst_59 [1] : vector<2x16xf32> to vector<2xf32>
    %152 = vector.shape_cast %151 : vector<2xf32> to vector<2x1xf32>
    %cst_60 = arith.constant dense<0.000000e+00> : vector<2xf32>
    %153 = vector.multi_reduction <add>, %108, %cst_60 [1] : vector<2x16xf32> to vector<2xf32>
    %154 = vector.shape_cast %153 : vector<2xf32> to vector<2x1xf32>
    %cst_61 = arith.constant dense<0.000000e+00> : vector<2xf32>
    %155 = vector.multi_reduction <add>, %109, %cst_61 [1] : vector<2x16xf32> to vector<2xf32>
    %156 = vector.shape_cast %155 : vector<2xf32> to vector<2x1xf32>
    %cst_62 = arith.constant dense<0.000000e+00> : vector<2xf32>
    %157 = vector.multi_reduction <add>, %110, %cst_62 [1] : vector<2x16xf32> to vector<2xf32>
    %158 = vector.shape_cast %157 : vector<2xf32> to vector<2x1xf32>
    %cst_63 = arith.constant dense<0.000000e+00> : vector<2xf32>
    %159 = vector.multi_reduction <add>, %111, %cst_63 [1] : vector<2x16xf32> to vector<2xf32>
    %160 = vector.shape_cast %159 : vector<2xf32> to vector<2x1xf32>
    %161 = tpu.concatenate %130, %132, %134, %136, %138, %140, %142, %144, %146, %148, %150, %152, %154, %156, %158, %160 in 1 : vector<2x1xf32>, vector<2x1xf32>, vector<2x1xf32>, vector<2x1xf32>, vector<2x1xf32>, vector<2x1xf32>, vector<2x1xf32>, vector<2x1xf32>, vector<2x1xf32>, vector<2x1xf32>, vector<2x1xf32>, vector<2x1xf32>, vector<2x1xf32>, vector<2x1xf32>, vector<2x1xf32>, vector<2x1xf32> -> vector<2x16xf32>
    %cst_64 = arith.constant 6.250000e-02 : f32
    %162 = vector.broadcast %cst_64 : f32 to vector<2x16xf32>
    %163 = arith.mulf %161, %162 : vector<2x16xf32>
    %164 = vector.extract_strided_slice %95 {offsets = [0, 0], sizes = [2, 16], strides = [1, 1]} : vector<2x256xf32> to vector<2x16xf32>
    %165 = vector.extract_strided_slice %95 {offsets = [0, 16], sizes = [2, 16], strides = [1, 1]} : vector<2x256xf32> to vector<2x16xf32>
    %166 = vector.extract_strided_slice %95 {offsets = [0, 32], sizes = [2, 16], strides = [1, 1]} : vector<2x256xf32> to vector<2x16xf32>
    %167 = vector.extract_strided_slice %95 {offsets = [0, 48], sizes = [2, 16], strides = [1, 1]} : vector<2x256xf32> to vector<2x16xf32>
    %168 = vector.extract_strided_slice %95 {offsets = [0, 64], sizes = [2, 16], strides = [1, 1]} : vector<2x256xf32> to vector<2x16xf32>
    %169 = vector.extract_strided_slice %95 {offsets = [0, 80], sizes = [2, 16], strides = [1, 1]} : vector<2x256xf32> to vector<2x16xf32>
    %170 = vector.extract_strided_slice %95 {offsets = [0, 96], sizes = [2, 16], strides = [1, 1]} : vector<2x256xf32> to vector<2x16xf32>
    %171 = vector.extract_strided_slice %95 {offsets = [0, 112], sizes = [2, 16], strides = [1, 1]} : vector<2x256xf32> to vector<2x16xf32>
    %172 = vector.extract_strided_slice %95 {offsets = [0, 128], sizes = [2, 16], strides = [1, 1]} : vector<2x256xf32> to vector<2x16xf32>
    %173 = vector.extract_strided_slice %95 {offsets = [0, 144], sizes = [2, 16], strides = [1, 1]} : vector<2x256xf32> to vector<2x16xf32>
    %174 = vector.extract_strided_slice %95 {offsets = [0, 160], sizes = [2, 16], strides = [1, 1]} : vector<2x256xf32> to vector<2x16xf32>
    %175 = vector.extract_strided_slice %95 {offsets = [0, 176], sizes = [2, 16], strides = [1, 1]} : vector<2x256xf32> to vector<2x16xf32>
    %176 = vector.extract_strided_slice %95 {offsets = [0, 192], sizes = [2, 16], strides = [1, 1]} : vector<2x256xf32> to vector<2x16xf32>
    %177 = vector.extract_strided_slice %95 {offsets = [0, 208], sizes = [2, 16], strides = [1, 1]} : vector<2x256xf32> to vector<2x16xf32>
    %178 = vector.extract_strided_slice %95 {offsets = [0, 224], sizes = [2, 16], strides = [1, 1]} : vector<2x256xf32> to vector<2x16xf32>
    %179 = vector.extract_strided_slice %95 {offsets = [0, 240], sizes = [2, 16], strides = [1, 1]} : vector<2x256xf32> to vector<2x16xf32>
    %180 = arith.addf %164, %165 : vector<2x16xf32>
    %181 = arith.addf %180, %166 : vector<2x16xf32>
    %182 = arith.addf %181, %167 : vector<2x16xf32>
    %183 = arith.addf %182, %168 : vector<2x16xf32>
    %184 = arith.addf %183, %169 : vector<2x16xf32>
    %185 = arith.addf %184, %170 : vector<2x16xf32>
    %186 = arith.addf %185, %171 : vector<2x16xf32>
    %187 = arith.addf %186, %172 : vector<2x16xf32>
    %188 = arith.addf %187, %173 : vector<2x16xf32>
    %189 = arith.addf %188, %174 : vector<2x16xf32>
    %190 = arith.addf %189, %175 : vector<2x16xf32>
    %191 = arith.addf %190, %176 : vector<2x16xf32>
    %192 = arith.addf %191, %177 : vector<2x16xf32>
    %193 = arith.addf %192, %178 : vector<2x16xf32>
    %194 = arith.addf %193, %179 : vector<2x16xf32>
    %cst_65 = arith.constant 6.250000e-02 : f32
    %195 = vector.broadcast %cst_65 : f32 to vector<2x16xf32>
    %196 = arith.mulf %194, %195 : vector<2x16xf32>
    %cst_66 = arith.constant dense<0.000000e+00> : vector<2xf32>
    %197 = vector.multi_reduction <add>, %164, %cst_66 [1] : vector<2x16xf32> to vector<2xf32>
    %198 = vector.shape_cast %197 : vector<2xf32> to vector<2x1xf32>
    %cst_67 = arith.constant dense<0.000000e+00> : vector<2xf32>
    %199 = vector.multi_reduction <add>, %165, %cst_67 [1] : vector<2x16xf32> to vector<2xf32>
    %200 = vector.shape_cast %199 : vector<2xf32> to vector<2x1xf32>
    %cst_68 = arith.constant dense<0.000000e+00> : vector<2xf32>
    %201 = vector.multi_reduction <add>, %166, %cst_68 [1] : vector<2x16xf32> to vector<2xf32>
    %202 = vector.shape_cast %201 : vector<2xf32> to vector<2x1xf32>
    %cst_69 = arith.constant dense<0.000000e+00> : vector<2xf32>
    %203 = vector.multi_reduction <add>, %167, %cst_69 [1] : vector<2x16xf32> to vector<2xf32>
    %204 = vector.shape_cast %203 : vector<2xf32> to vector<2x1xf32>
    %cst_70 = arith.constant dense<0.000000e+00> : vector<2xf32>
    %205 = vector.multi_reduction <add>, %168, %cst_70 [1] : vector<2x16xf32> to vector<2xf32>
    %206 = vector.shape_cast %205 : vector<2xf32> to vector<2x1xf32>
    %cst_71 = arith.constant dense<0.000000e+00> : vector<2xf32>
    %207 = vector.multi_reduction <add>, %169, %cst_71 [1] : vector<2x16xf32> to vector<2xf32>
    %208 = vector.shape_cast %207 : vector<2xf32> to vector<2x1xf32>
    %cst_72 = arith.constant dense<0.000000e+00> : vector<2xf32>
    %209 = vector.multi_reduction <add>, %170, %cst_72 [1] : vector<2x16xf32> to vector<2xf32>
    %210 = vector.shape_cast %209 : vector<2xf32> to vector<2x1xf32>
    %cst_73 = arith.constant dense<0.000000e+00> : vector<2xf32>
    %211 = vector.multi_reduction <add>, %171, %cst_73 [1] : vector<2x16xf32> to vector<2xf32>
    %212 = vector.shape_cast %211 : vector<2xf32> to vector<2x1xf32>
    %cst_74 = arith.constant dense<0.000000e+00> : vector<2xf32>
    %213 = vector.multi_reduction <add>, %172, %cst_74 [1] : vector<2x16xf32> to vector<2xf32>
    %214 = vector.shape_cast %213 : vector<2xf32> to vector<2x1xf32>
    %cst_75 = arith.constant dense<0.000000e+00> : vector<2xf32>
    %215 = vector.multi_reduction <add>, %173, %cst_75 [1] : vector<2x16xf32> to vector<2xf32>
    %216 = vector.shape_cast %215 : vector<2xf32> to vector<2x1xf32>
    %cst_76 = arith.constant dense<0.000000e+00> : vector<2xf32>
    %217 = vector.multi_reduction <add>, %174, %cst_76 [1] : vector<2x16xf32> to vector<2xf32>
    %218 = vector.shape_cast %217 : vector<2xf32> to vector<2x1xf32>
    %cst_77 = arith.constant dense<0.000000e+00> : vector<2xf32>
    %219 = vector.multi_reduction <add>, %175, %cst_77 [1] : vector<2x16xf32> to vector<2xf32>
    %220 = vector.shape_cast %219 : vector<2xf32> to vector<2x1xf32>
    %cst_78 = arith.constant dense<0.000000e+00> : vector<2xf32>
    %221 = vector.multi_reduction <add>, %176, %cst_78 [1] : vector<2x16xf32> to vector<2xf32>
    %222 = vector.shape_cast %221 : vector<2xf32> to vector<2x1xf32>
    %cst_79 = arith.constant dense<0.000000e+00> : vector<2xf32>
    %223 = vector.multi_reduction <add>, %177, %cst_79 [1] : vector<2x16xf32> to vector<2xf32>
    %224 = vector.shape_cast %223 : vector<2xf32> to vector<2x1xf32>
    %cst_80 = arith.constant dense<0.000000e+00> : vector<2xf32>
    %225 = vector.multi_reduction <add>, %178, %cst_80 [1] : vector<2x16xf32> to vector<2xf32>
    %226 = vector.shape_cast %225 : vector<2xf32> to vector<2x1xf32>
    %cst_81 = arith.constant dense<0.000000e+00> : vector<2xf32>
    %227 = vector.multi_reduction <add>, %179, %cst_81 [1] : vector<2x16xf32> to vector<2xf32>
    %228 = vector.shape_cast %227 : vector<2xf32> to vector<2x1xf32>
    %229 = tpu.concatenate %198, %200, %202, %204, %206, %208, %210, %212, %214, %216, %218, %220, %222, %224, %226, %228 in 1 : vector<2x1xf32>, vector<2x1xf32>, vector<2x1xf32>, vector<2x1xf32>, vector<2x1xf32>, vector<2x1xf32>, vector<2x1xf32>, vector<2x1xf32>, vector<2x1xf32>, vector<2x1xf32>, vector<2x1xf32>, vector<2x1xf32>, vector<2x1xf32>, vector<2x1xf32>, vector<2x1xf32>, vector<2x1xf32> -> vector<2x16xf32>
    %cst_82 = arith.constant 6.250000e-02 : f32
    %230 = vector.broadcast %cst_82 : f32 to vector<2x16xf32>
    %231 = arith.mulf %229, %230 : vector<2x16xf32>
    %cst_83 = arith.constant 0.000000e+00 : f32
    %232 = vector.broadcast %cst_83 : f32 to vector<2x1xf32>
    %233 = tpu.concatenate %232, %128, %232 in 1 : vector<2x1xf32>, vector<2x16xf32>, vector<2x1xf32> -> vector<2x18xf32>
    %234 = tpu.concatenate %232, %196, %232 in 1 : vector<2x1xf32>, vector<2x16xf32>, vector<2x1xf32> -> vector<2x18xf32>
    %cst_84 = arith.constant 0.000000e+00 : f32
    %235 = vector.broadcast %cst_84 : f32 to vector<2x16xf32>
    %c0_85 = arith.constant 0 : index
    %c0_86 = arith.constant 0 : index
    %236 = memref.load %arg2[%c0_85, %c0_86] : memref<2x6xf32, #tpu.memory_space<smem>>
    %237 = vector.extract_strided_slice %233 {offsets = [0, 0], sizes = [2, 16], strides = [1, 1]} : vector<2x18xf32> to vector<2x16xf32>
    %238 = vector.broadcast %236 : f32 to vector<2x16xf32>
    %239 = arith.mulf %238, %237 : vector<2x16xf32>
    %240 = arith.addf %235, %239 : vector<2x16xf32>
    %c0_87 = arith.constant 0 : index
    %c1_88 = arith.constant 1 : index
    %241 = memref.load %arg2[%c0_87, %c1_88] : memref<2x6xf32, #tpu.memory_space<smem>>
    %242 = vector.extract_strided_slice %233 {offsets = [0, 1], sizes = [2, 16], strides = [1, 1]} : vector<2x18xf32> to vector<2x16xf32>
    %243 = vector.broadcast %241 : f32 to vector<2x16xf32>
    %244 = arith.mulf %243, %242 : vector<2x16xf32>
    %245 = arith.addf %240, %244 : vector<2x16xf32>
    %c0_89 = arith.constant 0 : index
    %c2_90 = arith.constant 2 : index
    %246 = memref.load %arg2[%c0_89, %c2_90] : memref<2x6xf32, #tpu.memory_space<smem>>
    %247 = vector.extract_strided_slice %233 {offsets = [0, 2], sizes = [2, 16], strides = [1, 1]} : vector<2x18xf32> to vector<2x16xf32>
    %248 = vector.broadcast %246 : f32 to vector<2x16xf32>
    %249 = arith.mulf %248, %247 : vector<2x16xf32>
    %250 = arith.addf %245, %249 : vector<2x16xf32>
    %c0_91 = arith.constant 0 : index
    %c3_92 = arith.constant 3 : index
    %251 = memref.load %arg2[%c0_91, %c3_92] : memref<2x6xf32, #tpu.memory_space<smem>>
    %252 = vector.extract_strided_slice %234 {offsets = [0, 0], sizes = [2, 16], strides = [1, 1]} : vector<2x18xf32> to vector<2x16xf32>
    %253 = vector.broadcast %251 : f32 to vector<2x16xf32>
    %254 = arith.mulf %253, %252 : vector<2x16xf32>
    %255 = arith.addf %250, %254 : vector<2x16xf32>
    %c0_93 = arith.constant 0 : index
    %c4 = arith.constant 4 : index
    %256 = memref.load %arg2[%c0_93, %c4] : memref<2x6xf32, #tpu.memory_space<smem>>
    %257 = vector.extract_strided_slice %234 {offsets = [0, 1], sizes = [2, 16], strides = [1, 1]} : vector<2x18xf32> to vector<2x16xf32>
    %258 = vector.broadcast %256 : f32 to vector<2x16xf32>
    %259 = arith.mulf %258, %257 : vector<2x16xf32>
    %260 = arith.addf %255, %259 : vector<2x16xf32>
    %c0_94 = arith.constant 0 : index
    %c5 = arith.constant 5 : index
    %261 = memref.load %arg2[%c0_94, %c5] : memref<2x6xf32, #tpu.memory_space<smem>>
    %262 = vector.extract_strided_slice %234 {offsets = [0, 2], sizes = [2, 16], strides = [1, 1]} : vector<2x18xf32> to vector<2x16xf32>
    %263 = vector.broadcast %261 : f32 to vector<2x16xf32>
    %264 = arith.mulf %263, %262 : vector<2x16xf32>
    %265 = arith.addf %260, %264 : vector<2x16xf32>
    %c2_95 = arith.constant 2 : index
    %c0_96 = arith.constant 0 : index
    %266 = memref.load %arg5[%c2_95, %c0_96] : memref<6x2xf32, #tpu.memory_space<smem>>
    %c3_97 = arith.constant 3 : index
    %c0_98 = arith.constant 0 : index
    %267 = memref.load %arg5[%c3_97, %c0_98] : memref<6x2xf32, #tpu.memory_space<smem>>
    %268 = vector.shape_cast %265 : vector<2x16xf32> to vector<1x2x16xf32>
    %cst_99 = arith.constant dense<0.000000e+00> : vector<1xf32>
    %269 = vector.multi_reduction <add>, %268, %cst_99 [1, 2] : vector<1x2x16xf32> to vector<1xf32>
    %270 = vector.shape_cast %269 : vector<1xf32> to vector<1x1x1xf32>
    %271 = vector.extract %270[0, 0, 0] : f32 from vector<1x1x1xf32>
    %272 = arith.mulf %265, %265 : vector<2x16xf32>
    %273 = vector.shape_cast %272 : vector<2x16xf32> to vector<1x2x16xf32>
    %cst_100 = arith.constant dense<0.000000e+00> : vector<1xf32>
    %274 = vector.multi_reduction <add>, %273, %cst_100 [1, 2] : vector<1x2x16xf32> to vector<1xf32>
    %275 = vector.shape_cast %274 : vector<1xf32> to vector<1x1x1xf32>
    %276 = vector.extract %275[0, 0, 0] : f32 from vector<1x1x1xf32>
    %cst_101 = arith.constant 3.125000e-02 : f32
    %277 = arith.mulf %271, %cst_101 : f32
    %cst_102 = arith.constant 3.125000e-02 : f32
    %278 = arith.mulf %276, %cst_102 : f32
    %279 = arith.mulf %277, %277 : f32
    %280 = arith.subf %278, %279 : f32
    %cst_103 = arith.constant 0.000000e+00 : f32
    %281 = arith.maximumf %280, %cst_103 : f32
    %cst_104 = arith.constant 9.99999974E-6 : f32
    %282 = arith.addf %281, %cst_104 : f32
    %283 = math.rsqrt %282 : f32
    %284 = arith.mulf %283, %266 : f32
    %285 = vector.broadcast %284 : f32 to vector<2x16xf32>
    %286 = arith.mulf %265, %285 : vector<2x16xf32>
    %287 = arith.mulf %277, %284 : f32
    %288 = arith.subf %267, %287 : f32
    %289 = vector.broadcast %288 : f32 to vector<2x16xf32>
    %290 = arith.addf %286, %289 : vector<2x16xf32>
    %cst_105 = arith.constant 0.000000e+00 : f32
    %291 = vector.broadcast %cst_105 : f32 to vector<2x16xf32>
    %c1_106 = arith.constant 1 : index
    %c0_107 = arith.constant 0 : index
    %292 = memref.load %arg2[%c1_106, %c0_107] : memref<2x6xf32, #tpu.memory_space<smem>>
    %293 = vector.extract_strided_slice %233 {offsets = [0, 0], sizes = [2, 16], strides = [1, 1]} : vector<2x18xf32> to vector<2x16xf32>
    %294 = vector.broadcast %292 : f32 to vector<2x16xf32>
    %295 = arith.mulf %294, %293 : vector<2x16xf32>
    %296 = arith.addf %291, %295 : vector<2x16xf32>
    %c1_108 = arith.constant 1 : index
    %c1_109 = arith.constant 1 : index
    %297 = memref.load %arg2[%c1_108, %c1_109] : memref<2x6xf32, #tpu.memory_space<smem>>
    %298 = vector.extract_strided_slice %233 {offsets = [0, 1], sizes = [2, 16], strides = [1, 1]} : vector<2x18xf32> to vector<2x16xf32>
    %299 = vector.broadcast %297 : f32 to vector<2x16xf32>
    %300 = arith.mulf %299, %298 : vector<2x16xf32>
    %301 = arith.addf %296, %300 : vector<2x16xf32>
    %c1_110 = arith.constant 1 : index
    %c2_111 = arith.constant 2 : index
    %302 = memref.load %arg2[%c1_110, %c2_111] : memref<2x6xf32, #tpu.memory_space<smem>>
    %303 = vector.extract_strided_slice %233 {offsets = [0, 2], sizes = [2, 16], strides = [1, 1]} : vector<2x18xf32> to vector<2x16xf32>
    %304 = vector.broadcast %302 : f32 to vector<2x16xf32>
    %305 = arith.mulf %304, %303 : vector<2x16xf32>
    %306 = arith.addf %301, %305 : vector<2x16xf32>
    %c1_112 = arith.constant 1 : index
    %c3_113 = arith.constant 3 : index
    %307 = memref.load %arg2[%c1_112, %c3_113] : memref<2x6xf32, #tpu.memory_space<smem>>
    %308 = vector.extract_strided_slice %234 {offsets = [0, 0], sizes = [2, 16], strides = [1, 1]} : vector<2x18xf32> to vector<2x16xf32>
    %309 = vector.broadcast %307 : f32 to vector<2x16xf32>
    %310 = arith.mulf %309, %308 : vector<2x16xf32>
    %311 = arith.addf %306, %310 : vector<2x16xf32>
    %c1_114 = arith.constant 1 : index
    %c4_115 = arith.constant 4 : index
    %312 = memref.load %arg2[%c1_114, %c4_115] : memref<2x6xf32, #tpu.memory_space<smem>>
    %313 = vector.extract_strided_slice %234 {offsets = [0, 1], sizes = [2, 16], strides = [1, 1]} : vector<2x18xf32> to vector<2x16xf32>
    %314 = vector.broadcast %312 : f32 to vector<2x16xf32>
    %315 = arith.mulf %314, %313 : vector<2x16xf32>
    %316 = arith.addf %311, %315 : vector<2x16xf32>
    %c1_116 = arith.constant 1 : index
    %c5_117 = arith.constant 5 : index
    %317 = memref.load %arg2[%c1_116, %c5_117] : memref<2x6xf32, #tpu.memory_space<smem>>
    %318 = vector.extract_strided_slice %234 {offsets = [0, 2], sizes = [2, 16], strides = [1, 1]} : vector<2x18xf32> to vector<2x16xf32>
    %319 = vector.broadcast %317 : f32 to vector<2x16xf32>
    %320 = arith.mulf %319, %318 : vector<2x16xf32>
    %321 = arith.addf %316, %320 : vector<2x16xf32>
    %c2_118 = arith.constant 2 : index
    %c1_119 = arith.constant 1 : index
    %322 = memref.load %arg5[%c2_118, %c1_119] : memref<6x2xf32, #tpu.memory_space<smem>>
    %c3_120 = arith.constant 3 : index
    %c1_121 = arith.constant 1 : index
    %323 = memref.load %arg5[%c3_120, %c1_121] : memref<6x2xf32, #tpu.memory_space<smem>>
    %324 = vector.shape_cast %321 : vector<2x16xf32> to vector<1x2x16xf32>
    %cst_122 = arith.constant dense<0.000000e+00> : vector<1xf32>
    %325 = vector.multi_reduction <add>, %324, %cst_122 [1, 2] : vector<1x2x16xf32> to vector<1xf32>
    %326 = vector.shape_cast %325 : vector<1xf32> to vector<1x1x1xf32>
    %327 = vector.extract %326[0, 0, 0] : f32 from vector<1x1x1xf32>
    %328 = arith.mulf %321, %321 : vector<2x16xf32>
    %329 = vector.shape_cast %328 : vector<2x16xf32> to vector<1x2x16xf32>
    %cst_123 = arith.constant dense<0.000000e+00> : vector<1xf32>
    %330 = vector.multi_reduction <add>, %329, %cst_123 [1, 2] : vector<1x2x16xf32> to vector<1xf32>
    %331 = vector.shape_cast %330 : vector<1xf32> to vector<1x1x1xf32>
    %332 = vector.extract %331[0, 0, 0] : f32 from vector<1x1x1xf32>
    %cst_124 = arith.constant 3.125000e-02 : f32
    %333 = arith.mulf %327, %cst_124 : f32
    %cst_125 = arith.constant 3.125000e-02 : f32
    %334 = arith.mulf %332, %cst_125 : f32
    %335 = arith.mulf %333, %333 : f32
    %336 = arith.subf %334, %335 : f32
    %cst_126 = arith.constant 0.000000e+00 : f32
    %337 = arith.maximumf %336, %cst_126 : f32
    %cst_127 = arith.constant 9.99999974E-6 : f32
    %338 = arith.addf %337, %cst_127 : f32
    %339 = math.rsqrt %338 : f32
    %340 = arith.mulf %339, %322 : f32
    %341 = vector.broadcast %340 : f32 to vector<2x16xf32>
    %342 = arith.mulf %321, %341 : vector<2x16xf32>
    %343 = arith.mulf %333, %340 : f32
    %344 = arith.subf %323, %343 : f32
    %345 = vector.broadcast %344 : f32 to vector<2x16xf32>
    %346 = arith.addf %342, %345 : vector<2x16xf32>
    %347 = tpu.concatenate %232, %163, %232 in 1 : vector<2x1xf32>, vector<2x16xf32>, vector<2x1xf32> -> vector<2x18xf32>
    %348 = tpu.concatenate %232, %231, %232 in 1 : vector<2x1xf32>, vector<2x16xf32>, vector<2x1xf32> -> vector<2x18xf32>
    %cst_128 = arith.constant 0.000000e+00 : f32
    %349 = vector.broadcast %cst_128 : f32 to vector<2x16xf32>
    %c0_129 = arith.constant 0 : index
    %c0_130 = arith.constant 0 : index
    %350 = memref.load %arg3[%c0_129, %c0_130] : memref<2x6xf32, #tpu.memory_space<smem>>
    %351 = vector.extract_strided_slice %347 {offsets = [0, 0], sizes = [2, 16], strides = [1, 1]} : vector<2x18xf32> to vector<2x16xf32>
    %352 = vector.broadcast %350 : f32 to vector<2x16xf32>
    %353 = arith.mulf %352, %351 : vector<2x16xf32>
    %354 = arith.addf %349, %353 : vector<2x16xf32>
    %c0_131 = arith.constant 0 : index
    %c1_132 = arith.constant 1 : index
    %355 = memref.load %arg3[%c0_131, %c1_132] : memref<2x6xf32, #tpu.memory_space<smem>>
    %356 = vector.extract_strided_slice %347 {offsets = [0, 1], sizes = [2, 16], strides = [1, 1]} : vector<2x18xf32> to vector<2x16xf32>
    %357 = vector.broadcast %355 : f32 to vector<2x16xf32>
    %358 = arith.mulf %357, %356 : vector<2x16xf32>
    %359 = arith.addf %354, %358 : vector<2x16xf32>
    %c0_133 = arith.constant 0 : index
    %c2_134 = arith.constant 2 : index
    %360 = memref.load %arg3[%c0_133, %c2_134] : memref<2x6xf32, #tpu.memory_space<smem>>
    %361 = vector.extract_strided_slice %347 {offsets = [0, 2], sizes = [2, 16], strides = [1, 1]} : vector<2x18xf32> to vector<2x16xf32>
    %362 = vector.broadcast %360 : f32 to vector<2x16xf32>
    %363 = arith.mulf %362, %361 : vector<2x16xf32>
    %364 = arith.addf %359, %363 : vector<2x16xf32>
    %c0_135 = arith.constant 0 : index
    %c3_136 = arith.constant 3 : index
    %365 = memref.load %arg3[%c0_135, %c3_136] : memref<2x6xf32, #tpu.memory_space<smem>>
    %366 = vector.extract_strided_slice %348 {offsets = [0, 0], sizes = [2, 16], strides = [1, 1]} : vector<2x18xf32> to vector<2x16xf32>
    %367 = vector.broadcast %365 : f32 to vector<2x16xf32>
    %368 = arith.mulf %367, %366 : vector<2x16xf32>
    %369 = arith.addf %364, %368 : vector<2x16xf32>
    %c0_137 = arith.constant 0 : index
    %c4_138 = arith.constant 4 : index
    %370 = memref.load %arg3[%c0_137, %c4_138] : memref<2x6xf32, #tpu.memory_space<smem>>
    %371 = vector.extract_strided_slice %348 {offsets = [0, 1], sizes = [2, 16], strides = [1, 1]} : vector<2x18xf32> to vector<2x16xf32>
    %372 = vector.broadcast %370 : f32 to vector<2x16xf32>
    %373 = arith.mulf %372, %371 : vector<2x16xf32>
    %374 = arith.addf %369, %373 : vector<2x16xf32>
    %c0_139 = arith.constant 0 : index
    %c5_140 = arith.constant 5 : index
    %375 = memref.load %arg3[%c0_139, %c5_140] : memref<2x6xf32, #tpu.memory_space<smem>>
    %376 = vector.extract_strided_slice %348 {offsets = [0, 2], sizes = [2, 16], strides = [1, 1]} : vector<2x18xf32> to vector<2x16xf32>
    %377 = vector.broadcast %375 : f32 to vector<2x16xf32>
    %378 = arith.mulf %377, %376 : vector<2x16xf32>
    %379 = arith.addf %374, %378 : vector<2x16xf32>
    %c4_141 = arith.constant 4 : index
    %c0_142 = arith.constant 0 : index
    %380 = memref.load %arg5[%c4_141, %c0_142] : memref<6x2xf32, #tpu.memory_space<smem>>
    %c5_143 = arith.constant 5 : index
    %c0_144 = arith.constant 0 : index
    %381 = memref.load %arg5[%c5_143, %c0_144] : memref<6x2xf32, #tpu.memory_space<smem>>
    %382 = vector.shape_cast %379 : vector<2x16xf32> to vector<1x2x16xf32>
    %cst_145 = arith.constant dense<0.000000e+00> : vector<1xf32>
    %383 = vector.multi_reduction <add>, %382, %cst_145 [1, 2] : vector<1x2x16xf32> to vector<1xf32>
    %384 = vector.shape_cast %383 : vector<1xf32> to vector<1x1x1xf32>
    %385 = vector.extract %384[0, 0, 0] : f32 from vector<1x1x1xf32>
    %386 = arith.mulf %379, %379 : vector<2x16xf32>
    %387 = vector.shape_cast %386 : vector<2x16xf32> to vector<1x2x16xf32>
    %cst_146 = arith.constant dense<0.000000e+00> : vector<1xf32>
    %388 = vector.multi_reduction <add>, %387, %cst_146 [1, 2] : vector<1x2x16xf32> to vector<1xf32>
    %389 = vector.shape_cast %388 : vector<1xf32> to vector<1x1x1xf32>
    %390 = vector.extract %389[0, 0, 0] : f32 from vector<1x1x1xf32>
    %cst_147 = arith.constant 3.125000e-02 : f32
    %391 = arith.mulf %385, %cst_147 : f32
    %cst_148 = arith.constant 3.125000e-02 : f32
    %392 = arith.mulf %390, %cst_148 : f32
    %393 = arith.mulf %391, %391 : f32
    %394 = arith.subf %392, %393 : f32
    %cst_149 = arith.constant 0.000000e+00 : f32
    %395 = arith.maximumf %394, %cst_149 : f32
    %cst_150 = arith.constant 9.99999974E-6 : f32
    %396 = arith.addf %395, %cst_150 : f32
    %397 = math.rsqrt %396 : f32
    %398 = arith.mulf %397, %380 : f32
    %399 = vector.broadcast %398 : f32 to vector<2x16xf32>
    %400 = arith.mulf %379, %399 : vector<2x16xf32>
    %401 = arith.mulf %391, %398 : f32
    %402 = arith.subf %381, %401 : f32
    %403 = vector.broadcast %402 : f32 to vector<2x16xf32>
    %404 = arith.addf %400, %403 : vector<2x16xf32>
    %cst_151 = arith.constant 0.000000e+00 : f32
    %405 = vector.broadcast %cst_151 : f32 to vector<2x16xf32>
    %c1_152 = arith.constant 1 : index
    %c0_153 = arith.constant 0 : index
    %406 = memref.load %arg3[%c1_152, %c0_153] : memref<2x6xf32, #tpu.memory_space<smem>>
    %407 = vector.extract_strided_slice %347 {offsets = [0, 0], sizes = [2, 16], strides = [1, 1]} : vector<2x18xf32> to vector<2x16xf32>
    %408 = vector.broadcast %406 : f32 to vector<2x16xf32>
    %409 = arith.mulf %408, %407 : vector<2x16xf32>
    %410 = arith.addf %405, %409 : vector<2x16xf32>
    %c1_154 = arith.constant 1 : index
    %c1_155 = arith.constant 1 : index
    %411 = memref.load %arg3[%c1_154, %c1_155] : memref<2x6xf32, #tpu.memory_space<smem>>
    %412 = vector.extract_strided_slice %347 {offsets = [0, 1], sizes = [2, 16], strides = [1, 1]} : vector<2x18xf32> to vector<2x16xf32>
    %413 = vector.broadcast %411 : f32 to vector<2x16xf32>
    %414 = arith.mulf %413, %412 : vector<2x16xf32>
    %415 = arith.addf %410, %414 : vector<2x16xf32>
    %c1_156 = arith.constant 1 : index
    %c2_157 = arith.constant 2 : index
    %416 = memref.load %arg3[%c1_156, %c2_157] : memref<2x6xf32, #tpu.memory_space<smem>>
    %417 = vector.extract_strided_slice %347 {offsets = [0, 2], sizes = [2, 16], strides = [1, 1]} : vector<2x18xf32> to vector<2x16xf32>
    %418 = vector.broadcast %416 : f32 to vector<2x16xf32>
    %419 = arith.mulf %418, %417 : vector<2x16xf32>
    %420 = arith.addf %415, %419 : vector<2x16xf32>
    %c1_158 = arith.constant 1 : index
    %c3_159 = arith.constant 3 : index
    %421 = memref.load %arg3[%c1_158, %c3_159] : memref<2x6xf32, #tpu.memory_space<smem>>
    %422 = vector.extract_strided_slice %348 {offsets = [0, 0], sizes = [2, 16], strides = [1, 1]} : vector<2x18xf32> to vector<2x16xf32>
    %423 = vector.broadcast %421 : f32 to vector<2x16xf32>
    %424 = arith.mulf %423, %422 : vector<2x16xf32>
    %425 = arith.addf %420, %424 : vector<2x16xf32>
    %c1_160 = arith.constant 1 : index
    %c4_161 = arith.constant 4 : index
    %426 = memref.load %arg3[%c1_160, %c4_161] : memref<2x6xf32, #tpu.memory_space<smem>>
    %427 = vector.extract_strided_slice %348 {offsets = [0, 1], sizes = [2, 16], strides = [1, 1]} : vector<2x18xf32> to vector<2x16xf32>
    %428 = vector.broadcast %426 : f32 to vector<2x16xf32>
    %429 = arith.mulf %428, %427 : vector<2x16xf32>
    %430 = arith.addf %425, %429 : vector<2x16xf32>
    %c1_162 = arith.constant 1 : index
    %c5_163 = arith.constant 5 : index
    %431 = memref.load %arg3[%c1_162, %c5_163] : memref<2x6xf32, #tpu.memory_space<smem>>
    %432 = vector.extract_strided_slice %348 {offsets = [0, 2], sizes = [2, 16], strides = [1, 1]} : vector<2x18xf32> to vector<2x16xf32>
    %433 = vector.broadcast %431 : f32 to vector<2x16xf32>
    %434 = arith.mulf %433, %432 : vector<2x16xf32>
    %435 = arith.addf %430, %434 : vector<2x16xf32>
    %c4_164 = arith.constant 4 : index
    %c1_165 = arith.constant 1 : index
    %436 = memref.load %arg5[%c4_164, %c1_165] : memref<6x2xf32, #tpu.memory_space<smem>>
    %c5_166 = arith.constant 5 : index
    %c1_167 = arith.constant 1 : index
    %437 = memref.load %arg5[%c5_166, %c1_167] : memref<6x2xf32, #tpu.memory_space<smem>>
    %438 = vector.shape_cast %435 : vector<2x16xf32> to vector<1x2x16xf32>
    %cst_168 = arith.constant dense<0.000000e+00> : vector<1xf32>
    %439 = vector.multi_reduction <add>, %438, %cst_168 [1, 2] : vector<1x2x16xf32> to vector<1xf32>
    %440 = vector.shape_cast %439 : vector<1xf32> to vector<1x1x1xf32>
    %441 = vector.extract %440[0, 0, 0] : f32 from vector<1x1x1xf32>
    %442 = arith.mulf %435, %435 : vector<2x16xf32>
    %443 = vector.shape_cast %442 : vector<2x16xf32> to vector<1x2x16xf32>
    %cst_169 = arith.constant dense<0.000000e+00> : vector<1xf32>
    %444 = vector.multi_reduction <add>, %443, %cst_169 [1, 2] : vector<1x2x16xf32> to vector<1xf32>
    %445 = vector.shape_cast %444 : vector<1xf32> to vector<1x1x1xf32>
    %446 = vector.extract %445[0, 0, 0] : f32 from vector<1x1x1xf32>
    %cst_170 = arith.constant 3.125000e-02 : f32
    %447 = arith.mulf %441, %cst_170 : f32
    %cst_171 = arith.constant 3.125000e-02 : f32
    %448 = arith.mulf %446, %cst_171 : f32
    %449 = arith.mulf %447, %447 : f32
    %450 = arith.subf %448, %449 : f32
    %cst_172 = arith.constant 0.000000e+00 : f32
    %451 = arith.maximumf %450, %cst_172 : f32
    %cst_173 = arith.constant 9.99999974E-6 : f32
    %452 = arith.addf %451, %cst_173 : f32
    %453 = math.rsqrt %452 : f32
    %454 = arith.mulf %453, %436 : f32
    %455 = vector.broadcast %454 : f32 to vector<2x16xf32>
    %456 = arith.mulf %435, %455 : vector<2x16xf32>
    %457 = arith.mulf %447, %454 : f32
    %458 = arith.subf %437, %457 : f32
    %459 = vector.broadcast %458 : f32 to vector<2x16xf32>
    %460 = arith.addf %456, %459 : vector<2x16xf32>
    %461 = tpu.concatenate %290, %290, %290, %290, %290, %290, %290, %290, %290, %290, %290, %290, %290, %290, %290, %290 in 1 : vector<2x16xf32>, vector<2x16xf32>, vector<2x16xf32>, vector<2x16xf32>, vector<2x16xf32>, vector<2x16xf32>, vector<2x16xf32>, vector<2x16xf32>, vector<2x16xf32>, vector<2x16xf32>, vector<2x16xf32>, vector<2x16xf32>, vector<2x16xf32>, vector<2x16xf32>, vector<2x16xf32>, vector<2x16xf32> -> vector<2x256xf32>
    %462 = tpu.concatenate %346, %346, %346, %346, %346, %346, %346, %346, %346, %346, %346, %346, %346, %346, %346, %346 in 1 : vector<2x16xf32>, vector<2x16xf32>, vector<2x16xf32>, vector<2x16xf32>, vector<2x16xf32>, vector<2x16xf32>, vector<2x16xf32>, vector<2x16xf32>, vector<2x16xf32>, vector<2x16xf32>, vector<2x16xf32>, vector<2x16xf32>, vector<2x16xf32>, vector<2x16xf32>, vector<2x16xf32>, vector<2x16xf32> -> vector<2x256xf32>
    %463 = vector.extract_strided_slice %404 {offsets = [0, 0], sizes = [2, 1], strides = [1, 1]} : vector<2x16xf32> to vector<2x1xf32>
    %464 = vector.shape_cast %463 : vector<2x1xf32> to vector<2x1xf32>
    %465 = vector.broadcast %464 : vector<2x1xf32> to vector<2x16xf32>
    %466 = vector.extract_strided_slice %404 {offsets = [0, 1], sizes = [2, 1], strides = [1, 1]} : vector<2x16xf32> to vector<2x1xf32>
    %467 = vector.shape_cast %466 : vector<2x1xf32> to vector<2x1xf32>
    %468 = vector.broadcast %467 : vector<2x1xf32> to vector<2x16xf32>
    %469 = vector.extract_strided_slice %404 {offsets = [0, 2], sizes = [2, 1], strides = [1, 1]} : vector<2x16xf32> to vector<2x1xf32>
    %470 = vector.shape_cast %469 : vector<2x1xf32> to vector<2x1xf32>
    %471 = vector.broadcast %470 : vector<2x1xf32> to vector<2x16xf32>
    %472 = vector.extract_strided_slice %404 {offsets = [0, 3], sizes = [2, 1], strides = [1, 1]} : vector<2x16xf32> to vector<2x1xf32>
    %473 = vector.shape_cast %472 : vector<2x1xf32> to vector<2x1xf32>
    %474 = vector.broadcast %473 : vector<2x1xf32> to vector<2x16xf32>
    %475 = vector.extract_strided_slice %404 {offsets = [0, 4], sizes = [2, 1], strides = [1, 1]} : vector<2x16xf32> to vector<2x1xf32>
    %476 = vector.shape_cast %475 : vector<2x1xf32> to vector<2x1xf32>
    %477 = vector.broadcast %476 : vector<2x1xf32> to vector<2x16xf32>
    %478 = vector.extract_strided_slice %404 {offsets = [0, 5], sizes = [2, 1], strides = [1, 1]} : vector<2x16xf32> to vector<2x1xf32>
    %479 = vector.shape_cast %478 : vector<2x1xf32> to vector<2x1xf32>
    %480 = vector.broadcast %479 : vector<2x1xf32> to vector<2x16xf32>
    %481 = vector.extract_strided_slice %404 {offsets = [0, 6], sizes = [2, 1], strides = [1, 1]} : vector<2x16xf32> to vector<2x1xf32>
    %482 = vector.shape_cast %481 : vector<2x1xf32> to vector<2x1xf32>
    %483 = vector.broadcast %482 : vector<2x1xf32> to vector<2x16xf32>
    %484 = vector.extract_strided_slice %404 {offsets = [0, 7], sizes = [2, 1], strides = [1, 1]} : vector<2x16xf32> to vector<2x1xf32>
    %485 = vector.shape_cast %484 : vector<2x1xf32> to vector<2x1xf32>
    %486 = vector.broadcast %485 : vector<2x1xf32> to vector<2x16xf32>
    %487 = vector.extract_strided_slice %404 {offsets = [0, 8], sizes = [2, 1], strides = [1, 1]} : vector<2x16xf32> to vector<2x1xf32>
    %488 = vector.shape_cast %487 : vector<2x1xf32> to vector<2x1xf32>
    %489 = vector.broadcast %488 : vector<2x1xf32> to vector<2x16xf32>
    %490 = vector.extract_strided_slice %404 {offsets = [0, 9], sizes = [2, 1], strides = [1, 1]} : vector<2x16xf32> to vector<2x1xf32>
    %491 = vector.shape_cast %490 : vector<2x1xf32> to vector<2x1xf32>
    %492 = vector.broadcast %491 : vector<2x1xf32> to vector<2x16xf32>
    %493 = vector.extract_strided_slice %404 {offsets = [0, 10], sizes = [2, 1], strides = [1, 1]} : vector<2x16xf32> to vector<2x1xf32>
    %494 = vector.shape_cast %493 : vector<2x1xf32> to vector<2x1xf32>
    %495 = vector.broadcast %494 : vector<2x1xf32> to vector<2x16xf32>
    %496 = vector.extract_strided_slice %404 {offsets = [0, 11], sizes = [2, 1], strides = [1, 1]} : vector<2x16xf32> to vector<2x1xf32>
    %497 = vector.shape_cast %496 : vector<2x1xf32> to vector<2x1xf32>
    %498 = vector.broadcast %497 : vector<2x1xf32> to vector<2x16xf32>
    %499 = vector.extract_strided_slice %404 {offsets = [0, 12], sizes = [2, 1], strides = [1, 1]} : vector<2x16xf32> to vector<2x1xf32>
    %500 = vector.shape_cast %499 : vector<2x1xf32> to vector<2x1xf32>
    %501 = vector.broadcast %500 : vector<2x1xf32> to vector<2x16xf32>
    %502 = vector.extract_strided_slice %404 {offsets = [0, 13], sizes = [2, 1], strides = [1, 1]} : vector<2x16xf32> to vector<2x1xf32>
    %503 = vector.shape_cast %502 : vector<2x1xf32> to vector<2x1xf32>
    %504 = vector.broadcast %503 : vector<2x1xf32> to vector<2x16xf32>
    %505 = vector.extract_strided_slice %404 {offsets = [0, 14], sizes = [2, 1], strides = [1, 1]} : vector<2x16xf32> to vector<2x1xf32>
    %506 = vector.shape_cast %505 : vector<2x1xf32> to vector<2x1xf32>
    %507 = vector.broadcast %506 : vector<2x1xf32> to vector<2x16xf32>
    %508 = vector.extract_strided_slice %404 {offsets = [0, 15], sizes = [2, 1], strides = [1, 1]} : vector<2x16xf32> to vector<2x1xf32>
    %509 = vector.shape_cast %508 : vector<2x1xf32> to vector<2x1xf32>
    %510 = vector.broadcast %509 : vector<2x1xf32> to vector<2x16xf32>
    %511 = tpu.concatenate %465, %468, %471, %474, %477, %480, %483, %486, %489, %492, %495, %498, %501, %504, %507, %510 in 1 : vector<2x16xf32>, vector<2x16xf32>, vector<2x16xf32>, vector<2x16xf32>, vector<2x16xf32>, vector<2x16xf32>, vector<2x16xf32>, vector<2x16xf32>, vector<2x16xf32>, vector<2x16xf32>, vector<2x16xf32>, vector<2x16xf32>, vector<2x16xf32>, vector<2x16xf32>, vector<2x16xf32>, vector<2x16xf32> -> vector<2x256xf32>
    %512 = vector.extract_strided_slice %460 {offsets = [0, 0], sizes = [2, 1], strides = [1, 1]} : vector<2x16xf32> to vector<2x1xf32>
    %513 = vector.shape_cast %512 : vector<2x1xf32> to vector<2x1xf32>
    %514 = vector.broadcast %513 : vector<2x1xf32> to vector<2x16xf32>
    %515 = vector.extract_strided_slice %460 {offsets = [0, 1], sizes = [2, 1], strides = [1, 1]} : vector<2x16xf32> to vector<2x1xf32>
    %516 = vector.shape_cast %515 : vector<2x1xf32> to vector<2x1xf32>
    %517 = vector.broadcast %516 : vector<2x1xf32> to vector<2x16xf32>
    %518 = vector.extract_strided_slice %460 {offsets = [0, 2], sizes = [2, 1], strides = [1, 1]} : vector<2x16xf32> to vector<2x1xf32>
    %519 = vector.shape_cast %518 : vector<2x1xf32> to vector<2x1xf32>
    %520 = vector.broadcast %519 : vector<2x1xf32> to vector<2x16xf32>
    %521 = vector.extract_strided_slice %460 {offsets = [0, 3], sizes = [2, 1], strides = [1, 1]} : vector<2x16xf32> to vector<2x1xf32>
    %522 = vector.shape_cast %521 : vector<2x1xf32> to vector<2x1xf32>
    %523 = vector.broadcast %522 : vector<2x1xf32> to vector<2x16xf32>
    %524 = vector.extract_strided_slice %460 {offsets = [0, 4], sizes = [2, 1], strides = [1, 1]} : vector<2x16xf32> to vector<2x1xf32>
    %525 = vector.shape_cast %524 : vector<2x1xf32> to vector<2x1xf32>
    %526 = vector.broadcast %525 : vector<2x1xf32> to vector<2x16xf32>
    %527 = vector.extract_strided_slice %460 {offsets = [0, 5], sizes = [2, 1], strides = [1, 1]} : vector<2x16xf32> to vector<2x1xf32>
    %528 = vector.shape_cast %527 : vector<2x1xf32> to vector<2x1xf32>
    %529 = vector.broadcast %528 : vector<2x1xf32> to vector<2x16xf32>
    %530 = vector.extract_strided_slice %460 {offsets = [0, 6], sizes = [2, 1], strides = [1, 1]} : vector<2x16xf32> to vector<2x1xf32>
    %531 = vector.shape_cast %530 : vector<2x1xf32> to vector<2x1xf32>
    %532 = vector.broadcast %531 : vector<2x1xf32> to vector<2x16xf32>
    %533 = vector.extract_strided_slice %460 {offsets = [0, 7], sizes = [2, 1], strides = [1, 1]} : vector<2x16xf32> to vector<2x1xf32>
    %534 = vector.shape_cast %533 : vector<2x1xf32> to vector<2x1xf32>
    %535 = vector.broadcast %534 : vector<2x1xf32> to vector<2x16xf32>
    %536 = vector.extract_strided_slice %460 {offsets = [0, 8], sizes = [2, 1], strides = [1, 1]} : vector<2x16xf32> to vector<2x1xf32>
    %537 = vector.shape_cast %536 : vector<2x1xf32> to vector<2x1xf32>
    %538 = vector.broadcast %537 : vector<2x1xf32> to vector<2x16xf32>
    %539 = vector.extract_strided_slice %460 {offsets = [0, 9], sizes = [2, 1], strides = [1, 1]} : vector<2x16xf32> to vector<2x1xf32>
    %540 = vector.shape_cast %539 : vector<2x1xf32> to vector<2x1xf32>
    %541 = vector.broadcast %540 : vector<2x1xf32> to vector<2x16xf32>
    %542 = vector.extract_strided_slice %460 {offsets = [0, 10], sizes = [2, 1], strides = [1, 1]} : vector<2x16xf32> to vector<2x1xf32>
    %543 = vector.shape_cast %542 : vector<2x1xf32> to vector<2x1xf32>
    %544 = vector.broadcast %543 : vector<2x1xf32> to vector<2x16xf32>
    %545 = vector.extract_strided_slice %460 {offsets = [0, 11], sizes = [2, 1], strides = [1, 1]} : vector<2x16xf32> to vector<2x1xf32>
    %546 = vector.shape_cast %545 : vector<2x1xf32> to vector<2x1xf32>
    %547 = vector.broadcast %546 : vector<2x1xf32> to vector<2x16xf32>
    %548 = vector.extract_strided_slice %460 {offsets = [0, 12], sizes = [2, 1], strides = [1, 1]} : vector<2x16xf32> to vector<2x1xf32>
    %549 = vector.shape_cast %548 : vector<2x1xf32> to vector<2x1xf32>
    %550 = vector.broadcast %549 : vector<2x1xf32> to vector<2x16xf32>
    %551 = vector.extract_strided_slice %460 {offsets = [0, 13], sizes = [2, 1], strides = [1, 1]} : vector<2x16xf32> to vector<2x1xf32>
    %552 = vector.shape_cast %551 : vector<2x1xf32> to vector<2x1xf32>
    %553 = vector.broadcast %552 : vector<2x1xf32> to vector<2x16xf32>
    %554 = vector.extract_strided_slice %460 {offsets = [0, 14], sizes = [2, 1], strides = [1, 1]} : vector<2x16xf32> to vector<2x1xf32>
    %555 = vector.shape_cast %554 : vector<2x1xf32> to vector<2x1xf32>
    %556 = vector.broadcast %555 : vector<2x1xf32> to vector<2x16xf32>
    %557 = vector.extract_strided_slice %460 {offsets = [0, 15], sizes = [2, 1], strides = [1, 1]} : vector<2x16xf32> to vector<2x1xf32>
    %558 = vector.shape_cast %557 : vector<2x1xf32> to vector<2x1xf32>
    %559 = vector.broadcast %558 : vector<2x1xf32> to vector<2x16xf32>
    %560 = tpu.concatenate %514, %517, %520, %523, %526, %529, %532, %535, %538, %541, %544, %547, %550, %553, %556, %559 in 1 : vector<2x16xf32>, vector<2x16xf32>, vector<2x16xf32>, vector<2x16xf32>, vector<2x16xf32>, vector<2x16xf32>, vector<2x16xf32>, vector<2x16xf32>, vector<2x16xf32>, vector<2x16xf32>, vector<2x16xf32>, vector<2x16xf32>, vector<2x16xf32>, vector<2x16xf32>, vector<2x16xf32>, vector<2x16xf32> -> vector<2x256xf32>
    %cst_174 = arith.constant 0.000000e+00 : f32
    %561 = vector.broadcast %cst_174 : f32 to vector<2x256xf32>
    %c0_175 = arith.constant 0 : index
    %c0_176 = arith.constant 0 : index
    %562 = memref.load %arg4[%c0_175, %c0_176] : memref<4x4xf32, #tpu.memory_space<smem>>
    %563 = vector.broadcast %562 : f32 to vector<2x256xf32>
    %564 = arith.mulf %563, %461 : vector<2x256xf32>
    %565 = arith.addf %561, %564 : vector<2x256xf32>
    %c0_177 = arith.constant 0 : index
    %c1_178 = arith.constant 1 : index
    %566 = memref.load %arg4[%c0_177, %c1_178] : memref<4x4xf32, #tpu.memory_space<smem>>
    %567 = vector.broadcast %566 : f32 to vector<2x256xf32>
    %568 = arith.mulf %567, %462 : vector<2x256xf32>
    %569 = arith.addf %565, %568 : vector<2x256xf32>
    %c0_179 = arith.constant 0 : index
    %c2_180 = arith.constant 2 : index
    %570 = memref.load %arg4[%c0_179, %c2_180] : memref<4x4xf32, #tpu.memory_space<smem>>
    %571 = vector.broadcast %570 : f32 to vector<2x256xf32>
    %572 = arith.mulf %571, %511 : vector<2x256xf32>
    %573 = arith.addf %569, %572 : vector<2x256xf32>
    %c0_181 = arith.constant 0 : index
    %c3_182 = arith.constant 3 : index
    %574 = memref.load %arg4[%c0_181, %c3_182] : memref<4x4xf32, #tpu.memory_space<smem>>
    %575 = vector.broadcast %574 : f32 to vector<2x256xf32>
    %576 = arith.mulf %575, %560 : vector<2x256xf32>
    %577 = arith.addf %573, %576 : vector<2x256xf32>
    %c0_183 = arith.constant 0 : index
    %c0_184 = arith.constant 0 : index
    %578 = memref.load %arg6[%c0_183, %c0_184] : memref<2x4xf32, #tpu.memory_space<smem>>
    %c1_185 = arith.constant 1 : index
    %c0_186 = arith.constant 0 : index
    %579 = memref.load %arg6[%c1_185, %c0_186] : memref<2x4xf32, #tpu.memory_space<smem>>
    %580 = vector.shape_cast %577 : vector<2x256xf32> to vector<1x2x256xf32>
    %cst_187 = arith.constant dense<0.000000e+00> : vector<1xf32>
    %581 = vector.multi_reduction <add>, %580, %cst_187 [1, 2] : vector<1x2x256xf32> to vector<1xf32>
    %582 = vector.shape_cast %581 : vector<1xf32> to vector<1x1x1xf32>
    %583 = vector.extract %582[0, 0, 0] : f32 from vector<1x1x1xf32>
    %584 = arith.mulf %577, %577 : vector<2x256xf32>
    %585 = vector.shape_cast %584 : vector<2x256xf32> to vector<1x2x256xf32>
    %cst_188 = arith.constant dense<0.000000e+00> : vector<1xf32>
    %586 = vector.multi_reduction <add>, %585, %cst_188 [1, 2] : vector<1x2x256xf32> to vector<1xf32>
    %587 = vector.shape_cast %586 : vector<1xf32> to vector<1x1x1xf32>
    %588 = vector.extract %587[0, 0, 0] : f32 from vector<1x1x1xf32>
    %cst_189 = arith.constant 0.001953125 : f32
    %589 = arith.mulf %583, %cst_189 : f32
    %cst_190 = arith.constant 0.001953125 : f32
    %590 = arith.mulf %588, %cst_190 : f32
    %591 = arith.mulf %589, %589 : f32
    %592 = arith.subf %590, %591 : f32
    %cst_191 = arith.constant 0.000000e+00 : f32
    %593 = arith.maximumf %592, %cst_191 : f32
    %cst_192 = arith.constant 9.99999974E-6 : f32
    %594 = arith.addf %593, %cst_192 : f32
    %595 = math.rsqrt %594 : f32
    %596 = arith.mulf %595, %578 : f32
    %597 = vector.broadcast %596 : f32 to vector<2x256xf32>
    %598 = arith.mulf %577, %597 : vector<2x256xf32>
    %599 = arith.mulf %589, %596 : f32
    %600 = arith.subf %579, %599 : f32
    %601 = vector.broadcast %600 : f32 to vector<2x256xf32>
    %602 = arith.addf %598, %601 : vector<2x256xf32>
    %c0_193 = arith.constant 0 : index
    %c0_194 = arith.constant 0 : index
    %c0_195 = arith.constant 0 : index
    %603 = vector.load %arg7[%c0_193, %c0_194, %c0_195] : memref<4x2x256xf32, #tpu.memory_space<vmem>>, vector<1x2x256xf32>
    %604 = vector.shape_cast %603 : vector<1x2x256xf32> to vector<2x256xf32>
    %605 = vector.shape_cast %602 : vector<2x256xf32> to vector<1x2x256xf32>
    tpu.vector_store %arg7[%c0_193, %c0_194, %c0_195], %605 {strides = array<i32>} : memref<4x2x256xf32, #tpu.memory_space<vmem>>, vector<1x2x256xf32>,
    %cst_196 = arith.constant 0.000000e+00 : f32
    %606 = vector.broadcast %cst_196 : f32 to vector<2x256xf32>
    %c1_197 = arith.constant 1 : index
    %c0_198 = arith.constant 0 : index
    %607 = memref.load %arg4[%c1_197, %c0_198] : memref<4x4xf32, #tpu.memory_space<smem>>
    %608 = vector.broadcast %607 : f32 to vector<2x256xf32>
    %609 = arith.mulf %608, %461 : vector<2x256xf32>
    %610 = arith.addf %606, %609 : vector<2x256xf32>
    %c1_199 = arith.constant 1 : index
    %c1_200 = arith.constant 1 : index
    %611 = memref.load %arg4[%c1_199, %c1_200] : memref<4x4xf32, #tpu.memory_space<smem>>
    %612 = vector.broadcast %611 : f32 to vector<2x256xf32>
    %613 = arith.mulf %612, %462 : vector<2x256xf32>
    %614 = arith.addf %610, %613 : vector<2x256xf32>
    %c1_201 = arith.constant 1 : index
    %c2_202 = arith.constant 2 : index
    %615 = memref.load %arg4[%c1_201, %c2_202] : memref<4x4xf32, #tpu.memory_space<smem>>
    %616 = vector.broadcast %615 : f32 to vector<2x256xf32>
    %617 = arith.mulf %616, %511 : vector<2x256xf32>
    %618 = arith.addf %614, %617 : vector<2x256xf32>
    %c1_203 = arith.constant 1 : index
    %c3_204 = arith.constant 3 : index
    %619 = memref.load %arg4[%c1_203, %c3_204] : memref<4x4xf32, #tpu.memory_space<smem>>
    %620 = vector.broadcast %619 : f32 to vector<2x256xf32>
    %621 = arith.mulf %620, %560 : vector<2x256xf32>
    %622 = arith.addf %618, %621 : vector<2x256xf32>
    %c0_205 = arith.constant 0 : index
    %c1_206 = arith.constant 1 : index
    %623 = memref.load %arg6[%c0_205, %c1_206] : memref<2x4xf32, #tpu.memory_space<smem>>
    %c1_207 = arith.constant 1 : index
    %c1_208 = arith.constant 1 : index
    %624 = memref.load %arg6[%c1_207, %c1_208] : memref<2x4xf32, #tpu.memory_space<smem>>
    %625 = vector.shape_cast %622 : vector<2x256xf32> to vector<1x2x256xf32>
    %cst_209 = arith.constant dense<0.000000e+00> : vector<1xf32>
    %626 = vector.multi_reduction <add>, %625, %cst_209 [1, 2] : vector<1x2x256xf32> to vector<1xf32>
    %627 = vector.shape_cast %626 : vector<1xf32> to vector<1x1x1xf32>
    %628 = vector.extract %627[0, 0, 0] : f32 from vector<1x1x1xf32>
    %629 = arith.mulf %622, %622 : vector<2x256xf32>
    %630 = vector.shape_cast %629 : vector<2x256xf32> to vector<1x2x256xf32>
    %cst_210 = arith.constant dense<0.000000e+00> : vector<1xf32>
    %631 = vector.multi_reduction <add>, %630, %cst_210 [1, 2] : vector<1x2x256xf32> to vector<1xf32>
    %632 = vector.shape_cast %631 : vector<1xf32> to vector<1x1x1xf32>
    %633 = vector.extract %632[0, 0, 0] : f32 from vector<1x1x1xf32>
    %cst_211 = arith.constant 0.001953125 : f32
    %634 = arith.mulf %628, %cst_211 : f32
    %cst_212 = arith.constant 0.001953125 : f32
    %635 = arith.mulf %633, %cst_212 : f32
    %636 = arith.mulf %634, %634 : f32
    %637 = arith.subf %635, %636 : f32
    %cst_213 = arith.constant 0.000000e+00 : f32
    %638 = arith.maximumf %637, %cst_213 : f32
    %cst_214 = arith.constant 9.99999974E-6 : f32
    %639 = arith.addf %638, %cst_214 : f32
    %640 = math.rsqrt %639 : f32
    %641 = arith.mulf %640, %623 : f32
    %642 = vector.broadcast %641 : f32 to vector<2x256xf32>
    %643 = arith.mulf %622, %642 : vector<2x256xf32>
    %644 = arith.mulf %634, %641 : f32
    %645 = arith.subf %624, %644 : f32
    %646 = vector.broadcast %645 : f32 to vector<2x256xf32>
    %647 = arith.addf %643, %646 : vector<2x256xf32>
    %c1_215 = arith.constant 1 : index
    %c0_216 = arith.constant 0 : index
    %c0_217 = arith.constant 0 : index
    %648 = vector.load %arg7[%c1_215, %c0_216, %c0_217] : memref<4x2x256xf32, #tpu.memory_space<vmem>>, vector<1x2x256xf32>
    %649 = vector.shape_cast %648 : vector<1x2x256xf32> to vector<2x256xf32>
    %650 = vector.shape_cast %647 : vector<2x256xf32> to vector<1x2x256xf32>
    tpu.vector_store %arg7[%c1_215, %c0_216, %c0_217], %650 {strides = array<i32>} : memref<4x2x256xf32, #tpu.memory_space<vmem>>, vector<1x2x256xf32>,
    %cst_218 = arith.constant 0.000000e+00 : f32
    %651 = vector.broadcast %cst_218 : f32 to vector<2x256xf32>
    %c2_219 = arith.constant 2 : index
    %c0_220 = arith.constant 0 : index
    %652 = memref.load %arg4[%c2_219, %c0_220] : memref<4x4xf32, #tpu.memory_space<smem>>
    %653 = vector.broadcast %652 : f32 to vector<2x256xf32>
    %654 = arith.mulf %653, %461 : vector<2x256xf32>
    %655 = arith.addf %651, %654 : vector<2x256xf32>
    %c2_221 = arith.constant 2 : index
    %c1_222 = arith.constant 1 : index
    %656 = memref.load %arg4[%c2_221, %c1_222] : memref<4x4xf32, #tpu.memory_space<smem>>
    %657 = vector.broadcast %656 : f32 to vector<2x256xf32>
    %658 = arith.mulf %657, %462 : vector<2x256xf32>
    %659 = arith.addf %655, %658 : vector<2x256xf32>
    %c2_223 = arith.constant 2 : index
    %c2_224 = arith.constant 2 : index
    %660 = memref.load %arg4[%c2_223, %c2_224] : memref<4x4xf32, #tpu.memory_space<smem>>
    %661 = vector.broadcast %660 : f32 to vector<2x256xf32>
    %662 = arith.mulf %661, %511 : vector<2x256xf32>
    %663 = arith.addf %659, %662 : vector<2x256xf32>
    %c2_225 = arith.constant 2 : index
    %c3_226 = arith.constant 3 : index
    %664 = memref.load %arg4[%c2_225, %c3_226] : memref<4x4xf32, #tpu.memory_space<smem>>
    %665 = vector.broadcast %664 : f32 to vector<2x256xf32>
    %666 = arith.mulf %665, %560 : vector<2x256xf32>
    %667 = arith.addf %663, %666 : vector<2x256xf32>
    %c0_227 = arith.constant 0 : index
    %c2_228 = arith.constant 2 : index
    %668 = memref.load %arg6[%c0_227, %c2_228] : memref<2x4xf32, #tpu.memory_space<smem>>
    %c1_229 = arith.constant 1 : index
    %c2_230 = arith.constant 2 : index
    %669 = memref.load %arg6[%c1_229, %c2_230] : memref<2x4xf32, #tpu.memory_space<smem>>
    %670 = vector.shape_cast %667 : vector<2x256xf32> to vector<1x2x256xf32>
    %cst_231 = arith.constant dense<0.000000e+00> : vector<1xf32>
    %671 = vector.multi_reduction <add>, %670, %cst_231 [1, 2] : vector<1x2x256xf32> to vector<1xf32>
    %672 = vector.shape_cast %671 : vector<1xf32> to vector<1x1x1xf32>
    %673 = vector.extract %672[0, 0, 0] : f32 from vector<1x1x1xf32>
    %674 = arith.mulf %667, %667 : vector<2x256xf32>
    %675 = vector.shape_cast %674 : vector<2x256xf32> to vector<1x2x256xf32>
    %cst_232 = arith.constant dense<0.000000e+00> : vector<1xf32>
    %676 = vector.multi_reduction <add>, %675, %cst_232 [1, 2] : vector<1x2x256xf32> to vector<1xf32>
    %677 = vector.shape_cast %676 : vector<1xf32> to vector<1x1x1xf32>
    %678 = vector.extract %677[0, 0, 0] : f32 from vector<1x1x1xf32>
    %cst_233 = arith.constant 0.001953125 : f32
    %679 = arith.mulf %673, %cst_233 : f32
    %cst_234 = arith.constant 0.001953125 : f32
    %680 = arith.mulf %678, %cst_234 : f32
    %681 = arith.mulf %679, %679 : f32
    %682 = arith.subf %680, %681 : f32
    %cst_235 = arith.constant 0.000000e+00 : f32
    %683 = arith.maximumf %682, %cst_235 : f32
    %cst_236 = arith.constant 9.99999974E-6 : f32
    %684 = arith.addf %683, %cst_236 : f32
    %685 = math.rsqrt %684 : f32
    %686 = arith.mulf %685, %668 : f32
    %687 = vector.broadcast %686 : f32 to vector<2x256xf32>
    %688 = arith.mulf %667, %687 : vector<2x256xf32>
    %689 = arith.mulf %679, %686 : f32
    %690 = arith.subf %669, %689 : f32
    %691 = vector.broadcast %690 : f32 to vector<2x256xf32>
    %692 = arith.addf %688, %691 : vector<2x256xf32>
    %c2_237 = arith.constant 2 : index
    %c0_238 = arith.constant 0 : index
    %c0_239 = arith.constant 0 : index
    %693 = vector.load %arg7[%c2_237, %c0_238, %c0_239] : memref<4x2x256xf32, #tpu.memory_space<vmem>>, vector<1x2x256xf32>
    %694 = vector.shape_cast %693 : vector<1x2x256xf32> to vector<2x256xf32>
    %695 = vector.shape_cast %692 : vector<2x256xf32> to vector<1x2x256xf32>
    tpu.vector_store %arg7[%c2_237, %c0_238, %c0_239], %695 {strides = array<i32>} : memref<4x2x256xf32, #tpu.memory_space<vmem>>, vector<1x2x256xf32>,
    %cst_240 = arith.constant 0.000000e+00 : f32
    %696 = vector.broadcast %cst_240 : f32 to vector<2x256xf32>
    %c3_241 = arith.constant 3 : index
    %c0_242 = arith.constant 0 : index
    %697 = memref.load %arg4[%c3_241, %c0_242] : memref<4x4xf32, #tpu.memory_space<smem>>
    %698 = vector.broadcast %697 : f32 to vector<2x256xf32>
    %699 = arith.mulf %698, %461 : vector<2x256xf32>
    %700 = arith.addf %696, %699 : vector<2x256xf32>
    %c3_243 = arith.constant 3 : index
    %c1_244 = arith.constant 1 : index
    %701 = memref.load %arg4[%c3_243, %c1_244] : memref<4x4xf32, #tpu.memory_space<smem>>
    %702 = vector.broadcast %701 : f32 to vector<2x256xf32>
    %703 = arith.mulf %702, %462 : vector<2x256xf32>
    %704 = arith.addf %700, %703 : vector<2x256xf32>
    %c3_245 = arith.constant 3 : index
    %c2_246 = arith.constant 2 : index
    %705 = memref.load %arg4[%c3_245, %c2_246] : memref<4x4xf32, #tpu.memory_space<smem>>
    %706 = vector.broadcast %705 : f32 to vector<2x256xf32>
    %707 = arith.mulf %706, %511 : vector<2x256xf32>
    %708 = arith.addf %704, %707 : vector<2x256xf32>
    %c3_247 = arith.constant 3 : index
    %c3_248 = arith.constant 3 : index
    %709 = memref.load %arg4[%c3_247, %c3_248] : memref<4x4xf32, #tpu.memory_space<smem>>
    %710 = vector.broadcast %709 : f32 to vector<2x256xf32>
    %711 = arith.mulf %710, %560 : vector<2x256xf32>
    %712 = arith.addf %708, %711 : vector<2x256xf32>
    %c0_249 = arith.constant 0 : index
    %c3_250 = arith.constant 3 : index
    %713 = memref.load %arg6[%c0_249, %c3_250] : memref<2x4xf32, #tpu.memory_space<smem>>
    %c1_251 = arith.constant 1 : index
    %c3_252 = arith.constant 3 : index
    %714 = memref.load %arg6[%c1_251, %c3_252] : memref<2x4xf32, #tpu.memory_space<smem>>
    %715 = vector.shape_cast %712 : vector<2x256xf32> to vector<1x2x256xf32>
    %cst_253 = arith.constant dense<0.000000e+00> : vector<1xf32>
    %716 = vector.multi_reduction <add>, %715, %cst_253 [1, 2] : vector<1x2x256xf32> to vector<1xf32>
    %717 = vector.shape_cast %716 : vector<1xf32> to vector<1x1x1xf32>
    %718 = vector.extract %717[0, 0, 0] : f32 from vector<1x1x1xf32>
    %719 = arith.mulf %712, %712 : vector<2x256xf32>
    %720 = vector.shape_cast %719 : vector<2x256xf32> to vector<1x2x256xf32>
    %cst_254 = arith.constant dense<0.000000e+00> : vector<1xf32>
    %721 = vector.multi_reduction <add>, %720, %cst_254 [1, 2] : vector<1x2x256xf32> to vector<1xf32>
    %722 = vector.shape_cast %721 : vector<1xf32> to vector<1x1x1xf32>
    %723 = vector.extract %722[0, 0, 0] : f32 from vector<1x1x1xf32>
    %cst_255 = arith.constant 0.001953125 : f32
    %724 = arith.mulf %718, %cst_255 : f32
    %cst_256 = arith.constant 0.001953125 : f32
    %725 = arith.mulf %723, %cst_256 : f32
    %726 = arith.mulf %724, %724 : f32
    %727 = arith.subf %725, %726 : f32
    %cst_257 = arith.constant 0.000000e+00 : f32
    %728 = arith.maximumf %727, %cst_257 : f32
    %cst_258 = arith.constant 9.99999974E-6 : f32
    %729 = arith.addf %728, %cst_258 : f32
    %730 = math.rsqrt %729 : f32
    %731 = arith.mulf %730, %713 : f32
    %732 = vector.broadcast %731 : f32 to vector<2x256xf32>
    %733 = arith.mulf %712, %732 : vector<2x256xf32>
    %734 = arith.mulf %724, %731 : f32
    %735 = arith.subf %714, %734 : f32
    %736 = vector.broadcast %735 : f32 to vector<2x256xf32>
    %737 = arith.addf %733, %736 : vector<2x256xf32>
    %c3_259 = arith.constant 3 : index
    %c0_260 = arith.constant 0 : index
    %c0_261 = arith.constant 0 : index
    %738 = vector.load %arg7[%c3_259, %c0_260, %c0_261] : memref<4x2x256xf32, #tpu.memory_space<vmem>>, vector<1x2x256xf32>
    %739 = vector.shape_cast %738 : vector<1x2x256xf32> to vector<2x256xf32>
    %740 = vector.shape_cast %737 : vector<2x256xf32> to vector<1x2x256xf32>
    tpu.vector_store %arg7[%c3_259, %c0_260, %c0_261], %740 {strides = array<i32>} : memref<4x2x256xf32, #tpu.memory_space<vmem>>, vector<1x2x256xf32>,
    return
  }
}

</mosaic_0001>

<bundles_post_ra>
// kernel: tpu_custom_call.1
= control target key start
LH: loop header
LB: loop body
LE: loop exit
PB: predicated region body
PF: predicated region fallthrough
CT: control target
= control target key end

     0   :  { %12 = vsyncpa [#allocation3], 0  ;;  %s2667_s0 = inlined_call_operand.hbm [shape: f32[4,2,256], index: 0, kind: input, shape index: {}]   ;;  %s2668_s1 = inlined_call_operand.vmem [shape: f32[2,4], index: 1, kind: input, shape index: {}]   ;;  %s2669_s2 = inlined_call_operand.vmem [shape: f32[2,6], index: 2, kind: input, shape index: {}]   ;;  %s2670_s3 = inlined_call_operand.vmem [shape: f32[2,6], index: 3, kind: input, shape index: {}]   ;;  %s2671_s4 = inlined_call_operand.vmem [shape: f32[4,4], index: 4, kind: input, shape index: {}]   ;;  %s2672_s5 = inlined_call_operand.vmem [shape: f32[6,2], index: 5, kind: input, shape index: {}]   ;;  %s2673_s6 = inlined_call_operand.vmem [shape: f32[2,4], index: 6, kind: input, shape index: {}]   ;;  %s2674_s7 = inlined_call_operand.hbm [shape: f32[4,2,256], index: 7, kind: output, shape index: {}]  }
   0x1   :  { %13 = vsyncpa [#allocation5], 0 }
   0x2   :  { %14 = vsyncpa [#allocation8], 0 }
   0x3   :  { %15 = vsyncpa [#allocation11], 0 }
   0x4   :  { %16 = vsyncpa [#allocation14], 0  ;;  %s46_s26 = sshll.u32 %s2669_s2, 4  ;;  %s47_s26 = int_to_ptr.vmem [resolvable:$true] %s46_s26 }
   0x5   :  { %17 = vsyncpa [#allocation4], 0  ;;  %s66_s29 = sshll.u32 %s2671_s4, 4  ;;  %s1767_s30 = scalar_lea.vmem %s47_s26, 32  ;;  %s67_s29 = int_to_ptr.vmem [resolvable:$true] %s66_s29 }
   0x6   :  { %p1768_p0 = scmp.ne.s32.totalorder %s47_s26, %s1767_s30  ;;  %p1772_p1 = scmp.lt.s32.totalorder %s47_s26, %s47_s26 }
   0x7   :  { %p1773_p2 = scmp.lt.s32.totalorder %s1767_s30, %s1767_s30 }
   0x9   :  { %p1774_p3 = por %p1773_p2, %p1772_p1 }
   0xb   :  { %p1775_p4 = pnand %p1774_p3, %p1768_p0 }
   0xd   :  { %1778 = shalt.err (!%p1775_p4)
}
   0xe   :  { %s1891_s8 = smov [#allocation7]   ;;  %s1779_s9 = scalar_lea.vmem %s67_s29, 64 }
   0xf   :  { %49 = dma.vmem_to_smem %s47_s26, 32, %s1891_s8, [#allocation8]  }
  0x10   :  { %p1780_p5 = scmp.ne.s32.totalorder %s67_s29, %s1779_s9  ;;  %p1784_p6 = scmp.lt.s32.totalorder %s67_s29, %s67_s29 }
  0x11   :  { %p1785_p7 = scmp.lt.s32.totalorder %s1779_s9, %s1779_s9 }
  0x13   :  { %p1786_p8 = por %p1785_p7, %p1784_p6 }
  0x15   :  { %p1787_p9 = pnand %p1786_p8, %p1780_p5 }
  0x17   :  { %1790 = shalt.err (!%p1787_p9)
}
  0x18   :  { %s1892_s2 = smov [#allocation10]   ;;  %s1893_s4 = smov [#allocation2]  }
  0x19   :  { %69 = dma.vmem_to_smem %s67_s29, 64, %s1892_s2, [#allocation11]  }
  0x1a   :  { %s23_s10 = sshll.u32 %s1893_s4, 4  ;;  %s36_s13 = sshll.u32 %s2668_s1, 4  ;;  %s24_s10 = int_to_ptr.vmem [resolvable:$true] %s23_s10  ;;  %s37_s13 = int_to_ptr.vmem [resolvable:$true] %s36_s13 }
  0x1b   :  { %s1799_s14 = scalar_lea.vmem %s24_s10, 256  ;;  %p1804_p11 = scmp.lt.s32.totalorder %s24_s10, %s24_s10 }
  0x1c   :  { %p1800_p10 = scmp.ne.s32.totalorder %s24_s10, %s1799_s14  ;;  %p1805_p12 = scmp.lt.s32.totalorder %s1799_s14, %s1799_s14 }
  0x1e   :  { %p1806_p13 = por %p1805_p12, %p1804_p11 }
  0x20   :  { %p1807_p0 = pnand %p1806_p13, %p1800_p10 }
  0x22   :  { %1810 = shalt.err (!%p1807_p0)
}
  0x23   :  { %s1894_s15 = smov 64   ;;  %s1895_s16 = smov 4  }
  0x24   :  { %29 = dma.hbm_to_vmem [thread:$0]  %s2667_s0, 256, %s24_s10, [#allocation3], %s1894_s15, %s1894_s15, %s1895_s16  }
  0x25   :  { %s1811_s19 = scalar_lea.vmem %s37_s13, 32  ;;  %p1816_p2 = scmp.lt.s32.totalorder %s37_s13, %s37_s13 }
  0x26   :  { %p1812_p1 = scmp.ne.s32.totalorder %s37_s13, %s1811_s19  ;;  %p1817_p3 = scmp.lt.s32.totalorder %s1811_s19, %s1811_s19 }
  0x28   :  { %p1818_p4 = por %p1817_p3, %p1816_p2 }
  0x2a   :  { %p1819_p5 = pnand %p1818_p4, %p1812_p1 }
  0x2c   :  { %1822 = shalt.err (!%p1819_p5)
}
  0x2d   :  { %s1896_s1 = smov [#allocation6]   ;;  %s56_s22 = sshll.u32 %s2670_s3, 4  ;;  %s57_s22 = int_to_ptr.vmem [resolvable:$true] %s56_s22 }
  0x2e   :  { %39 = dma.vmem_to_smem %s37_s13, 32, %s1896_s1, [#allocation5]  }
  0x2f   :  { %s76_s25 = sshll.u32 %s2672_s5, 4  ;;  %s1823_s0 = scalar_lea.vmem %s57_s22, 32  ;;  %s77_s25 = int_to_ptr.vmem [resolvable:$true] %s76_s25 }
  0x30   :  { %p1824_p6 = scmp.ne.s32.totalorder %s57_s22, %s1823_s0  ;;  %p1828_p7 = scmp.lt.s32.totalorder %s57_s22, %s57_s22 }
  0x31   :  { %p1829_p8 = scmp.lt.s32.totalorder %s1823_s0, %s1823_s0 }
  0x33   :  { %p1830_p9 = por %p1829_p8, %p1828_p7 }
  0x35   :  { %p1831_p10 = pnand %p1830_p9, %p1824_p6 }
  0x37   :  { %1834 = shalt.err (!%p1831_p10)
}
  0x38   :  { %s1897_s26 = smov [#allocation9]   ;;  %s1835_s27 = scalar_lea.vmem %s77_s25, 128 }
  0x39   :  { %59 = dma.vmem_to_smem %s57_s22, 32, %s1897_s26, [#allocation8]  }
  0x3a   :  { %p1836_p11 = scmp.ne.s32.totalorder %s77_s25, %s1835_s27  ;;  %p1840_p12 = scmp.lt.s32.totalorder %s77_s25, %s77_s25 }
  0x3b   :  { %p1841_p13 = scmp.lt.s32.totalorder %s1835_s27, %s1835_s27 }
  0x3d   :  { %p1842_p0 = por %p1841_p13, %p1840_p12 }
  0x3f   :  { %p1843_p1 = pnand %p1842_p0, %p1836_p11 }
  0x41   :  { %1846 = shalt.err (!%p1843_p1)
}
  0x42   :  { %s1898_s3 = smov [#allocation12]   ;;  %s86_s29 = sshll.u32 %s2673_s6, 4  ;;  %s87_s29 = int_to_ptr.vmem [resolvable:$true] %s86_s29 }
  0x43   :  { %79 = dma.vmem_to_smem %s77_s25, 128, %s1898_s3, [#allocation11]  }
  0x44   :  { %s1847_s30 = scalar_lea.vmem %s87_s29, 32  ;;  %p1852_p3 = scmp.lt.s32.totalorder %s87_s29, %s87_s29 }
  0x45   :  { %p1848_p2 = scmp.ne.s32.totalorder %s87_s29, %s1847_s30  ;;  %p1853_p4 = scmp.lt.s32.totalorder %s1847_s30, %s1847_s30 }
  0x47   :  { %p1854_p5 = por %p1853_p4, %p1852_p3 }
  0x49   :  { %p1855_p6 = pnand %p1854_p5, %p1848_p2 }
  0x4b   :  { %1858 = shalt.err (!%p1855_p6)
}
  0x4c   :  { %s1899_s8 = smov [#allocation13]  }
  0x4d   :  { %89 = dma.vmem_to_smem %s87_s29, 32, %s1899_s8, [#allocation14]  }
  0x4e   :  { %1879 = dma.done.wait [#allocation3], 256  }
  0x4f   :  { %1880 = vsyncadd [#allocation3], 4294967040 }
  0x50   :  { %1881 = dma.done.wait [#allocation5], 32  }
  0x51   :  { %1882 = vsyncadd [#allocation5], 4294967264 }
  0x52   :  { %1883 = dma.done.wait [#allocation8], 64  }
  0x53   :  { %1884 = vsyncadd [#allocation8], 4294967232 }
  0x54   :  { %1885 = dma.done.wait [#allocation11], 192  }
  0x55   :  { %1886 = vsyncadd [#allocation11], 4294967104 }
  0x56   :  { %1887 = dma.done.wait [#allocation14], 32  }
  0x57   :  { %1888 = vsyncadd [#allocation14], 4294967264 }
  0x58   :  { %111 = sfence }
  0x59   :  { %s119_s6 = sld [smem:[#allocation6]]  ;;  %v112_v0 = vld [vmem:[#allocation2] sm:$0xf]  ;;  %v1900_v1 = vmov 1983009808   ;;  %v141_v3 = vlaneseq  ;;  %vm148_vm0 = vcmask 1041408  }
  0x5a   :  { %s1552_s9 = sld [smem:[#allocation6 + $0x1]]  ;;  %v139_v2 = vunpack.c.l.s4 %v1900_v1  ;;  %v114_v4 = vld [vmem:[#allocation2 + $0x4] sm:$0xf]  ;;  %v116_v5 = vld [vmem:[#allocation2 + $0x8] sm:$0xf]  ;;  %s1901_s21 = smov 0.0  }
  0x5b   :  { %s1553_s2 = sld [smem:[#allocation6 + $0x2]]  ;;  %v118_v7 = vld [vmem:[#allocation2 + $0xc] sm:$0xf]  ;;  %v142_v13 = vshrl.u32 %v141_v3, 7  ;;  %vm338_vm1 = vcmask 123904   ;;  %vm650_vm2 = vcmask 138240  }
  0x5c   :  { %s1554_s4 = sld [smem:[#allocation6 + $0x3]]  ;;  %v140_v12 = vunpack.c.0.s8 %v139_v2  ;;  %vm438_vm3 = vcmask 7168   ;;  %vm440_vm4 = vcmask 15360   ;;  %vm442_vm5 = vcmask 23552  }
  0x5d   :  { %s1556_s10 = sld [smem:[#allocation6 + $0x80]]  ;;  %vm444_vm6 = vcmask 31744   ;;  %vm446_vm7 = vcmask 39936   ;;  %vm448_vm8 = vcmask 48128   ;;  %vm450_vm9 = vcmask 56320  }
  0x5e   :  { %s1557_s11 = sld [smem:[#allocation6 + $0x81]]  ;;  %v1992_v22 = vsub.s32 %v140_v12, %v142_v13  ;;  %vm452_vm10 = vcmask 64512   ;;  %vm454_vm11 = vcmask 72704   ;;  %vm456_vm12 = vcmask 80896  }
  0x5f   :  { %v120_v6 = vstv %s119_s6  ;;  %s1558_s12 = sld [smem:[#allocation6 + $0x82]]  ;;  %vm458_vm13 = vcmask 89088   ;;  %vm460_vm14 = vcmask 97280   ;;  %vm462_vm15 = vcmask 105472  }
  0x60   :  { %v121_v8 = vmul.f32 %v120_v6, %v112_v0  ;;  %v124_v9 = vstv %s1552_s9  ;;  %s1559_s13 = sld [smem:[#allocation6 + $0x83]] }
  0x61   :  { %v125_v10 = vmul.f32 %v124_v9, %v114_v4  ;;  %v128_v11 = vstv %s1553_s2  ;;  %s135_s24 = sld [smem:[#allocation12]] }
  0x62   :  { %v129_v14 = vmul.f32 %v128_v11, %v116_v5  ;;  %v132_v15 = vstv %s1554_s4  ;;  %s1555_s25 = sld [smem:[#allocation12 + $0x80]]  ;;  %s1902_s4 = smov 96  }
  0x63   :  { %v126_v16 = vadd.f32 %v125_v10, %v121_v8  ;;  %v133_v17 = vmul.f32 %v132_v15, %v118_v7  ;;  %v203_v18 = vstv %s1556_s10  ;;  %s1903_s10 = smov 112  }
  0x64   :  { %v204_v19 = vmul.f32 %v203_v18, %v112_v0  ;;  %v207_v20 = vstv %s1557_s11  ;;  %s1904_s11 = smov 80  }
  0x65   :  { %v130_v21 = vadd.f32 %v129_v14, %v126_v16  ;;  %v208_v23 = vmul.f32 %v207_v20, %v114_v4  ;;  %v211_v24 = vstv %s1558_s12  ;;  %s1905_s12 = smov 48  }
  0x66   :  { %v212_v25 = vmul.f32 %v211_v24, %v116_v5  ;;  %v215_v26 = vstv %s1559_s13  ;;  %s1906_s13 = smov 32  }
  0x67   :  { %v1994_v27 = vadd.f32 %v133_v17, %v130_v21  ;;  %v209_v28 = vadd.f32 %v208_v23, %v204_v19  ;;  %v216_v29 = vmul.f32 %v215_v26, %v118_v7 }
  0x69   :  { %v144_v30 = vrot.slane %v1994_v27, %v1992_v22  ;;  %v161_v31 = vmul.f32 %v1994_v27, %v1994_v27  ;;  %v213_v32 = vadd.f32 %v212_v25, %v209_v28 }
  0x6b   :  { %v145_v33 = vcombine.high %v144_v30, %v144_v30  ;;  %v149_v34 = vsel %vm148_vm0, %v144_v30, 0.0  ;;  %v169_v35 = vrot.slane %v161_v31, %v1992_v22  ;;  %v2002_v36 = vadd.f32 %v216_v29, %v213_v32 }
  0x6d   :  { %v150_v37 = vsel %vm148_vm0, %v145_v33, 0.0  ;;  %v170_v38 = vcombine.high %v169_v35, %v169_v35  ;;  %v173_v39 = vsel %vm148_vm0, %v169_v35, 0.0  ;;  %v227_v40 = vrot.slane %v2002_v36, %v1992_v22 }
  0x6e   :  { %v151_v41 = vadd.f32 %v150_v37, %v149_v34  ;;  %v243_v42 = vmul.f32 %v2002_v36, %v2002_v36 }
  0x6f   :  { %v174_v43 = vsel %vm148_vm0, %v170_v38, 0.0  ;;  %v228_v44 = vcombine.high %v227_v40, %v227_v40  ;;  %v231_v45 = vsel %vm148_vm0, %v227_v40, 0.0 }
  0x70   :  { %152 = vadd.xlane.f32.xlu0 %v151_v41  ;;  %v175_v46 = vadd.f32 %v174_v43, %v173_v39  ;;  %v251_v47 = vrot.slane %v243_v42, %v1992_v22 }
  0x71   :  { %v232_v48 = vsel %vm148_vm0, %v228_v44, 0.0 }
  0x72   :  { %v233_v49 = vadd.f32 %v232_v48, %v231_v45  ;;  %v252_v50 = vcombine.high %v251_v47, %v251_v47  ;;  %v255_v51 = vsel %vm148_vm0, %v251_v47, 0.0 }
  0x74   :  { %176 = vadd.xlane.f32.xlu0 %v175_v46  ;;  %234 = vadd.xlane.f32.xlu1 %v233_v49  ;;  %v256_v52 = vsel %vm148_vm0, %v252_v50, 0.0 }
  0x75   :  { %v257_v53 = vadd.f32 %v256_v52, %v255_v51 }
  0x78   :  { %258 = vadd.xlane.f32.xlu1 %v257_v53 }
  0xf9   :  { %v153_v54 = vpop.xlane.xlu0 %152 }
  0xfa   :  { %v154_v55 = vrot.slane %v153_v54, 4 }
  0xfc   :  { %v155_v56 = vadd.f32 %v154_v55, %v153_v54 }
  0xfd   :  { %v177_v57 = vpop.xlane.xlu0 %176  ;;  %v235_v4 = vpop.xlane.xlu1 %234 }
  0xfe   :  { %v178_v58 = vrot.slane %v177_v57, 4  ;;  %v156_v59 = vrot.slane %v155_v56, 2  ;;  %v236_v6 = vrot.slane %v235_v4, 4 }
 0x100   :  { %v179_v60 = vadd.f32 %v178_v58, %v177_v57  ;;  %v157_v61 = vadd.f32 %v156_v59, %v155_v56  ;;  %v237_v8 = vadd.f32 %v236_v6, %v235_v4 }
 0x101   :  { %v259_v5 = vpop.xlane.xlu1 %258 }
 0x102   :  { %v158_v62 = vrot.slane %v157_v61, 1  ;;  %v180_v63 = vrot.slane %v179_v60, 2  ;;  %v260_v7 = vrot.slane %v259_v5, 4  ;;  %v238_v11 = vrot.slane %v237_v8, 2 }
 0x104   :  { %v159_v0 = vadd.f32 %v158_v62, %v157_v61  ;;  %v181_v1 = vadd.f32 %v180_v63, %v179_v60  ;;  %v261_v9 = vadd.f32 %v260_v7, %v259_v5  ;;  %v239_v13 = vadd.f32 %v238_v11, %v237_v8 }
 0x106   :  { %1618 = vpush %v159_v0  ;;  %v182_v2 = vrot.slane %v181_v1, 1  ;;  %v262_v12 = vrot.slane %v261_v9, 2  ;;  %v240_v15 = vrot.slane %v239_v13, 1 }
 0x108   :  { %v183_v3 = vadd.f32 %v182_v2, %v181_v1  ;;  %v263_v14 = vadd.f32 %v262_v12, %v261_v9  ;;  %v241_v18 = vadd.f32 %v240_v15, %v239_v13 }
 0x10a   :  { %1620 = vpush %v183_v3  ;;  %v264_v16 = vrot.slane %v263_v14, 1 }
 0x10c   :  { %v265_v19 = vadd.f32 %v264_v16, %v263_v14 }
 0x137   :  { %s1619_s14 = spop %1618 }
 0x138   :  { %s2016_s17 = smul.f32 0.001953125, %s1619_s14  ;;  %s1907_s14 = smov 16  }
 0x13a   :  { %s187_s18 = smul.f32 %s2016_s17, %s2016_s17 }
 0x13b   :  { %s1621_s19 = spop %1620 }
 0x13c   :  { %s186_s1 = smul.f32 0.001953125, %s1621_s19 }
 0x13e   :  { %s188_s20 = ssub.f32 %s186_s1, %s187_s18 }
 0x13f   :  { %s1561_s18 = sld [smem:[#allocation12 + $0x81]] }
 0x140   :  { %s189_s22 = smax.f32 %s1901_s21, %s188_s20 }
 0x141   :  { %s190_s23 = sadd.f32 1e-05, %s189_s22 }
 0x143   :  { %v191_v10 = vstv %s190_s23  ;;  %s1908_s23 = smov 1  }
 0x144   :  { %1747 = vrsqrt.f32 %v191_v10 }
 0x151   :  { %v1748_v17 = vpop.eup %1747 }
 0x152   :  { %1622 = vpush %v1748_v17 }
 0x153   :  { %1624 = vpush %v241_v18 }
 0x154   :  { %1626 = vpush %v265_v19 }
 0x183   :  { %s1623_s0 = spop %1622 }
 0x184   :  { %s194_s26 = smul.f32 %s1623_s0, %s135_s24  ;;  %s1625_s27 = spop %1624 }
 0x185   :  { %s2021_s3 = smul.f32 0.001953125, %s1625_s27  ;;  %s1627_s5 = spop %1626 }
 0x186   :  { %v195_v20 = vstv %s194_s26  ;;  %s197_s28 = smul.f32 %s194_s26, %s2016_s17  ;;  %s1560_s17 = sld [smem:[#allocation12 + $0x1]] }
 0x187   :  { %s269_s29 = smul.f32 %s2021_s3, %s2021_s3  ;;  %v196_v21 = vmul.f32 %v195_v20, %v1994_v27  ;;  %s1563_s24 = sld [smem:[#allocation7 + $0x2]] }
 0x188   :  { %s198_s30 = ssub.f32 %s1555_s25, %s197_s28  ;;  %s268_s8 = smul.f32 0.001953125, %s1627_s5 }
 0x189   :  { %s1562_s25 = sld [smem:[#allocation7 + $0x1]]  ;;  %s1909_s0 = smov 126  }
 0x18a   :  { %v199_v23 = vstv %s198_s30  ;;  %s270_s6 = ssub.f32 %s268_s8, %s269_s29  ;;  %s1910_s26 = smov 127  }
 0x18b   :  { %v200_v24 = vadd.f32 %v199_v23, %v196_v21  ;;  %s1566_s27 = sld [smem:[#allocation7 + $0x5]] }
 0x18c   :  { %s271_s9 = smax.f32 %s1901_s21, %s270_s6  ;;  %s665_s5 = sld [smem:[#allocation7]] }
 0x18d   :  { %v2028_v25 = vmax.f32 %v200_v24, 0.0  ;;  %s272_s2 = sadd.f32 1e-05, %s271_s9 }
 0x18e   :  { %s1570_s28 = sld [smem:[#allocation7 + $0x81]] }
 0x18f   :  { %v273_v26 = vstv %s272_s2  ;;  %289 = vrot.lane.b32.xlu1 %v2028_v25, %s1902_s4  ;;  %285 = vrot.lane.b32.xlu0 %v2028_v25, %s1903_s10  ;;  %v348_v28 = vrot.slane %v2028_v25, %v1992_v22  ;;  %v339_v29 = vsel %vm338_vm1, %v2028_v25, 0.0  ;;  %v313_v20 = vrot.slane %v2028_v25, 2  ;;  %s1571_s29 = sld [smem:[#allocation7 + $0x82]] }
 0x190   :  { %1749 = vrsqrt.f32 %v273_v26  ;;  %s1564_s30 = sld [smem:[#allocation7 + $0x3]] }
 0x191   :  { %v391_v33 = vcombine.high %v348_v28, %v348_v28  ;;  %s1574_s8 = sld [smem:[#allocation7 + $0x85]] }
 0x192   :  { %s1573_s6 = sld [smem:[#allocation7 + $0x84]] }
 0x193   :  { %293 = vrot.lane.b32.xlu1 %v2028_v25, %s1904_s11  ;;  %s1569_s9 = sld [smem:[#allocation7 + $0x80]] }
 0x194   :  { %s1572_s2 = sld [smem:[#allocation7 + $0x83]] }
 0x197   :  { %297 = vrot.lane.b32.xlu1 %v2028_v25, %s1894_s15 }
 0x19b   :  { %301 = vrot.lane.b32.xlu1 %v2028_v25, %s1905_s12 }
 0x19d   :  { %v1750_v27 = vpop.eup %1749 }
 0x19e   :  { %1628 = vpush %v1750_v27 }
 0x19f   :  { %305 = vrot.lane.b32.xlu1 %v2028_v25, %s1906_s13 }
 0x1a3   :  { %309 = vrot.lane.b32.xlu1 %v2028_v25, %s1907_s14 }
 0x1a7   :  { %349 = vrot.lane.b32.xlu1 %v348_v28, %s1903_s10 }
 0x1ab   :  { %385 = vrot.lane.b32.xlu1 %v348_v28, %s1907_s14 }
 0x1ae   :  { %340 = vadd.xlane.f32.xlu0 %v339_v29 }
 0x1c4   :  { %355 = vrot.lane.b32.xlu0 %v348_v28, %s1902_s4 }
 0x1c8   :  { %361 = vrot.lane.b32.xlu0 %v348_v28, %s1904_s11 }
 0x1cc   :  { %367 = vrot.lane.b32.xlu0 %v348_v28, %s1894_s15 }
 0x1cf   :  { %s1629_s19 = spop %1628 }
 0x1d0   :  { %s276_s1 = smul.f32 %s1629_s19, %s1560_s17  ;;  %373 = vrot.lane.b32.xlu0 %v348_v28, %s1905_s12  ;;  %s1578_s17 = sld [smem:[#allocation9 + $0x2]] }
 0x1d1   :  { %s1580_s19 = sld [smem:[#allocation9 + $0x4]] }
 0x1d2   :  { %v277_v30 = vstv %s276_s1  ;;  %s279_s20 = smul.f32 %s276_s1, %s2021_s3  ;;  %s1565_s3 = sld [smem:[#allocation7 + $0x4]] }
 0x1d3   :  { %v278_v31 = vmul.f32 %v277_v30, %v2002_v36  ;;  %v393_v36 = vsel %vm338_vm1, %v391_v33, 0.0  ;;  %s1586_s1 = sld [smem:[#allocation9 + $0x82]] }
 0x1d4   :  { %s280_s22 = ssub.f32 %s1561_s18, %s279_s20  ;;  %379 = vrot.lane.b32.xlu0 %v348_v28, %s1906_s13 }
 0x1d5   :  { %s1577_s18 = sld [smem:[#allocation9 + $0x1]] }
 0x1d6   :  { %v281_v32 = vstv %s280_s22  ;;  %s1581_s20 = sld [smem:[#allocation9 + $0x5]] }
 0x1d7   :  { %v282_v34 = vadd.f32 %v281_v32, %v278_v31  ;;  %s1585_s22 = sld [smem:[#allocation9 + $0x81]] }
 0x1d8   :  { %396 = vrot.lane.b32.xlu0 %v391_v33, %s1903_s10 }
 0x1d9   :  { %v2058_v35 = vmax.f32 %v282_v34, 0.0 }
 0x1db   :  { %486 = vrot.lane.b32.xlu1 %v2058_v35, %s1905_s12  ;;  %v532_v37 = vrot.slane %v2058_v35, %v1992_v22  ;;  %v523_v40 = vsel %vm338_vm1, %v2058_v35, 0.0 }
 0x1dc   :  { %402 = vrot.lane.b32.xlu0 %v391_v33, %s1902_s4 }
 0x1dd   :  { %v575_v38 = vcombine.high %v532_v37, %v532_v37 }
 0x1df   :  { %432 = vrot.lane.b32.xlu1 %v391_v33, %s1907_s14  ;;  %v577_v4 = vsel %vm338_vm1, %v575_v38, 0.0 }
 0x1e0   :  { %470 = vrot.lane.b32.xlu0 %v2058_v35, %s1903_s10 }
 0x1e4   :  { %474 = vrot.lane.b32.xlu0 %v2058_v35, %s1902_s4 }
 0x1e8   :  { %478 = vrot.lane.b32.xlu0 %v2058_v35, %s1904_s11 }
 0x1ec   :  { %482 = vrot.lane.b32.xlu0 %v2058_v35, %s1894_s15 }
 0x1f0   :  { %490 = vrot.lane.b32.xlu0 %v2058_v35, %s1906_s13 }
 0x1f4   :  { %408 = vrot.lane.b32.xlu0 %v391_v33, %s1904_s11 }
 0x1f8   :  { %414 = vrot.lane.b32.xlu0 %v391_v33, %s1894_s15 }
 0x1fc   :  { %420 = vrot.lane.b32.xlu0 %v391_v33, %s1905_s12 }
 0x200   :  { %426 = vrot.lane.b32.xlu0 %v391_v33, %s1906_s13 }
 0x201   :  { %v2088_v39 = vpop.permute.xlu0 %285  ;;  %v290_v56 = vpop.permute.xlu1 %289 }
 0x202   :  { %v288_v7 = vadd.f32 %v2088_v39, %v2028_v25  ;;  %v316_v24 = vrot.slane %v2088_v39, 2  ;;  %v319_v29 = vrot.slane %v290_v56, 2 }
 0x203   :  { %394 = vadd.xlane.f32.xlu1 %v393_v36 }
 0x204   :  { %533 = vrot.lane.b32.xlu0 %v532_v37, %s1903_s10  ;;  %v292_v9 = vadd.f32 %v290_v56, %v288_v7 }
 0x205   :  { %v294_v58 = vpop.permute.xlu1 %293 }
 0x206   :  { %v296_v11 = vadd.f32 %v294_v58, %v292_v9  ;;  %v322_v32 = vrot.slane %v294_v58, 2 }
 0x208   :  { %580 = vrot.lane.b32.xlu0 %v575_v38, %s1903_s10 }
 0x209   :  { %v298_v61 = vpop.permute.xlu1 %297 }
 0x20a   :  { %v300_v13 = vadd.f32 %v298_v61, %v296_v11  ;;  %v325_v36 = vrot.slane %v298_v61, 2 }
 0x20c   :  { %592 = vrot.lane.b32.xlu0 %v575_v38, %s1904_s11 }
 0x20d   :  { %v302_v63 = vpop.permute.xlu1 %301 }
 0x20e   :  { %v304_v14 = vadd.f32 %v302_v63, %v300_v13  ;;  %v498_v13 = vrot.slane %v2058_v35, 2 }
 0x210   :  { %604 = vrot.lane.b32.xlu0 %v575_v38, %s1905_s12 }
 0x211   :  { %v306_v2 = vpop.permute.xlu1 %305 }
 0x212   :  { %v308_v17 = vadd.f32 %v306_v2, %v304_v14 }
 0x214   :  { %494 = vrot.lane.b32.xlu1 %v2058_v35, %s1907_s14  ;;  %616 = vrot.lane.b32.xlu0 %v575_v38, %s1907_s14 }
 0x215   :  { %v310_v3 = vpop.permute.xlu1 %309 }
 0x216   :  { %v312_v18 = vadd.f32 %v310_v3, %v308_v17 }
 0x218   :  { %v315_v21 = vadd.f32 %v313_v20, %v312_v18 }
 0x219   :  { %v350_v5 = vpop.permute.xlu1 %349 }
 0x21a   :  { %v352_v6 = vsel %vm338_vm1, %v350_v5, 0.0  ;;  %v318_v26 = vadd.f32 %v316_v24, %v315_v21 }
 0x21c   :  { %v321_v30 = vadd.f32 %v319_v29, %v318_v26 }
 0x21d   :  { %v386_v16 = vpop.permute.xlu1 %385 }
 0x21e   :  { %v388_v19 = vsel %vm338_vm1, %v386_v16, 0.0  ;;  %v324_v25 = vadd.f32 %v322_v32, %v321_v30 }
 0x237   :  { %v2092_v41 = vpop.xlane.xlu0 %340 }
 0x238   :  { %524 = vadd.xlane.f32.xlu1 %v523_v40  ;;  %v328_v40 = vrot.slane %v302_v63, 2 }
 0x23b   :  { %v356_v42 = vpop.permute.xlu0 %355 }
 0x23c   :  { %v358_v8 = vsel %vm338_vm1, %v356_v42, 0.0 }
 0x23f   :  { %v362_v43 = vpop.permute.xlu0 %361 }
 0x240   :  { %v364_v44 = vsel %vm338_vm1, %v362_v43, 0.0 }
 0x241   :  { %365 = vadd.xlane.f32.xlu0 %v364_v44 }
 0x243   :  { %v368_v45 = vpop.permute.xlu0 %367 }
 0x244   :  { %v370_v10 = vsel %vm338_vm1, %v368_v45, 0.0  ;;  %v331_v45 = vrot.slane %v306_v2, 2 }
 0x247   :  { %v374_v46 = vpop.permute.xlu0 %373 }
 0x248   :  { %v376_v12 = vsel %vm338_vm1, %v374_v46, 0.0 }
 0x249   :  { %539 = vrot.lane.b32.xlu1 %v532_v37, %s1902_s4 }
 0x24b   :  { %v380_v47 = vpop.permute.xlu0 %379 }
 0x24c   :  { %v382_v15 = vsel %vm338_vm1, %v380_v47, 0.0 }
 0x24d   :  { %545 = vrot.lane.b32.xlu1 %v532_v37, %s1904_s11  ;;  %v2129_v28 = vpop.permute.xlu1 %486 }
 0x24f   :  { %v397_v48 = vpop.permute.xlu0 %396 }
 0x250   :  { %v399_v23 = vsel %vm338_vm1, %v397_v48, 0.0  ;;  %v334_v48 = vrot.slane %v310_v3, 2 }
 0x251   :  { %551 = vrot.lane.b32.xlu1 %v532_v37, %s1894_s15  ;;  %v433_v33 = vpop.permute.xlu1 %432 }
 0x252   :  { %v435_v43 = vsel %vm338_vm1, %v433_v33, 0.0 }
 0x253   :  { %v403_v49 = vpop.permute.xlu0 %402 }
 0x254   :  { %v405_v50 = vsel %vm338_vm1, %v403_v49, 0.0 }
 0x255   :  { %557 = vrot.lane.b32.xlu1 %v532_v37, %s1905_s12  ;;  %406 = vadd.xlane.f32.xlu0 %v405_v50 }
 0x257   :  { %v2100_v51 = vpop.permute.xlu0 %470 }
 0x259   :  { %563 = vrot.lane.b32.xlu1 %v532_v37, %s1906_s13 }
 0x25b   :  { %v2103_v52 = vpop.permute.xlu0 %474 }
 0x25c   :  { %v504_v18 = vrot.slane %v2103_v52, 2 }
 0x25d   :  { %569 = vrot.lane.b32.xlu1 %v532_v37, %s1907_s14 }
 0x25f   :  { %v2106_v53 = vpop.permute.xlu0 %478 }
 0x260   :  { %v507_v21 = vrot.slane %v2106_v53, 2 }
 0x261   :  { %586 = vrot.lane.b32.xlu1 %v575_v38, %s1902_s4 }
 0x263   :  { %v2109_v54 = vpop.permute.xlu0 %482 }
 0x265   :  { %598 = vrot.lane.b32.xlu1 %v575_v38, %s1894_s15 }
 0x267   :  { %v2112_v55 = vpop.permute.xlu0 %490 }
 0x269   :  { %610 = vrot.lane.b32.xlu1 %v575_v38, %s1906_s13  ;;  %v327_v38 = vadd.f32 %v325_v36, %v324_v25 }
 0x26b   :  { %v409_v57 = vpop.permute.xlu0 %408  ;;  %v330_v42 = vadd.f32 %v328_v40, %v327_v38 }
 0x26c   :  { %v411_v27 = vsel %vm338_vm1, %v409_v57, 0.0 }
 0x26d   :  { %v333_v46 = vadd.f32 %v331_v45, %v330_v42 }
 0x26f   :  { %v415_v59 = vpop.permute.xlu0 %414  ;;  %v336_v49 = vadd.f32 %v334_v48, %v333_v46 }
 0x270   :  { %v417_v31 = vsel %vm338_vm1, %v415_v59, 0.0 }
 0x271   :  { %v337_v56 = vmul.f32 0.0625, %v336_v49 }
 0x273   :  { %v421_v60 = vpop.permute.xlu0 %420  ;;  %v645_v59 = vrot.slane %v337_v56, %v1992_v22 }
 0x274   :  { %v423_v34 = vsel %vm338_vm1, %v421_v60, 0.0 }
 0x277   :  { %v427_v62 = vpop.permute.xlu0 %426 }
 0x278   :  { %v429_v39 = vsel %vm338_vm1, %v427_v62, 0.0 }
 0x27b   :  { %v534_v0 = vpop.permute.xlu0 %533 }
 0x27c   :  { %v536_v1 = vsel %vm338_vm1, %v534_v0, 0.0 }
 0x27d   :  { %537 = vadd.xlane.f32.xlu0 %v536_v1  ;;  %v473_v1 = vadd.f32 %v2100_v51, %v2058_v35  ;;  %v510_v35 = vrot.slane %v2109_v54, 2 }
 0x27f   :  { %v477_v3 = vadd.f32 %v2103_v52, %v473_v1  ;;  %v513_v52 = vrot.slane %v2129_v28, 2 }
 0x28c   :  { %v2133_v37 = vpop.xlane.xlu1 %394 }
 0x28d   :  { %578 = vadd.xlane.f32.xlu1 %v577_v4  ;;  %v481_v4 = vadd.f32 %v2106_v53, %v477_v3  ;;  %v516_v53 = vrot.slane %v2112_v55, 2 }
 0x28f   :  { %v485_v7 = vadd.f32 %v2109_v54, %v481_v4 }
 0x290   :  { %v2137_v44 = vpop.permute.xlu1 %494 }
 0x291   :  { %353 = vadd.xlane.f32.xlu1 %v352_v6  ;;  %v519_v33 = vrot.slane %v2137_v44, 2 }
 0x295   :  { %359 = vadd.xlane.f32.xlu1 %v358_v8 }
 0x299   :  { %371 = vadd.xlane.f32.xlu1 %v370_v10  ;;  %v489_v10 = vadd.f32 %v2129_v28, %v485_v7 }
 0x29b   :  { %v493_v11 = vadd.f32 %v2112_v55, %v489_v10 }
 0x29d   :  { %377 = vadd.xlane.f32.xlu1 %v376_v12  ;;  %v497_v12 = vadd.f32 %v2137_v44, %v493_v11 }
 0x29f   :  { %v500_v14 = vadd.f32 %v498_v13, %v497_v12 }
 0x2a1   :  { %383 = vadd.xlane.f32.xlu1 %v382_v15  ;;  %v501_v15 = vrot.slane %v2100_v51, 2 }
 0x2a3   :  { %v503_v16 = vadd.f32 %v501_v15, %v500_v14 }
 0x2a5   :  { %389 = vadd.xlane.f32.xlu1 %v388_v19  ;;  %v506_v19 = vadd.f32 %v504_v18, %v503_v16 }
 0x2a7   :  { %v509_v24 = vadd.f32 %v507_v21, %v506_v19 }
 0x2a9   :  { %400 = vadd.xlane.f32.xlu1 %v399_v23  ;;  %v581_v23 = vpop.permute.xlu0 %580  ;;  %v512_v51 = vadd.f32 %v510_v35, %v509_v24 }
 0x2ab   :  { %v515_v30 = vadd.f32 %v513_v52, %v512_v51  ;;  %v698_v51 = vstv %s1566_s27 }
 0x2ad   :  { %412 = vadd.xlane.f32.xlu1 %v411_v27  ;;  %v583_v27 = vsel %vm338_vm1, %v581_v23, 0.0  ;;  %v593_v29 = vpop.permute.xlu0 %592  ;;  %v518_v32 = vadd.f32 %v516_v53, %v515_v30 }
 0x2af   :  { %v521_v25 = vadd.f32 %v519_v33, %v518_v32 }
 0x2b1   :  { %418 = vadd.xlane.f32.xlu1 %v417_v31  ;;  %v595_v31 = vsel %vm338_vm1, %v593_v29, 0.0 }
 0x2b5   :  { %424 = vadd.xlane.f32.xlu1 %v423_v34  ;;  %v522_v34 = vmul.f32 0.0625, %v521_v25  ;;  %v666_v25 = vstv %s665_s5 }
 0x2b7   :  { %v659_v54 = vrot.slane %v522_v34, %v1992_v22  ;;  %v605_v22 = vpop.permute.xlu0 %604 }
 0x2b8   :  { %v607_v46 = vsel %vm338_vm1, %v605_v22, 0.0  ;;  %v749_v22 = vstv %s1570_s28 }
 0x2b9   :  { %430 = vadd.xlane.f32.xlu1 %v429_v39 }
 0x2bd   :  { %436 = vadd.xlane.f32.xlu1 %v435_v43 }
 0x2c1   :  { %v2139_v47 = vpop.xlane.xlu1 %524 }
 0x2c5   :  { %v540_v50 = vpop.permute.xlu1 %539 }
 0x2c6   :  { %v542_v17 = vsel %vm338_vm1, %v540_v50, 0.0 }
 0x2c9   :  { %v546_v57 = vpop.permute.xlu1 %545 }
 0x2ca   :  { %v548_v58 = vsel %vm338_vm1, %v546_v57, 0.0 }
 0x2cb   :  { %549 = vadd.xlane.f32.xlu0 %v548_v58  ;;  %v678_v58 = vstv %s1563_s24 }
 0x2cd   :  { %v552_v60 = vpop.permute.xlu1 %551 }
 0x2ce   :  { %646 = vrot.lane.b32.xlu1 %v645_v59, %s1908_s23  ;;  %v554_v61 = vsel %vm338_vm1, %v552_v60, 0.0  ;;  %v670_v59 = vstv %s1562_s25 }
 0x2cf   :  { %555 = vadd.xlane.f32.xlu0 %v554_v61 }
 0x2d1   :  { %v558_v62 = vpop.permute.xlu1 %557 }
 0x2d2   :  { %v560_v63 = vsel %vm338_vm1, %v558_v62, 0.0 }
 0x2d3   :  { %561 = vadd.xlane.f32.xlu0 %v560_v63 }
 0x2d5   :  { %v564_v0 = vpop.permute.xlu1 %563 }
 0x2d6   :  { %v566_v20 = vsel %vm338_vm1, %v564_v0, 0.0  ;;  %v617_v0 = vpop.permute.xlu0 %616 }
 0x2d7   :  { %v619_v32 = vsel %vm338_vm1, %v617_v0, 0.0  ;;  %v777_v0 = vstv %s1574_s8  ;;  %s1579_s8 = sld [smem:[#allocation9 + $0x3]] }
 0x2d9   :  { %v570_v2 = vpop.permute.xlu1 %569 }
 0x2da   :  { %v572_v26 = vsel %vm338_vm1, %v570_v2, 0.0  ;;  %v2206_v1 = vpop.xlane.xlu0 %365 }
 0x2dd   :  { %v587_v5 = vpop.permute.xlu1 %586 }
 0x2de   :  { %v589_v6 = vsel %vm338_vm1, %v587_v5, 0.0  ;;  %v2208_v2 = vpop.xlane.xlu0 %406 }
 0x2df   :  { %590 = vadd.xlane.f32.xlu0 %v589_v6 }
 0x2e1   :  { %v599_v8 = vpop.permute.xlu1 %598 }
 0x2e2   :  { %v601_v9 = vsel %vm338_vm1, %v599_v8, 0.0 }
 0x2e3   :  { %602 = vadd.xlane.f32.xlu0 %v601_v9 }
 0x2e5   :  { %v2170_v36 = vpop.permute.xlu1 %610 }
 0x2e6   :  { %v613_v53 = vsel %vm338_vm1, %v2170_v36, 0.0  ;;  %v757_v36 = vstv %s1571_s29 }
 0x2f2   :  { %543 = vadd.xlane.f32.xlu1 %v542_v17 }
 0x2f6   :  { %567 = vadd.xlane.f32.xlu1 %v566_v20 }
 0x2fa   :  { %573 = vadd.xlane.f32.xlu1 %v572_v26 }
 0x2fe   :  { %584 = vadd.xlane.f32.xlu1 %v583_v27  ;;  %v690_v27 = vstv %s1565_s3 }
 0x302   :  { %596 = vadd.xlane.f32.xlu1 %v595_v31 }
 0x306   :  { %v538_v3 = vpop.xlane.xlu0 %537 }
 0x307   :  { %v622_v6 = vsel %vm438_vm3, %v2139_v47, %v538_v3  ;;  %v769_v3 = vstv %s1573_s6  ;;  %s1584_s6 = sld [smem:[#allocation9 + $0x80]] }
 0x313   :  { %660 = vrot.lane.b32.xlu1 %v659_v54, %s1908_s23 }
 0x316   :  { %v579_v38 = vpop.xlane.xlu1 %578 }
 0x31a   :  { %v2173_v39 = vpop.xlane.xlu1 %353 }
 0x31e   :  { %v2175_v28 = vpop.xlane.xlu1 %359 }
 0x322   :  { %v2177_v40 = vpop.xlane.xlu1 %371 }
 0x326   :  { %v2179_v42 = vpop.xlane.xlu1 %377 }
 0x32a   :  { %v2181_v55 = vpop.xlane.xlu1 %383 }
 0x32e   :  { %v2183_v43 = vpop.xlane.xlu1 %389 }
 0x332   :  { %v2185_v44 = vpop.xlane.xlu1 %400 }
 0x336   :  { %v2187_v45 = vpop.xlane.xlu1 %412 }
 0x337   :  { %608 = vadd.xlane.f32.xlu1 %v607_v46  ;;  %v686_v46 = vstv %s1564_s30  ;;  %s835_s30 = sld [smem:[#allocation9]] }
 0x33a   :  { %v2190_v48 = vpop.xlane.xlu1 %418 }
 0x33e   :  { %v2192_v49 = vpop.xlane.xlu1 %424 }
 0x342   :  { %v2194_v50 = vpop.xlane.xlu1 %430 }
 0x346   :  { %v2196_v56 = vpop.xlane.xlu1 %436 }
 0x34a   :  { %v647_v57 = vpop.permute.xlu1 %646 }
 0x34b   :  { %v649_v60 = vsel %vm438_vm3, 0.0, %v647_v57 }
 0x34c   :  { %v2200_v61 = vsel %vm650_vm2, %v649_v60, 0.0 }
 0x34d   :  { %v679_v62 = vmul.f32 %v678_v58, %v2200_v61  ;;  %v671_v63 = vmul.f32 %v670_v59, %v2200_v61  ;;  %v667_v54 = vmul.f32 %v666_v25, %v2200_v61  ;;  %v750_v60 = vmul.f32 %v749_v22, %v2200_v61 }
 0x34e   :  { %v848_v22 = vstv %s1578_s17  ;;  %s1589_s17 = sld [smem:[#allocation9 + $0x85]] }
 0x34f   :  { %681 = vrot.lane.b32.xlu0 %v679_v62, %s1909_s0  ;;  %673 = vrot.lane.b32.xlu1 %v671_v63, %s1910_s26  ;;  %v758_v62 = vmul.f32 %v757_v36, %v2200_v61  ;;  %v840_v36 = vstv %s1577_s18 }
 0x354   :  { %v550_v4 = vpop.xlane.xlu0 %549 }
 0x358   :  { %v556_v5 = vpop.xlane.xlu0 %555 }
 0x35c   :  { %v562_v10 = vpop.xlane.xlu0 %561 }
 0x368   :  { %v591_v16 = vpop.xlane.xlu0 %590 }
 0x36c   :  { %v603_v23 = vpop.xlane.xlu0 %602 }
 0x37b   :  { %v544_v7 = vpop.xlane.xlu1 %543 }
 0x37c   :  { %v623_v8 = vsel %vm440_vm4, %v622_v6, %v544_v7  ;;  %v439_v7 = vsel %vm438_vm3, %v2092_v41, %v2173_v39 }
 0x37d   :  { %v624_v9 = vsel %vm442_vm5, %v623_v8, %v550_v4 }
 0x37e   :  { %v625_v11 = vsel %vm444_vm6, %v624_v9, %v556_v5  ;;  %v441_v9 = vsel %vm440_vm4, %v439_v7, %v2175_v28  ;;  %vm464_vm4 = vcmask 113664   ;;  %v860_v7 = vstv %s1580_s19 }
 0x37f   :  { %v626_v12 = vsel %vm446_vm7, %v625_v11, %v562_v10  ;;  %v568_v13 = vpop.xlane.xlu1 %567 }
 0x380   :  { %v627_v14 = vsel %vm448_vm8, %v626_v12, %v568_v13  ;;  %v443_v13 = vsel %vm442_vm5, %v441_v9, %v2206_v1  ;;  %vm466_vm5 = vcmask 121856  }
 0x383   :  { %v574_v47 = vpop.xlane.xlu1 %573 }
 0x384   :  { %v628_v15 = vsel %vm450_vm9, %v627_v14, %v574_v47  ;;  %v445_v14 = vsel %vm444_vm6, %v443_v13, %v2177_v40  ;;  %v927_v13 = vstv %s1586_s1  ;;  %vm1021_vm6 = vcmask 523264  }
 0x385   :  { %v629_v17 = vsel %vm452_vm10, %v628_v15, %v579_v38  ;;  %v447_v39 = vsel %vm446_vm7, %v445_v14, %v2179_v42  ;;  %vm1023_vm7 = vcmask 654336  }
 0x386   :  { %v449_v28 = vsel %vm448_vm8, %v447_v39, %v2181_v55  ;;  %vm1025_vm8 = vcmask 785408  }
 0x387   :  { %v585_v18 = vpop.xlane.xlu1 %584  ;;  %v451_v1 = vsel %vm450_vm9, %v449_v28, %v2183_v43  ;;  %v919_v28 = vstv %s1585_s22  ;;  %vm1027_vm9 = vcmask 916480  }
 0x388   :  { %v630_v19 = vsel %vm454_vm11, %v629_v17, %v585_v18  ;;  %v453_v40 = vsel %vm452_vm10, %v451_v1, %v2133_v37 }
 0x389   :  { %v631_v20 = vsel %vm456_vm12, %v630_v19, %v591_v16  ;;  %v455_v16 = vsel %vm454_vm11, %v453_v40, %v2185_v44 }
 0x38a   :  { %v457_v17 = vsel %vm456_vm12, %v455_v16, %v2208_v2  ;;  %v745_v2 = vstv %s1569_s9  ;;  %s1587_s9 = sld [smem:[#allocation9 + $0x83]] }
 0x38b   :  { %v597_v21 = vpop.xlane.xlu1 %596  ;;  %v459_v42 = vsel %vm458_vm13, %v457_v17, %v2187_v45 }
 0x38c   :  { %v632_v24 = vsel %vm458_vm13, %v631_v20, %v597_v21  ;;  %v461_v55 = vsel %vm460_vm14, %v459_v42, %v2190_v48  ;;  %v746_v48 = vmul.f32 %v745_v2, %v2200_v61 }
 0x38d   :  { %v633_v26 = vsel %vm460_vm14, %v632_v24, %v603_v23  ;;  %v463_v43 = vsel %vm462_vm15, %v461_v55, %v2192_v49 }
 0x38e   :  { %v465_v18 = vsel %vm464_vm4, %v463_v43, %v2194_v50 }
 0x38f   :  { %v661_v35 = vpop.permute.xlu1 %660  ;;  %v467_v37 = vsel %vm466_vm5, %v465_v18, %v2196_v56 }
 0x390   :  { %v663_v29 = vsel %vm438_vm3, 0.0, %v661_v35  ;;  %v468_v19 = vmul.f32 0.0625, %v467_v37 }
 0x391   :  { %v2225_v52 = vsel %vm650_vm2, %v663_v29, 0.0 }
 0x392   :  { %v699_v30 = vmul.f32 %v698_v51, %v2225_v52  ;;  %v691_v31 = vmul.f32 %v690_v27, %v2225_v52  ;;  %v687_v63 = vmul.f32 %v686_v46, %v2225_v52  ;;  %v778_v5 = vmul.f32 %v777_v0, %v2225_v52 }
 0x393   :  { %v770_v6 = vmul.f32 %v769_v3, %v2225_v52 }
 0x394   :  { %701 = vrot.lane.b32.xlu0 %v699_v30, %s1909_s0  ;;  %693 = vrot.lane.b32.xlu1 %v691_v31, %s1910_s26 }
 0x3b3   :  { %614 = vadd.xlane.f32.xlu0 %v613_v53 }
 0x3b8   :  { %620 = vadd.xlane.f32.xlu1 %v619_v32 }
 0x3c0   :  { %v609_v33 = vpop.xlane.xlu1 %608 }
 0x3c1   :  { %v634_v34 = vsel %vm462_vm15, %v633_v26, %v609_v33  ;;  %v682_v58 = vpop.permute.xlu0 %681  ;;  %v765_v26 = vstv %s1572_s2  ;;  %s1588_s2 = sld [smem:[#allocation9 + $0x84]] }
 0x3c2   :  { %v766_v35 = vmul.f32 %v765_v26, %v2225_v52 }
 0x3c4   :  { %v674_v38 = vpop.permute.xlu1 %673 }
 0x3c5   :  { %v676_v57 = vadd.f32 %v674_v38, %v667_v54 }
 0x3c7   :  { %v684_v59 = vadd.f32 %v682_v58, %v676_v57 }
 0x3c9   :  { %752 = vrot.lane.b32.xlu0 %v750_v60, %s1910_s26  ;;  %760 = vrot.lane.b32.xlu1 %v758_v62, %s1909_s0  ;;  %v688_v4 = vadd.f32 %v687_v63, %v684_v59 }
 0x3cd   :  { %780 = vrot.lane.b32.xlu0 %v778_v5, %s1909_s0  ;;  %772 = vrot.lane.b32.xlu1 %v770_v6, %s1910_s26 }
 0x406   :  { %v694_v8 = vpop.permute.xlu1 %693  ;;  %v702_v11 = vpop.permute.xlu0 %701 }
 0x407   :  { %v696_v10 = vadd.f32 %v694_v8, %v688_v4 }
 0x409   :  { %v2250_v12 = vadd.f32 %v702_v11, %v696_v10 }
 0x40b   :  { %v707_v47 = vsel %vm338_vm1, %v2250_v12, 0.0  ;;  %v717_v41 = vmul.f32 %v2250_v12, %v2250_v12 }
 0x40c   :  { %708 = vadd.xlane.f32.xlu0 %v707_v47 }
 0x40d   :  { %v718_v15 = vsel %vm338_vm1, %v717_v41, 0.0  ;;  %v868_v41 = vstv %s1581_s20 }
 0x40e   :  { %719 = vadd.xlane.f32.xlu1 %v718_v15 }
 0x41f   :  { %824 = vrot.lane.b32.xlu1 %v468_v19, %s1908_s23  ;;  %v836_v19 = vstv %s835_s30 }
 0x43c   :  { %v615_v44 = vpop.xlane.xlu0 %614 }
 0x43d   :  { %v635_v45 = vsel %vm464_vm4, %v634_v34, %v615_v44 }
 0x440   :  { %v753_v20 = vpop.permute.xlu0 %752 }
 0x441   :  { %v621_v21 = vpop.xlane.xlu1 %620  ;;  %v755_v49 = vadd.f32 %v753_v20, %v746_v48 }
 0x442   :  { %v636_v23 = vsel %vm466_vm5, %v635_v45, %v621_v21  ;;  %v856_v45 = vstv %s1579_s8 }
 0x443   :  { %v637_v24 = vmul.f32 0.0625, %v636_v23 }
 0x444   :  { %v781_v30 = vpop.permute.xlu0 %780 }
 0x445   :  { %830 = vrot.lane.b32.xlu0 %v637_v24, %s1908_s23  ;;  %v761_v50 = vpop.permute.xlu1 %760 }
 0x446   :  { %v763_v56 = vadd.f32 %v761_v50, %v755_v49 }
 0x448   :  { %v767_v51 = vadd.f32 %v766_v35, %v763_v56 }
 0x449   :  { %v773_v27 = vpop.permute.xlu1 %772 }
 0x44a   :  { %v775_v29 = vadd.f32 %v773_v27, %v767_v51  ;;  %v915_v27 = vstv %s1584_s6  ;;  %s1576_s6 = sld [smem:[#allocation12 + $0x181]] }
 0x44c   :  { %v2285_v31 = vadd.f32 %v781_v30, %v775_v29 }
 0x44e   :  { %v786_v53 = vsel %vm338_vm1, %v2285_v31, 0.0  ;;  %v796_v11 = vmul.f32 %v2285_v31, %v2285_v31 }
 0x44f   :  { %787 = vadd.xlane.f32.xlu1 %v786_v53 }
 0x450   :  { %v797_v14 = vsel %vm338_vm1, %v796_v11, 0.0 }
 0x495   :  { %v709_v61 = vpop.xlane.xlu0 %708 }
 0x496   :  { %v710_v32 = vrot.slane %v709_v61, 4 }
 0x497   :  { %v720_v33 = vpop.xlane.xlu1 %719 }
 0x498   :  { %v711_v25 = vadd.f32 %v710_v32, %v709_v61  ;;  %v721_v34 = vrot.slane %v720_v33, 4 }
 0x49a   :  { %v712_v54 = vrot.slane %v711_v25, 2  ;;  %v722_v38 = vadd.f32 %v721_v34, %v720_v33  ;;  %v935_v34 = vstv %s1587_s9 }
 0x49b   :  { %v825_v52 = vpop.permute.xlu1 %824 }
 0x49c   :  { %v723_v46 = vrot.slane %v722_v38, 2  ;;  %v827_v57 = vsel %vm438_vm3, 0.0, %v825_v52  ;;  %v713_v58 = vadd.f32 %v712_v54, %v711_v25 }
 0x49d   :  { %v2291_v59 = vsel %vm650_vm2, %v827_v57, 0.0 }
 0x49e   :  { %v849_v60 = vmul.f32 %v848_v22, %v2291_v59  ;;  %v841_v62 = vmul.f32 %v840_v36, %v2291_v59  ;;  %v714_v63 = vrot.slane %v713_v58, 1  ;;  %v724_v0 = vadd.f32 %v723_v46, %v722_v38 }
 0x49f   :  { %v928_v47 = vmul.f32 %v927_v13, %v2291_v59  ;;  %v920_v15 = vmul.f32 %v919_v28, %v2291_v59  ;;  %v837_v44 = vmul.f32 %v836_v19, %v2291_v59  ;;  %v916_v53 = vmul.f32 %v915_v27, %v2291_v59 }
 0x4a0   :  { %851 = vrot.lane.b32.xlu1 %v849_v60, %s1909_s0  ;;  %843 = vrot.lane.b32.xlu0 %v841_v62, %s1910_s26  ;;  %v715_v3 = vadd.f32 %v714_v63, %v713_v58  ;;  %v725_v4 = vrot.slane %v724_v0, 1  ;;  %v939_v59 = vstv %s1588_s2  ;;  %v947_v62 = vstv %s1589_s17 }
 0x4a2   :  { %1630 = vpush %v715_v3  ;;  %v726_v5 = vadd.f32 %v725_v4, %v724_v0 }
 0x4a4   :  { %1632 = vpush %v726_v5 }
 0x4b7   :  { %v831_v6 = vpop.permute.xlu0 %830 }
 0x4b8   :  { %v833_v8 = vsel %vm438_vm3, 0.0, %v831_v6  ;;  %vm1019_vm3 = vcmask 392192  }
 0x4b9   :  { %v2299_v9 = vsel %vm650_vm2, %v833_v8, 0.0  ;;  %vm1017_vm2 = vcmask 261120  }
 0x4ba   :  { %v861_v10 = vmul.f32 %v860_v7, %v2299_v9  ;;  %v869_v39 = vmul.f32 %v868_v41, %v2299_v9  ;;  %v857_v23 = vmul.f32 %v856_v45, %v2299_v9  ;;  %v936_v57 = vmul.f32 %v935_v34, %v2299_v9 }
 0x4bb   :  { %v940_v60 = vmul.f32 %v939_v59, %v2299_v9  ;;  %v948_v63 = vmul.f32 %v947_v62, %v2299_v9 }
 0x4bc   :  { %863 = vrot.lane.b32.xlu1 %v861_v10, %s1910_s26 }
 0x4bf   :  { %798 = vadd.xlane.f32.xlu0 %v797_v14 }
 0x4c0   :  { %930 = vrot.lane.b32.xlu1 %v928_v47, %s1909_s0 }
 0x4d3   :  { %s1631_s23 = spop %1630 }
 0x4d4   :  { %s2309_s24 = smul.f32 0.03125, %s1631_s23 }
 0x4d5   :  { %s1633_s25 = spop %1632  ;;  %871 = vrot.lane.b32.xlu0 %v869_v39, %s1909_s0 }
 0x4d6   :  { %s730_s27 = smul.f32 %s2309_s24, %s2309_s24 }
 0x4d7   :  { %s729_s3 = smul.f32 0.03125, %s1633_s25 }
 0x4d8   :  { %v788_v1 = vpop.xlane.xlu1 %787 }
 0x4d9   :  { %s731_s5 = ssub.f32 %s729_s3, %s730_s27  ;;  %v789_v40 = vrot.slane %v788_v1, 4  ;;  %922 = vrot.lane.b32.xlu0 %v920_v15, %s1910_s26 }
 0x4db   :  { %s732_s28 = smax.f32 %s1901_s21, %s731_s5  ;;  %v790_v16 = vadd.f32 %v789_v40, %v788_v1 }
 0x4dc   :  { %s733_s29 = sadd.f32 1e-05, %s732_s28 }
 0x4dd   :  { %v791_v42 = vrot.slane %v790_v16, 2 }
 0x4de   :  { %v734_v17 = vstv %s733_s29  ;;  %s1575_s29 = sld [smem:[#allocation12 + $0x101]] }
 0x4df   :  { %1751 = vrsqrt.f32 %v734_v17  ;;  %v792_v55 = vadd.f32 %v791_v42, %v790_v16 }
 0x4e1   :  { %v793_v43 = vrot.slane %v792_v55, 1 }
 0x4e3   :  { %v794_v37 = vadd.f32 %v793_v43, %v792_v55  ;;  %v1911_v43 = vmov 1  }
 0x4e4   :  { %1716 = vset.pattern.permute.xlu0 %v1911_v43 }
 0x4ec   :  { %v1752_v18 = vpop.eup %1751 }
 0x4ed   :  { %1634 = vpush %v1752_v18  ;;  %v1912_v18 = vmov 0  }
 0x4ee   :  { %1636 = vpush %v794_v37  ;;  %1715 = vset.pattern.permute.xlu1 %v1912_v18 }
 0x512   :  { %v844_v2 = vpop.permute.xlu0 %843  ;;  %v852_v21 = vpop.permute.xlu1 %851 }
 0x513   :  { %v846_v20 = vadd.f32 %v844_v2, %v837_v44 }
 0x515   :  { %v854_v48 = vadd.f32 %v852_v21, %v846_v20 }
 0x517   :  { %v858_v24 = vadd.f32 %v857_v23, %v854_v48 }
 0x51e   :  { %s2332_s18 = spop %1634 }
 0x51f   :  { %s1637_s19 = spop %1636 }
 0x520   :  { %s2334_s1 = smul.f32 0.03125, %s1637_s19 }
 0x522   :  { %s809_s20 = smul.f32 %s2334_s1, %s2334_s1 }
 0x52e   :  { %v864_v26 = vpop.permute.xlu1 %863 }
 0x52f   :  { %v866_v56 = vadd.f32 %v864_v26, %v858_v24 }
 0x532   :  { %v931_v22 = vpop.permute.xlu1 %930 }
 0x548   :  { %v799_v49 = vpop.xlane.xlu0 %798 }
 0x549   :  { %v800_v50 = vrot.slane %v799_v49, 4 }
 0x54b   :  { %v801_v35 = vadd.f32 %v800_v50, %v799_v49 }
 0x54c   :  { %v872_v51 = vpop.permute.xlu0 %871 }
 0x54d   :  { %v802_v29 = vrot.slane %v801_v35, 2  ;;  %v2319_v30 = vadd.f32 %v872_v51, %v866_v56 }
 0x54f   :  { %v877_v61 = vsel %vm338_vm1, %v2319_v30, 0.0  ;;  %v887_v32 = vmul.f32 %v2319_v30, %v2319_v30  ;;  %v803_v33 = vadd.f32 %v802_v29, %v801_v35  ;;  %v1913_v29 = vmov 4  }
 0x550   :  { %v923_v25 = vpop.permute.xlu0 %922  ;;  %878 = vadd.xlane.f32.xlu1 %v877_v61 }
 0x551   :  { %v925_v54 = vadd.f32 %v923_v25, %v916_v53  ;;  %v888_v38 = vsel %vm338_vm1, %v887_v32, 0.0  ;;  %v804_v52 = vrot.slane %v803_v33, 1  ;;  %v1914_v53 = vmov 2  }
 0x552   :  { %889 = vadd.xlane.f32.xlu0 %v888_v38 }
 0x553   :  { %v933_v36 = vadd.f32 %v931_v22, %v925_v54  ;;  %v805_v46 = vadd.f32 %v804_v52, %v803_v33  ;;  %v1915_v22 = vmov 7  }
 0x555   :  { %1638 = vpush %v805_v46  ;;  %v937_v58 = vadd.f32 %v936_v57, %v933_v36  ;;  %v1916_v36 = vmov 3  }
 0x561   :  { %942 = vrot.lane.b32.xlu1 %v940_v60, %s1910_s26  ;;  %s1568_s26 = sld [smem:[#allocation12 + $0x180]] }
 0x568   :  { %950 = vrot.lane.b32.xlu0 %v948_v63, %s1909_s0  ;;  %s1567_s0 = sld [smem:[#allocation12 + $0x100]] }
 0x56e   :  { %s737_s5 = smul.f32 %s2332_s18, %s1567_s0  ;;  %s2414_s0 = sld [smem:[#allocation10 + $0x100]] }
 0x570   :  { %s740_s28 = smul.f32 %s737_s5, %s2309_s24  ;;  %v738_v37 = vstv %s737_s5  ;;  %s2419_s5 = sld [smem:[#allocation10 + $0x1]] }
 0x571   :  { %v739_v44 = vmul.f32 %v738_v37, %v2250_v12 }
 0x572   :  { %s741_s30 = ssub.f32 %s1568_s26, %s740_s28 }
 0x573   :  { %s2416_s26 = sld [smem:[#allocation10 + $0x180]] }
 0x574   :  { %v742_v19 = vstv %s741_s30  ;;  %s2425_s28 = sld [smem:[#allocation10 + $0x81]] }
 0x575   :  { %v2351_v2 = vadd.f32 %v742_v19, %v739_v44  ;;  %s2432_s30 = sld [smem:[#allocation10 + $0x181]]  ;;  %v1374_v44 = vstv %s2414_s0 }
 0x576   :  { %s2552_s0 = sld [smem:[#allocation10 + $0x183]] }
 0x586   :  { %s1639_s22 = spop %1638 }
 0x587   :  { %s808_s23 = smul.f32 0.03125, %s1639_s22 }
 0x589   :  { %s810_s25 = ssub.f32 %s808_s23, %s809_s20 }
 0x58b   :  { %s811_s27 = smax.f32 %s1901_s21, %s810_s25 }
 0x58c   :  { %s812_s3 = sadd.f32 1e-05, %s811_s27 }
 0x58d   :  { %s2407_s27 = sld [smem:[#allocation10]] }
 0x58e   :  { %v813_v0 = vstv %s812_s3  ;;  %s2412_s3 = sld [smem:[#allocation10 + $0x80]] }
 0x58f   :  { %1753 = vrsqrt.f32 %v813_v0 }
 0x594   :  { %v1295_v19 = vstv %s2412_s3  ;;  %s2544_s3 = sld [smem:[#allocation10 + $0x103]] }
 0x59c   :  { %v1754_v3 = vpop.eup %1753 }
 0x59d   :  { %1640 = vpush %v1754_v3 }
 0x5ce   :  { %s1641_s8 = spop %1640 }
 0x5cf   :  { %s816_s9 = smul.f32 %s1641_s8, %s1575_s29  ;;  %s2429_s29 = sld [smem:[#allocation10 + $0x101]] }
 0x5d1   :  { %s819_s24 = smul.f32 %s816_s9, %s2334_s1  ;;  %v817_v12 = vstv %s816_s9 }
 0x5d2   :  { %v818_v20 = vmul.f32 %v817_v12, %v2285_v31 }
 0x5d3   :  { %s820_s2 = ssub.f32 %s1576_s6, %s819_s24 }
 0x5d5   :  { %v821_v45 = vstv %s820_s2 }
 0x5d6   :  { %v2367_v21 = vadd.f32 %v821_v45, %v818_v20  ;;  %v1221_v45 = vstv %s2419_s5  ;;  %v1922_v20 = vmov 9  }
 0x5d9   :  { %v879_v4 = vpop.xlane.xlu1 %878 }
 0x5da   :  { %v880_v5 = vrot.slane %v879_v4, 4 }
 0x5db   :  { %v890_v6 = vpop.xlane.xlu0 %889 }
 0x5dc   :  { %v881_v7 = vadd.f32 %v880_v5, %v879_v4  ;;  %v891_v8 = vrot.slane %v890_v6, 4  ;;  %v1917_v5 = vmov 10  }
 0x5dd   :  { %v943_v9 = vpop.permute.xlu1 %942 }
 0x5de   :  { %v882_v10 = vrot.slane %v881_v7, 2  ;;  %v892_v11 = vadd.f32 %v891_v8, %v890_v6  ;;  %v945_v13 = vadd.f32 %v943_v9, %v937_v58  ;;  %v1918_v6 = vmov 5  }
 0x5df   :  { %v951_v14 = vpop.permute.xlu0 %950 }
 0x5e0   :  { %v893_v47 = vrot.slane %v892_v11, 2  ;;  %v2339_v41 = vadd.f32 %v951_v14, %v945_v13  ;;  %v883_v39 = vadd.f32 %v882_v10, %v881_v7  ;;  %v1919_v13 = vmov 13  }
 0x5e2   :  { %v956_v28 = vsel %vm338_vm1, %v2339_v41, 0.0  ;;  %v966_v15 = vmul.f32 %v2339_v41, %v2339_v41  ;;  %v884_v1 = vrot.slane %v883_v39, 1  ;;  %v894_v40 = vadd.f32 %v893_v47, %v892_v11 }
 0x5e3   :  { %957 = vadd.xlane.f32.xlu1 %v956_v28  ;;  %v1920_v47 = vmov 6  }
 0x5e4   :  { %v967_v16 = vsel %vm338_vm1, %v966_v15, 0.0  ;;  %v885_v17 = vadd.f32 %v884_v1, %v883_v39  ;;  %v895_v42 = vrot.slane %v894_v40, 1  ;;  %vm1015_vm1 = vcmask 130048  }
 0x5e5   :  { %968 = vadd.xlane.f32.xlu0 %v967_v16 }
 0x5e6   :  { %1642 = vpush %v885_v17  ;;  %v896_v55 = vadd.f32 %v895_v42, %v894_v40  ;;  %v1921_v40 = vmov 8  }
 0x5e8   :  { %1644 = vpush %v896_v55  ;;  %v1217_v55 = vstv %s2407_s27  ;;  %s2540_s27 = sld [smem:[#allocation10 + $0x83]] }
 0x5f4   :  { %997 = vrot.lane.b32.xlu1 %v2351_v2, %s1906_s13 }
 0x5f8   :  { %1000 = vrot.lane.b32.xlu1 %v2351_v2, %s1905_s12 }
 0x5fb   :  { %994 = vrot.lane.b32.xlu0 %v2351_v2, %s1907_s14 }
 0x5fc   :  { %1006 = vrot.lane.b32.xlu1 %v2351_v2, %s1904_s11 }
 0x5ff   :  { %1003 = vrot.lane.b32.xlu0 %v2351_v2, %s1894_s15 }
 0x600   :  { %1012 = vrot.lane.b32.xlu1 %v2351_v2, %s1903_s10 }
 0x603   :  { %1009 = vrot.lane.b32.xlu0 %v2351_v2, %s1902_s4 }
 0x604   :  { %1033 = vrot.lane.b32.xlu1 %v2367_v21, %s1906_s13 }
 0x607   :  { %1030 = vrot.lane.b32.xlu0 %v2367_v21, %s1907_s14 }
 0x608   :  { %1039 = vrot.lane.b32.xlu1 %v2367_v21, %s1894_s15 }
 0x60b   :  { %1036 = vrot.lane.b32.xlu0 %v2367_v21, %s1905_s12  ;;  %s1583_s12 = sld [smem:[#allocation12 + $0x280]] }
 0x60c   :  { %1045 = vrot.lane.b32.xlu1 %v2367_v21, %s1902_s4  ;;  %s1582_s4 = sld [smem:[#allocation12 + $0x200]] }
 0x60f   :  { %1042 = vrot.lane.b32.xlu0 %v2367_v21, %s1904_s11 }
 0x613   :  { %1048 = vrot.lane.b32.xlu0 %v2367_v21, %s1903_s10 }
 0x617   :  { %s1643_s17 = spop %1642 }
 0x618   :  { %s898_s13 = smul.f32 0.03125, %s1643_s17 }
 0x619   :  { %s1645_s18 = spop %1644 }
 0x61a   :  { %s900_s19 = smul.f32 %s898_s13, %s898_s13 }
 0x61b   :  { %s899_s14 = smul.f32 0.03125, %s1645_s18 }
 0x61d   :  { %s901_s1 = ssub.f32 %s899_s14, %s900_s19 }
 0x61e   :  { %s1590_s19 = sld [smem:[#allocation12 + $0x201]] }
 0x61f   :  { %s902_s20 = smax.f32 %s1901_s21, %s901_s1  ;;  %s1591_s14 = sld [smem:[#allocation12 + $0x281]] }
 0x620   :  { %s903_s22 = sadd.f32 1e-05, %s902_s20 }
 0x621   :  { %s2476_s1 = sld [smem:[#allocation10 + $0x2]] }
 0x622   :  { %v904_v31 = vstv %s903_s22  ;;  %s2478_s20 = sld [smem:[#allocation10 + $0x82]] }
 0x623   :  { %1755 = vrsqrt.f32 %v904_v31  ;;  %v1378_v31 = vstv %s2429_s29  ;;  %s2481_s22 = sld [smem:[#allocation10 + $0x102]] }
 0x630   :  { %v1756_v48 = vpop.eup %1755 }
 0x631   :  { %1646 = vpush %v1756_v48  ;;  %v1457_v48 = vstv %s2432_s30 }
 0x662   :  { %s1647_s23 = spop %1646 }
 0x663   :  { %s907_s11 = smul.f32 %s1647_s23, %s1582_s4  ;;  %s2483_s4 = sld [smem:[#allocation10 + $0x182]] }
 0x665   :  { %v908_v23 = vstv %s907_s11  ;;  %s910_s25 = smul.f32 %s907_s11, %s898_s13 }
 0x666   :  { %v909_v24 = vmul.f32 %v908_v23, %v2319_v30 }
 0x667   :  { %s911_s10 = ssub.f32 %s1583_s12, %s910_s25 }
 0x669   :  { %v912_v26 = vstv %s911_s10  ;;  %s2532_s10 = sld [smem:[#allocation10 + $0x3]] }
 0x66a   :  { %v2387_v49 = vadd.f32 %v912_v26, %v909_v24 }
 0x66c   :  { %1064 = vperm.xlu0 %1716, %v2387_v49   ;;  %1060 = vperm.xlu1 %1715, %v2387_v49   ;;  %v958_v50 = vpop.xlane.xlu1 %957 }
 0x66d   :  { %v959_v56 = vrot.slane %v958_v50, 4 }
 0x66e   :  { %v969_v35 = vpop.xlane.xlu0 %968 }
 0x66f   :  { %v960_v51 = vadd.f32 %v959_v56, %v958_v50  ;;  %v970_v27 = vrot.slane %v969_v35, 4 }
 0x670   :  { %1719 = vset.pattern.permute.xlu0 %v1913_v29  ;;  %1717 = vset.pattern.permute.xlu1 %v1914_v53  ;;  %v998_v61 = vpop.permute.xlu1 %997 }
 0x671   :  { %v961_v30 = vrot.slane %v960_v51, 2  ;;  %v971_v32 = vadd.f32 %v970_v27, %v969_v35  ;;  %1076 = vperm.xlu0 %1719, %v2387_v49   ;;  %1068 = vperm.xlu1 %1717, %v2387_v49  }
 0x672   :  { %v995_v33 = vpop.permute.xlu0 %994 }
 0x673   :  { %v972_v25 = vrot.slane %v971_v32, 2  ;;  %v1016_v34 = vsel %vm1015_vm1, %v2351_v2, %v995_v33  ;;  %v962_v54 = vadd.f32 %v961_v30, %v960_v51  ;;  %v1453_v2 = vstv %s2416_s26 }
 0x674   :  { %v1018_v38 = vsel %vm1017_vm2, %v1016_v34, %v998_v61  ;;  %v1001_v52 = vpop.permute.xlu1 %1000 }
 0x675   :  { %1722 = vset.pattern.permute.xlu0 %v1915_v22  ;;  %1718 = vset.pattern.permute.xlu1 %v1916_v36  ;;  %v1020_v46 = vsel %vm1019_vm3, %v1018_v38, %v1001_v52  ;;  %v963_v57 = vrot.slane %v962_v54, 1  ;;  %v973_v58 = vadd.f32 %v972_v25, %v971_v32  ;;  %v1924_v38 = vmov 12  }
 0x676   :  { %1088 = vperm.xlu0 %1722, %v2387_v49   ;;  %1072 = vperm.xlu1 %1718, %v2387_v49   ;;  %v1004_v59 = vpop.permute.xlu0 %1003  ;;  %v1925_v52 = vmov 14  }
 0x677   :  { %v1022_v60 = vsel %vm1021_vm6, %v1020_v46, %v1004_v59  ;;  %v964_v62 = vadd.f32 %v963_v57, %v962_v54  ;;  %v974_v63 = vrot.slane %v973_v58, 1  ;;  %v1923_v54 = vmov 11  }
 0x678   :  { %v1007_v0 = vpop.permute.xlu1 %1006  ;;  %v1926_v46 = vmov 15  }
 0x679   :  { %v1024_v3 = vsel %vm1023_vm7, %v1022_v60, %v1007_v0  ;;  %1648 = vpush %v964_v62  ;;  %v975_v4 = vadd.f32 %v974_v63, %v973_v58 }
 0x67a   :  { %1725 = vset.pattern.permute.xlu0 %v1917_v5  ;;  %1720 = vset.pattern.permute.xlu1 %v1918_v6  ;;  %v1010_v7 = vpop.permute.xlu0 %1009 }
 0x67b   :  { %1100 = vperm.xlu0 %1725, %v2387_v49   ;;  %v1026_v8 = vsel %vm1025_vm8, %v1024_v3, %v1010_v7  ;;  %1080 = vperm.xlu1 %1720, %v2387_v49   ;;  %1650 = vpush %v975_v4 }
 0x67c   :  { %v1013_v9 = vpop.permute.xlu1 %1012 }
 0x67d   :  { %v1028_v10 = vsel %vm1027_vm9, %v1026_v8, %v1013_v9 }
 0x67e   :  { %v1031_v11 = vpop.permute.xlu0 %1030  ;;  %v1218_v23 = vmul.f32 %v1217_v55, %v1028_v10  ;;  %v1296_v26 = vmul.f32 %v1295_v19, %v1028_v10  ;;  %v1375_v50 = vmul.f32 %v1374_v44, %v1028_v10  ;;  %v1454_v56 = vmul.f32 %v1453_v2, %v1028_v10 }
 0x67f   :  { %1728 = vset.pattern.permute.xlu0 %v1919_v13  ;;  %v1051_v14 = vsel %vm1015_vm1, %v2367_v21, %v1031_v11  ;;  %1721 = vset.pattern.permute.xlu1 %v1920_v47  ;;  %v1225_v10 = vstv %s2476_s1 }
 0x680   :  { %1112 = vperm.xlu0 %1728, %v2387_v49   ;;  %1084 = vperm.xlu1 %1721, %v2387_v49   ;;  %v1034_v39 = vpop.permute.xlu1 %1033 }
 0x681   :  { %v1052_v28 = vsel %vm1017_vm2, %v1051_v14, %v1034_v39  ;;  %v1303_v39 = vstv %s2478_s20 }
 0x682   :  { %v1037_v15 = vpop.permute.xlu0 %1036 }
 0x683   :  { %v1053_v1 = vsel %vm1019_vm3, %v1052_v28, %v1037_v15  ;;  %v1382_v28 = vstv %s2481_s22  ;;  %v1461_v15 = vstv %s2483_s4 }
 0x684   :  { %1723 = vset.pattern.permute.xlu1 %v1921_v40  ;;  %v1040_v16 = vpop.permute.xlu1 %1039  ;;  %1731 = vset.pattern.permute.xlu0 %v1912_v18  ;;  %v1299_v18 = vstv %s2425_s28 }
 0x685   :  { %1092 = vperm.xlu1 %1723, %v2387_v49   ;;  %v1054_v17 = vsel %vm1021_vm6, %v1053_v1, %v1040_v16 }
 0x686   :  { %v1043_v42 = vpop.permute.xlu0 %1042 }
 0x687   :  { %v1055_v37 = vsel %vm1023_vm7, %v1054_v17, %v1043_v42 }
 0x688   :  { %v1046_v12 = vpop.permute.xlu1 %1045 }
 0x689   :  { %1724 = vset.pattern.permute.xlu1 %v1922_v20  ;;  %v1056_v21 = vsel %vm1025_vm8, %v1055_v37, %v1046_v12 }
 0x68a   :  { %1096 = vperm.xlu1 %1724, %v2387_v49   ;;  %v1049_v24 = vpop.permute.xlu0 %1048 }
 0x68b   :  { %v1057_v35 = vsel %vm1027_vm9, %v1056_v21, %v1049_v24 }
 0x68c   :  { %v1222_v51 = vmul.f32 %v1221_v45, %v1057_v35  ;;  %v1300_v27 = vmul.f32 %v1299_v18, %v1057_v35  ;;  %v1379_v61 = vmul.f32 %v1378_v31, %v1057_v35  ;;  %v1458_v30 = vmul.f32 %v1457_v48, %v1057_v35 }
 0x68e   :  { %v2452_v32 = vadd.f32 %v1222_v51, %v1218_v23  ;;  %v2454_v33 = vadd.f32 %v1300_v27, %v1296_v26  ;;  %v2456_v25 = vadd.f32 %v1379_v61, %v1375_v50  ;;  %v2458_v34 = vadd.f32 %v1458_v30, %v1454_v56  ;;  %1726 = vset.pattern.permute.xlu1 %v1923_v54 }
 0x68f   :  { %1104 = vperm.xlu1 %1726, %v2387_v49  }
 0x693   :  { %1727 = vset.pattern.permute.xlu1 %v1924_v38 }
 0x694   :  { %1108 = vperm.xlu1 %1727, %v2387_v49  }
 0x698   :  { %1729 = vset.pattern.permute.xlu1 %v1925_v52 }
 0x699   :  { %1116 = vperm.xlu1 %1729, %v2387_v49  }
 0x69d   :  { %1730 = vset.pattern.permute.xlu1 %v1926_v46 }
 0x69e   :  { %1120 = vperm.xlu1 %1730, %v2387_v49  }
 0x6a2   :  { %1732 = vset.pattern.permute.xlu1 %v1911_v43 }
 0x6aa   :  { %s1649_s8 = spop %1648 }
 0x6ab   :  { %s2469_s6 = smul.f32 0.03125, %s1649_s8 }
 0x6ac   :  { %s1651_s9 = spop %1650 }
 0x6ad   :  { %s979_s24 = smul.f32 %s2469_s6, %s2469_s6 }
 0x6ae   :  { %s978_s2 = smul.f32 0.03125, %s1651_s9 }
 0x6b0   :  { %s980_s17 = ssub.f32 %s978_s2, %s979_s24 }
 0x6b1   :  { %s1236_s24 = sld [smem:[#allocation13]] }
 0x6b2   :  { %s981_s13 = smax.f32 %s1901_s21, %s980_s17  ;;  %s1595_s2 = sld [smem:[#allocation13 + $0x80]] }
 0x6b3   :  { %s982_s18 = sadd.f32 1e-05, %s981_s13 }
 0x6b5   :  { %v983_v57 = vstv %s982_s18 }
 0x6b6   :  { %1757 = vrsqrt.f32 %v983_v57 }
 0x6c3   :  { %v1758_v58 = vpop.eup %1757 }
 0x6c4   :  { %1652 = vpush %v1758_v58 }
 0x6e7   :  { %v1061_v59 = vpop.permute.xlu1 %1060  ;;  %v1065_v49 = vpop.permute.xlu0 %1064 }
 0x6e8   :  { %v1123_v43 = vsel %vm1015_vm1, %v1061_v59, %v1065_v49 }
 0x6ec   :  { %v1069_v60 = vpop.permute.xlu1 %1068  ;;  %v1077_v3 = vpop.permute.xlu0 %1076 }
 0x6ed   :  { %v1124_v62 = vsel %vm1017_vm2, %v1123_v43, %v1069_v60  ;;  %v1231_v60 = vstv %s2532_s10  ;;  %s1602_s10 = sld [smem:[#allocation13 + $0x81]] }
 0x6f1   :  { %v1073_v63 = vpop.permute.xlu1 %1072  ;;  %v1089_v1 = vpop.permute.xlu0 %1088 }
 0x6f2   :  { %v1125_v0 = vsel %vm1019_vm3, %v1124_v62, %v1073_v63 }
 0x6f3   :  { %v1126_v4 = vsel %vm1021_vm6, %v1125_v0, %v1077_v3 }
 0x6f5   :  { %s1653_s12 = spop %1652 }
 0x6f6   :  { %s986_s23 = smul.f32 %s1653_s12, %s1590_s19  ;;  %v1081_v7 = vpop.permute.xlu1 %1080  ;;  %v1101_v18 = vpop.permute.xlu0 %1100 }
 0x6f7   :  { %v1127_v8 = vsel %vm1023_vm7, %v1126_v4, %v1081_v7 }
 0x6f8   :  { %v987_v9 = vstv %s986_s23  ;;  %s989_s11 = smul.f32 %s986_s23, %s2469_s6 }
 0x6f9   :  { %v988_v11 = vmul.f32 %v987_v9, %v2339_v41 }
 0x6fa   :  { %s990_s25 = ssub.f32 %s1591_s14, %s989_s11 }
 0x6fb   :  { %v1085_v14 = vpop.permute.xlu1 %1084  ;;  %v1113_v31 = vpop.permute.xlu0 %1112 }
 0x6fc   :  { %v991_v16 = vstv %s990_s25  ;;  %v1128_v17 = vsel %vm1025_vm8, %v1127_v8, %v1085_v14  ;;  %v1309_v14 = vstv %s2540_s27  ;;  %s1601_s25 = sld [smem:[#allocation13 + $0x1]] }
 0x6fd   :  { %v992_v42 = vadd.f32 %v991_v16, %v988_v11  ;;  %v1129_v55 = vsel %vm1027_vm9, %v1128_v17, %v1089_v1 }
 0x6fe   :  { %v1226_v37 = vmul.f32 %v1225_v10, %v1129_v55  ;;  %v1304_v19 = vmul.f32 %v1303_v39, %v1129_v55  ;;  %v1383_v44 = vmul.f32 %v1382_v28, %v1129_v55  ;;  %v1462_v2 = vmul.f32 %v1461_v15, %v1129_v55 }
 0x6ff   :  { %1143 = vperm.xlu1 %1732, %v992_v42   ;;  %1139 = vperm.xlu0 %1731, %v992_v42  }
 0x700   :  { %v2504_v41 = vadd.f32 %v1226_v37, %v2452_v32  ;;  %v2507_v12 = vadd.f32 %v1304_v19, %v2454_v33  ;;  %v2510_v45 = vadd.f32 %v1383_v44, %v2456_v25  ;;  %v2513_v21 = vadd.f32 %v1462_v2, %v2458_v34 }
 0x701   :  { %v1388_v37 = vstv %s2544_s3 }
 0x703   :  { %1733 = vset.pattern.permute.xlu1 %v1914_v53  ;;  %1734 = vset.pattern.permute.xlu0 %v1916_v36 }
 0x704   :  { %1147 = vperm.xlu1 %1733, %v992_v42   ;;  %1151 = vperm.xlu0 %1734, %v992_v42  }
 0x708   :  { %1735 = vset.pattern.permute.xlu1 %v1913_v29  ;;  %1737 = vset.pattern.permute.xlu0 %v1920_v47  ;;  %v1093_v29 = vpop.permute.xlu1 %1092 }
 0x709   :  { %1155 = vperm.xlu1 %1735, %v992_v42   ;;  %1163 = vperm.xlu0 %1737, %v992_v42  }
 0x70c   :  { %v1097_v53 = vpop.permute.xlu1 %1096 }
 0x70d   :  { %1736 = vset.pattern.permute.xlu1 %v1918_v6  ;;  %1740 = vset.pattern.permute.xlu0 %v1922_v20  ;;  %v1130_v35 = vsel %vm1015_vm1, %v1093_v29, %v1097_v53 }
 0x70e   :  { %1159 = vperm.xlu1 %1736, %v992_v42   ;;  %1175 = vperm.xlu0 %1740, %v992_v42   ;;  %v1131_v61 = vsel %vm1017_vm2, %v1130_v35, %v1101_v18 }
 0x712   :  { %1738 = vset.pattern.permute.xlu1 %v1915_v22  ;;  %1743 = vset.pattern.permute.xlu0 %v1924_v38  ;;  %v1105_v22 = vpop.permute.xlu1 %1104 }
 0x713   :  { %1167 = vperm.xlu1 %1738, %v992_v42   ;;  %1187 = vperm.xlu0 %1743, %v992_v42  }
 0x716   :  { %v1109_v36 = vpop.permute.xlu1 %1108 }
 0x717   :  { %1739 = vset.pattern.permute.xlu1 %v1921_v40  ;;  %1746 = vset.pattern.permute.xlu0 %v1926_v46 }
 0x718   :  { %1171 = vperm.xlu1 %1739, %v992_v42   ;;  %1199 = vperm.xlu0 %1746, %v992_v42  }
 0x71a   :  { %v1117_v6 = vpop.permute.xlu1 %1116 }
 0x71c   :  { %1741 = vset.pattern.permute.xlu1 %v1917_v5 }
 0x71d   :  { %1179 = vperm.xlu1 %1741, %v992_v42  }
 0x71e   :  { %v1121_v47 = vpop.permute.xlu1 %1120 }
 0x721   :  { %1742 = vset.pattern.permute.xlu1 %v1923_v54  ;;  %v1132_v54 = vsel %vm1019_vm3, %v1131_v61, %v1105_v22 }
 0x722   :  { %1183 = vperm.xlu1 %1742, %v992_v42   ;;  %v1133_v46 = vsel %vm1021_vm6, %v1132_v54, %v1109_v36 }
 0x723   :  { %v1134_v59 = vsel %vm1023_vm7, %v1133_v46, %v1113_v31 }
 0x724   :  { %v1135_v43 = vsel %vm1025_vm8, %v1134_v59, %v1117_v6 }
 0x725   :  { %v1136_v0 = vsel %vm1027_vm9, %v1135_v43, %v1121_v47 }
 0x726   :  { %1744 = vset.pattern.permute.xlu1 %v1919_v13  ;;  %v1227_v11 = vmul.f32 %v1225_v10, %v1136_v0  ;;  %v1305_v1 = vmul.f32 %v1303_v39, %v1136_v0  ;;  %v1384_v17 = vmul.f32 %v1382_v28, %v1136_v0  ;;  %v1463_v47 = vmul.f32 %v1461_v15, %v1136_v0 }
 0x727   :  { %1191 = vperm.xlu1 %1744, %v992_v42  }
 0x728   :  { %v1229_v29 = vadd.f32 %v1227_v11, %v2452_v32  ;;  %v1307_v53 = vadd.f32 %v1305_v1, %v2454_v33  ;;  %v1386_v6 = vadd.f32 %v1384_v17, %v2456_v25 }
 0x72b   :  { %1745 = vset.pattern.permute.xlu1 %v1925_v52 }
 0x72c   :  { %1195 = vperm.xlu1 %1745, %v992_v42  }
 0x77a   :  { %v1144_v40 = vpop.permute.xlu1 %1143  ;;  %v1140_v23 = vpop.permute.xlu0 %1139 }
 0x77b   :  { %v1202_v56 = vsel %vm1015_vm1, %v1140_v23, %v1144_v40  ;;  %v1467_v40 = vstv %s2552_s0  ;;  %v1465_v23 = vadd.f32 %v1463_v47, %v2458_v34 }
 0x77f   :  { %v1148_v20 = vpop.permute.xlu1 %1147  ;;  %v1152_v26 = vpop.permute.xlu0 %1151 }
 0x780   :  { %v1203_v51 = vsel %vm1017_vm2, %v1202_v56, %v1148_v20 }
 0x781   :  { %v1204_v30 = vsel %vm1019_vm3, %v1203_v51, %v1152_v26 }
 0x784   :  { %v1156_v5 = vpop.permute.xlu1 %1155  ;;  %v1164_v50 = vpop.permute.xlu0 %1163 }
 0x785   :  { %v1205_v38 = vsel %vm1021_vm6, %v1204_v30, %v1156_v5 }
 0x789   :  { %v1160_v48 = vpop.permute.xlu1 %1159  ;;  %v1176_v52 = vpop.permute.xlu0 %1175 }
 0x78a   :  { %v1206_v57 = vsel %vm1023_vm7, %v1205_v38, %v1160_v48 }
 0x78b   :  { %v1207_v49 = vsel %vm1025_vm8, %v1206_v57, %v1164_v50 }
 0x78e   :  { %v1168_v24 = vpop.permute.xlu1 %1167  ;;  %v1188_v3 = vpop.permute.xlu0 %1187 }
 0x78f   :  { %v1208_v62 = vsel %vm1027_vm9, %v1207_v49, %v1168_v24 }
 0x790   :  { %v1232_v9 = vmul.f32 %v1231_v60, %v1208_v62  ;;  %v1310_v44 = vmul.f32 %v1309_v14, %v1208_v62  ;;  %v1468_v26 = vmul.f32 %v1467_v40, %v1208_v62 }
 0x792   :  { %v2566_v19 = vadd.f32 %v1232_v9, %v2504_v41  ;;  %v1389_v41 = vmul.f32 %v1388_v37, %v1208_v62  ;;  %v2577_v20 = vadd.f32 %v1310_v44, %v2507_v12  ;;  %v2613_v38 = vadd.f32 %v1468_v26, %v2513_v21 }
 0x793   :  { %v1172_v13 = vpop.permute.xlu1 %1171  ;;  %v1200_v2 = vpop.permute.xlu0 %1199 }
 0x794   :  { %v1209_v63 = vsel %vm1015_vm1, %v1172_v13, %v1176_v52  ;;  %v1250_v32 = vmul.f32 %v2566_v19, %v2566_v19  ;;  %v1238_v31 = vsel %vm148_vm0, %v2566_v19, 0.0  ;;  %v2597_v24 = vadd.f32 %v1389_v41, %v2510_v45 }
 0x795   :  { %v1328_v51 = vmul.f32 %v2577_v20, %v2577_v20  ;;  %v1316_v34 = vsel %vm148_vm0, %v2577_v20, 0.0 }
 0x796   :  { %v1252_v50 = vsel %vm148_vm0, %v1250_v32, 0.0  ;;  %v1407_v57 = vmul.f32 %v2597_v24, %v2597_v24  ;;  %v1395_v59 = vsel %vm148_vm0, %v2597_v24, 0.0 }
 0x797   :  { %v1330_v52 = vsel %vm148_vm0, %v1328_v51, 0.0 }
 0x798   :  { %v1180_v27 = vpop.permute.xlu1 %1179 }
 0x799   :  { %v1210_v4 = vsel %vm1017_vm2, %v1209_v63, %v1180_v27  ;;  %v1486_v63 = vmul.f32 %v2613_v38, %v2613_v38 }
 0x79d   :  { %v1184_v58 = vpop.permute.xlu1 %1183 }
 0x79e   :  { %v1211_v8 = vsel %vm1019_vm3, %v1210_v4, %v1184_v58 }
 0x79f   :  { %v1212_v16 = vsel %vm1021_vm6, %v1211_v8, %v1188_v3  ;;  %v1474_v3 = vsel %vm148_vm0, %v2613_v38, 0.0  ;;  %v1488_v8 = vsel %vm148_vm0, %v1486_v63, 0.0 }
 0x7a2   :  { %v1192_v7 = vpop.permute.xlu1 %1191 }
 0x7a3   :  { %v1213_v42 = vsel %vm1023_vm7, %v1212_v16, %v1192_v7 }
 0x7a7   :  { %v1196_v55 = vpop.permute.xlu1 %1195 }
 0x7a8   :  { %v1214_v10 = vsel %vm1025_vm8, %v1213_v42, %v1196_v55 }
 0x7a9   :  { %v1215_v39 = vsel %vm1027_vm9, %v1214_v10, %v1200_v2 }
 0x7aa   :  { %v1233_v22 = vmul.f32 %v1231_v60, %v1215_v39  ;;  %v1311_v28 = vmul.f32 %v1309_v14, %v1215_v39  ;;  %v1390_v36 = vmul.f32 %v1388_v37, %v1215_v39  ;;  %v1469_v33 = vmul.f32 %v1467_v40, %v1215_v39 }
 0x7ab   :  { %v1409_v60 = vsel %vm148_vm0, %v1407_v57, 0.0 }
 0x7ac   :  { %v2579_v18 = vadd.f32 %v1233_v22, %v1229_v29  ;;  %v2583_v5 = vadd.f32 %v1311_v28, %v1307_v53  ;;  %v2593_v48 = vadd.f32 %v1390_v36, %v1386_v6  ;;  %v2610_v30 = vadd.f32 %v1469_v33, %v1465_v23 }
 0x7ae   :  { %v1239_v25 = vsel %vm148_vm0, %v2579_v18, 0.0  ;;  %v1251_v15 = vmul.f32 %v2579_v18, %v2579_v18  ;;  %v1329_v12 = vmul.f32 %v2583_v5, %v2583_v5  ;;  %v1317_v35 = vsel %vm148_vm0, %v2583_v5, 0.0 }
 0x7af   :  { %v1240_v13 = vadd.f32 %v1239_v25, %v1238_v31  ;;  %v1408_v61 = vmul.f32 %v2593_v48, %v2593_v48  ;;  %v1318_v54 = vadd.f32 %v1317_v35, %v1316_v34  ;;  %v1396_v46 = vsel %vm148_vm0, %v2593_v48, 0.0 }
 0x7b0   :  { %v1253_v56 = vsel %vm148_vm0, %v1251_v15, 0.0  ;;  %v1331_v45 = vsel %vm148_vm0, %v1329_v12, 0.0  ;;  %v1487_v43 = vmul.f32 %v2610_v30, %v2610_v30  ;;  %v1397_v21 = vadd.f32 %v1396_v46, %v1395_v59 }
 0x7b1   :  { %1241 = vadd.xlane.f32.xlu1 %v1240_v13  ;;  %v1254_v27 = vadd.f32 %v1253_v56, %v1252_v50  ;;  %v1332_v58 = vadd.f32 %v1331_v45, %v1330_v52  ;;  %v1410_v49 = vsel %vm148_vm0, %v1408_v61, 0.0  ;;  %v1475_v62 = vsel %vm148_vm0, %v2610_v30, 0.0 }
 0x7b2   :  { %v1411_v0 = vadd.f32 %v1410_v49, %v1409_v60  ;;  %v1489_v4 = vsel %vm148_vm0, %v1487_v43, 0.0  ;;  %v1476_v7 = vadd.f32 %v1475_v62, %v1474_v3 }
 0x7b3   :  { %1255 = vadd.xlane.f32.xlu0 %v1254_v27  ;;  %v1490_v9 = vadd.f32 %v1489_v4, %v1488_v8 }
 0x7b5   :  { %1319 = vadd.xlane.f32.xlu1 %v1318_v54 }
 0x7b7   :  { %1333 = vadd.xlane.f32.xlu0 %v1332_v58 }
 0x7b9   :  { %1398 = vadd.xlane.f32.xlu1 %v1397_v21 }
 0x7bb   :  { %1412 = vadd.xlane.f32.xlu0 %v1411_v0 }
 0x7bd   :  { %1477 = vadd.xlane.f32.xlu1 %v1476_v7 }
 0x7bf   :  { %1491 = vadd.xlane.f32.xlu0 %v1490_v9 }
 0x83a   :  { %v1242_v11 = vpop.xlane.xlu1 %1241 }
 0x83b   :  { %v1243_v14 = vrot.slane %v1242_v11, 4 }
 0x83c   :  { %v1256_v1 = vpop.xlane.xlu0 %1255 }
 0x83d   :  { %v1244_v16 = vadd.f32 %v1243_v14, %v1242_v11  ;;  %v1257_v17 = vrot.slane %v1256_v1, 4 }
 0x83e   :  { %v1320_v22 = vpop.xlane.xlu1 %1319 }
 0x83f   :  { %v1245_v42 = vrot.slane %v1244_v16, 2  ;;  %v1258_v55 = vadd.f32 %v1257_v17, %v1256_v1  ;;  %v1321_v36 = vrot.slane %v1320_v22, 4 }
 0x840   :  { %v1334_v28 = vpop.xlane.xlu0 %1333 }
 0x841   :  { %v1259_v37 = vrot.slane %v1258_v55, 2  ;;  %v1246_v44 = vadd.f32 %v1245_v42, %v1244_v16  ;;  %v1335_v6 = vrot.slane %v1334_v28, 4  ;;  %v1322_v47 = vadd.f32 %v1321_v36, %v1320_v22 }
 0x842   :  { %v1399_v50 = vpop.xlane.xlu1 %1398 }
 0x843   :  { %v1247_v2 = vrot.slane %v1246_v44, 1  ;;  %v1260_v10 = vadd.f32 %v1259_v37, %v1258_v55  ;;  %v1336_v40 = vadd.f32 %v1335_v6, %v1334_v28  ;;  %v1323_v32 = vrot.slane %v1322_v47, 2 }
 0x844   :  { %v1413_v35 = vpop.xlane.xlu0 %1412  ;;  %v1400_v51 = vrot.slane %v1399_v50, 4 }
 0x845   :  { %v1248_v29 = vadd.f32 %v1247_v2, %v1246_v44  ;;  %v1261_v39 = vrot.slane %v1260_v10, 1  ;;  %v1337_v33 = vrot.slane %v1336_v40, 2  ;;  %v1324_v31 = vadd.f32 %v1323_v32, %v1322_v47 }
 0x846   :  { %v1414_v45 = vrot.slane %v1413_v35, 4  ;;  %v1401_v46 = vadd.f32 %v1400_v51, %v1399_v50  ;;  %v1478_v3 = vpop.xlane.xlu1 %1477 }
 0x847   :  { %1654 = vpush %v1248_v29  ;;  %v1262_v53 = vadd.f32 %v1261_v39, %v1260_v10  ;;  %v1338_v25 = vadd.f32 %v1337_v33, %v1336_v40  ;;  %v1325_v15 = vrot.slane %v1324_v31, 1  ;;  %v1479_v8 = vrot.slane %v1478_v3, 4 }
 0x848   :  { %v1415_v58 = vadd.f32 %v1414_v45, %v1413_v35  ;;  %v1402_v49 = vrot.slane %v1401_v46, 2  ;;  %v1492_v7 = vpop.xlane.xlu0 %1491 }
 0x849   :  { %1656 = vpush %v1262_v53  ;;  %v1339_v12 = vrot.slane %v1338_v25, 1  ;;  %v1326_v26 = vadd.f32 %v1325_v15, %v1324_v31  ;;  %v1493_v14 = vrot.slane %v1492_v7, 4  ;;  %v1480_v42 = vadd.f32 %v1479_v8, %v1478_v3 }
 0x84a   :  { %v1416_v43 = vrot.slane %v1415_v58, 2  ;;  %v1403_v21 = vadd.f32 %v1402_v49, %v1401_v46 }
 0x84b   :  { %v1340_v13 = vadd.f32 %v1339_v12, %v1338_v25  ;;  %v1494_v37 = vadd.f32 %v1493_v14, %v1492_v7  ;;  %v1481_v2 = vrot.slane %v1480_v42, 2 }
 0x84c   :  { %v1404_v60 = vrot.slane %v1403_v21, 1 }
 0x84d   :  { %v1495_v10 = vrot.slane %v1494_v37, 2  ;;  %v1482_v29 = vadd.f32 %v1481_v2, %v1480_v42 }
 0x84e   :  { %v1405_v63 = vadd.f32 %v1404_v60, %v1403_v21 }
 0x84f   :  { %v1483_v39 = vrot.slane %v1482_v29, 1 }
 0x851   :  { %v1484_v22 = vadd.f32 %v1483_v39, %v1482_v29 }
 0x878   :  { %s1655_s26 = spop %1654 }
 0x879   :  { %s2634_s5 = smul.f32 0.001953125, %s1655_s26 }
 0x87a   :  { %s1657_s29 = spop %1656 }
 0x87b   :  { %s1266_s28 = smul.f32 %s2634_s5, %s2634_s5 }
 0x87c   :  { %s1265_s30 = smul.f32 0.001953125, %s1657_s29 }
 0x87e   :  { %s1267_s8 = ssub.f32 %s1265_s30, %s1266_s28 }
 0x880   :  { %s1268_s6 = smax.f32 %s1901_s21, %s1267_s8 }
 0x881   :  { %s1269_s9 = sadd.f32 1e-05, %s1268_s6 }
 0x883   :  { %v1270_v41 = vstv %s1269_s9 }
 0x884   :  { %1759 = vrsqrt.f32 %v1270_v41 }
 0x891   :  { %v1760_v23 = vpop.eup %1759 }
 0x892   :  { %1658 = vpush %v1760_v23 }
 0x893   :  { %1660 = vpush %v1326_v26 }
 0x894   :  { %1662 = vpush %v1340_v13 }
 0x8c3   :  { %s1659_s17 = spop %1658 }
 0x8c4   :  { %s1273_s13 = smul.f32 %s1659_s17, %s1236_s24  ;;  %s1661_s18 = spop %1660 }
 0x8c5   :  { %s2639_s19 = smul.f32 0.001953125, %s1661_s18  ;;  %s1663_s14 = spop %1662 }
 0x8c6   :  { %v1274_v56 = vstv %s1273_s13  ;;  %s1277_s1 = smul.f32 %s1273_s13, %s2634_s5  ;;  %s1609_s17 = sld [smem:[#allocation13 + $0x82]] }
 0x8c7   :  { %s1344_s20 = smul.f32 %s2639_s19, %s2639_s19  ;;  %v1275_v27 = vmul.f32 %v1274_v56, %v2566_v19  ;;  %v1276_v34 = vmul.f32 %v1274_v56, %v2579_v18  ;;  %v1417_v19 = vadd.f32 %v1416_v43, %v1415_v58 }
 0x8c8   :  { %s1278_s22 = ssub.f32 %s1595_s2, %s1277_s1  ;;  %s1343_s4 = smul.f32 0.001953125, %s1663_s14 }
 0x8c9   :  { %v1418_v18 = vrot.slane %v1417_v19, 1  ;;  %s1608_s2 = sld [smem:[#allocation13 + $0x2]] }
 0x8ca   :  { %v1279_v61 = vstv %s1278_s22  ;;  %s1345_s12 = ssub.f32 %s1343_s4, %s1344_s20 }
 0x8cb   :  { %v1280_v54 = vadd.f32 %v1279_v61, %v1275_v27  ;;  %v1281_v52 = vadd.f32 %v1279_v61, %v1276_v34  ;;  %v1419_v0 = vadd.f32 %v1418_v18, %v1417_v19 }
 0x8cc   :  { %s1346_s23 = smax.f32 %s1901_s21, %s1345_s12 }
 0x8cd   :  { %s1347_s11 = sadd.f32 1e-05, %s1346_s23  ;;  %v1284_v57 = vcombine.low %v1280_v54, %v1281_v52 }
 0x8cf   :  { %v1348_v59 = vstv %s1347_s11  ;;  %1596 = vst.sshfl [vmem:[#allocation15] sm:$0x33 pattern:$0x76325410] %v1284_v57 }
 0x8d0   :  { %1761 = vrsqrt.f32 %v1348_v59 }
 0x8dd   :  { %v1762_v62 = vpop.eup %1761 }
 0x8de   :  { %1664 = vpush %v1762_v62 }
 0x8df   :  { %1666 = vpush %v1405_v63 }
 0x8e0   :  { %1668 = vpush %v1419_v0 }
 0x90f   :  { %s1665_s27 = spop %1664 }
 0x910   :  { %s1351_s3 = smul.f32 %s1665_s27, %s1601_s25  ;;  %s1667_s0 = spop %1666 }
 0x911   :  { %s2647_s26 = smul.f32 0.001953125, %s1667_s0  ;;  %s1669_s5 = spop %1668 }
 0x912   :  { %v1352_v4 = vstv %s1351_s3  ;;  %s1355_s28 = smul.f32 %s1351_s3, %s2639_s19  ;;  %s1616_s27 = sld [smem:[#allocation13 + $0x83]] }
 0x913   :  { %s1423_s29 = smul.f32 %s2647_s26, %s2647_s26  ;;  %v1353_v9 = vmul.f32 %v1352_v4, %v2577_v20  ;;  %v1354_v11 = vmul.f32 %v1352_v4, %v2583_v5  ;;  %v1496_v20 = vadd.f32 %v1495_v10, %v1494_v37 }
 0x914   :  { %s1356_s30 = ssub.f32 %s1602_s10, %s1355_s28  ;;  %s1422_s8 = smul.f32 0.001953125, %s1669_s5 }
 0x915   :  { %v1497_v5 = vrot.slane %v1496_v20, 1  ;;  %s1615_s10 = sld [smem:[#allocation13 + $0x3]] }
 0x916   :  { %v1357_v1 = vstv %s1356_s30  ;;  %s1424_s6 = ssub.f32 %s1422_s8, %s1423_s29 }
 0x917   :  { %v1358_v16 = vadd.f32 %v1357_v1, %v1353_v9  ;;  %v1359_v17 = vadd.f32 %v1357_v1, %v1354_v11  ;;  %v1498_v28 = vadd.f32 %v1497_v5, %v1496_v20 }
 0x918   :  { %s1425_s9 = smax.f32 %s1901_s21, %s1424_s6 }
 0x919   :  { %s1426_s24 = sadd.f32 1e-05, %s1425_s9  ;;  %v1362_v55 = vcombine.low %v1358_v16, %v1359_v17 }
 0x91b   :  { %v1427_v44 = vstv %s1426_s24  ;;  %1603 = vst.sshfl [vmem:[#allocation15 + $0x4] sm:$0x33 pattern:$0x76325410] %v1362_v55 }
 0x91c   :  { %1763 = vrsqrt.f32 %v1427_v44 }
 0x929   :  { %v1764_v53 = vpop.eup %1763 }
 0x92a   :  { %1670 = vpush %v1764_v53 }
 0x92b   :  { %1672 = vpush %v1484_v22 }
 0x92c   :  { %1674 = vpush %v1498_v28 }
 0x95b   :  { %s1671_s13 = spop %1670 }
 0x95c   :  { %s1430_s18 = smul.f32 %s1671_s13, %s1608_s2  ;;  %s1673_s19 = spop %1672 }
 0x95d   :  { %s1500_s14 = smul.f32 0.001953125, %s1673_s19  ;;  %s1675_s1 = spop %1674 }
 0x95e   :  { %v1431_v36 = vstv %s1430_s18  ;;  %s1434_s20 = smul.f32 %s1430_s18, %s2647_s26 }
 0x95f   :  { %s1502_s22 = smul.f32 %s1500_s14, %s1500_s14  ;;  %v1432_v6 = vmul.f32 %v1431_v36, %v2597_v24  ;;  %v1433_v47 = vmul.f32 %v1431_v36, %v2593_v48 }
 0x960   :  { %s1435_s4 = ssub.f32 %s1609_s17, %s1434_s20  ;;  %s1501_s12 = smul.f32 0.001953125, %s1675_s1 }
 0x962   :  { %v1436_v40 = vstv %s1435_s4  ;;  %s1503_s23 = ssub.f32 %s1501_s12, %s1502_s22 }
 0x963   :  { %v1437_v41 = vadd.f32 %v1436_v40, %v1432_v6  ;;  %v1438_v32 = vadd.f32 %v1436_v40, %v1433_v47 }
 0x964   :  { %s1504_s11 = smax.f32 %s1901_s21, %s1503_s23  ;;  %s1927_s21 = smov [#allocation15]  }
 0x965   :  { %s1505_s25 = sadd.f32 1e-05, %s1504_s11  ;;  %v1441_v33 = vcombine.low %v1437_v41, %v1438_v32  ;;  %s1536_s28 = sshll.u32 %s1927_s21, 4  ;;  %s1537_s28 = int_to_ptr.vmem [resolvable:$true] %s1536_s28 }
 0x966   :  { %s1859_s29 = scalar_lea.vmem %s1537_s28, 256  ;;  %p1864_p8 = scmp.lt.s32.totalorder %s1537_s28, %s1537_s28 }
 0x967   :  { %v1506_v31 = vstv %s1505_s25  ;;  %1610 = vst.sshfl [vmem:[#allocation15 + $0x8] sm:$0x33 pattern:$0x76325410] %v1441_v33  ;;  %p1860_p7 = scmp.ne.s32.totalorder %s1537_s28, %s1859_s29  ;;  %p1865_p9 = scmp.lt.s32.totalorder %s1859_s29, %s1859_s29 }
 0x968   :  { %1765 = vrsqrt.f32 %v1506_v31 }
 0x969   :  { %p1866_p10 = por %p1865_p9, %p1864_p8 }
 0x96b   :  { %p1867_p11 = pnand %p1866_p10, %p1860_p7 }
 0x975   :  { %v1766_v25 = vpop.eup %1765 }
 0x976   :  { %1676 = vpush %v1766_v25 }
 0x9a7   :  { %s1677_s3 = spop %1676 }
 0x9a8   :  { %s1509_s0 = smul.f32 %s1677_s3, %s1615_s10 }
 0x9aa   :  { %v1510_v24 = vstv %s1509_s0  ;;  %s1513_s26 = smul.f32 %s1509_s0, %s1500_s14 }
 0x9ab   :  { %v1511_v48 = vmul.f32 %v1510_v24, %v2613_v38  ;;  %v1512_v15 = vmul.f32 %v1510_v24, %v2610_v30 }
 0x9ac   :  { %s1514_s5 = ssub.f32 %s1616_s27, %s1513_s26 }
 0x9ae   :  { %v1515_v12 = vstv %s1514_s5 }
 0x9af   :  { %v1516_v23 = vadd.f32 %v1515_v12, %v1511_v48  ;;  %v1517_v26 = vadd.f32 %v1515_v12, %v1512_v15 }
 0x9b1   :  { %v1520_v13 = vcombine.low %v1516_v23, %v1517_v26 }
 0x9b3   :  { %1617 = vst.sshfl [vmem:[#allocation15 + $0xc] sm:$0x33 pattern:$0x76325410] %v1520_v13 }
 0x9b4   :  { %1870 = shalt.err (!%p1867_p11)
}
 0x9b5   :  { %1542 = dma.vmem_to_hbm [thread:$0]  %s1537_s28, 256, %s2674_s7, [#allocation4], %s1894_s15, %s1894_s15, %s1895_s16  }
 0x9b6   :  { %1889 = dma.done.wait [#allocation4], 256  }
 0x9b7   :  { %1890 = vsyncadd [#allocation4], 4294967040 }
 0x9b8   :  { %1546 = vsyncpa [#allocation3], 1 }
 0x9b9   :  { %1547 = vsyncpa [#allocation4], 1 }
 0x9ba   :  { %1548 = vsyncpa [#allocation5], 1 }
 0x9bb   :  { %1549 = vsyncpa [#allocation8], 1 }
 0x9bc   :  { %1550 = vsyncpa [#allocation11], 1 }
 0x9bd   :  { %1551 = vsyncpa [#allocation14], 1 }

</bundles_post_ra>
